<compile_context>
chip_gen: v7x
topology: tpu7x:2x2x1
jax: 0.10.0
libtpu: 0.0.40
codegen_flags: <defaults>
</compile_context>

<pallas_src>
import math

import jax
import jax.numpy as jnp
from jax.experimental import pallas as pl
from jax.experimental.pallas import tpu as pltpu

BN_EPS = 1e-5


def _round_up(x, m):
    return ((x + m - 1) // m) * m


# ----------------------------------------------------------------------------
# In-kernel building block: TimeDelayLayer_v5 on a traced (T, C) value.
# ----------------------------------------------------------------------------
def _tdnn_layer(h, w_ref, a_ref, context, dilation, padding):
    """Conv1d(+bias) -> ReLU -> folded eval-mode BatchNorm.

    h:     (T, C_in) f32 traced value.
    w_ref: (context*C_in, C_out) VMEM ref (taps merged along rows).
    a_ref: (3, C_out) VMEM ref packing [conv_bias; bn_scale; bn_shift].
    """
    T, c_in = h.shape
    if padding:
        zrow = jnp.zeros((padding, c_in), jnp.float32)
        h = jnp.concatenate([zrow, h, zrow], axis=0)
        T = T + 2 * padding
    t_out = T - (context - 1) * dilation
    if context == 1:
        x_win = h
    else:
        # Merge the K taps into one deep-contraction matmul: (T_out, K*C_in).
        x_win = jnp.concatenate(
            [h[k * dilation:k * dilation + t_out, :] for k in range(context)],
            axis=1)
    y = jnp.dot(x_win, w_ref[...], preferred_element_type=jnp.float32)
    y = y + a_ref[0:1, :]                       # conv bias
    y = jnp.maximum(y, 0.0)                     # ReLU
    return y * a_ref[1:2, :] + a_ref[2:3, :]    # folded eval-mode BatchNorm1d


# ----------------------------------------------------------------------------
# Fused network kernel: frame1..frame14 -> STAP -> segment1 -> classifier.
# ----------------------------------------------------------------------------
def _make_fused_kernel(layer_cfg, num_classes, embedding_size, out_w):
    def kernel(*refs):
        x_ref = refs[0]
        o_ref = refs[-1]
        it = iter(refs[1:-1])

        h = x_ref[0]                                   # (T, input_dim)
        for kind, context, padding in layer_cfg:
            if kind == "conv":                         # plain TimeDelayLayer_v5
                w_ref, a_ref = next(it), next(it)
                h = _tdnn_layer(h, w_ref, a_ref, context, 1, padding)
            else:                                      # TDNNBlock (+ residual)
                w1, a1, w2, a2 = next(it), next(it), next(it), next(it)
                hb = _tdnn_layer(h, w1, a1, context, 1, padding)
                hb = _tdnn_layer(hb, w2, a2, context, 1, padding)
                h = h + hb

        # StatisticPooling (STAP): mean || unbiased std over time -> (1, 2*C).
        T = h.shape[0]
        mean = jnp.mean(h, axis=0, keepdims=True)
        var = jnp.sum((h - mean) ** 2, axis=0, keepdims=True) / (T - 1)
        pooled = jnp.concatenate([mean, jnp.sqrt(var)], axis=1)

        # segment1: Linear -> ReLU -> folded eval-mode BatchNorm1d.
        w_s, a_s = next(it), next(it)
        emb = jnp.dot(pooled, w_s[...], preferred_element_type=jnp.float32)
        emb = jnp.maximum(emb + a_s[0:1, :], 0.0)
        emb = emb * a_s[1:2, :] + a_s[2:3, :]

        # classifier: plain Linear.
        w_c, b_c = next(it), next(it)
        logits = jnp.dot(emb, w_c[...], preferred_element_type=jnp.float32) + b_c[...]

        # Lane-dense packed output row: [logits | embedding | zero pad].
        parts = [logits, emb]
        pad_w = out_w - (num_classes + embedding_size)
        if pad_w > 0:
            parts.append(jnp.zeros((1, pad_w), jnp.float32))
        o_ref[...] = jnp.concatenate(parts, axis=1).reshape(1, 1, out_w)

    return kernel


# ----------------------------------------------------------------------------
# Wrapper-side parameter folding (BN -> scale/shift) and flattening.
# ----------------------------------------------------------------------------
def _fold_tdnn(p):
    w, b, g, be, m, v = p
    k, c_in, c_out = w.shape
    scale = g * jax.lax.rsqrt(v + BN_EPS)
    shift = be - m * scale
    return w.reshape(k * c_in, c_out), jnp.concatenate([b, scale, shift], axis=0)


def _fold_linear_bn(p):
    w, b, g, be, m, v = p
    scale = g * jax.lax.rsqrt(v + BN_EPS)
    shift = be - m * scale
    return w, jnp.concatenate([b, scale, shift], axis=0)


def _flatten_params(P, context):
    layer_cfg = [
        ("conv", context[0], 0),   # frame1
        ("block", 3, 1),           # frame2  (TDNNBlock, padding=1 convs)
        ("conv", context[1], 0),   # frame4
        ("block", 3, 1),           # frame5
        ("conv", context[2], 0),   # frame7
        ("block", 3, 1),           # frame8
        ("conv", context[3], 0),   # frame10
        ("block", 3, 1),           # frame11
        ("conv", 1, 0),            # frame13
        ("conv", 1, 0),            # frame14
    ]
    order = ["frame1", "frame2", "frame4", "frame5", "frame7", "frame8",
             "frame10", "frame11", "frame13", "frame14"]
    flat = []
    for name, (kind, _, _) in zip(order, layer_cfg):
        if kind == "conv":
            flat += list(_fold_tdnn(P[name]))
        else:
            flat += list(_fold_tdnn(P[name]["tdnn1"]))
            flat += list(_fold_tdnn(P[name]["tdnn2"]))
    flat += list(_fold_linear_bn(P["segment1"]))
    flat += list(P["classifier"])
    return flat, layer_cfg


# ----------------------------------------------------------------------------
# Full RET_v3 forward: one pallas_call.
# ----------------------------------------------------------------------------
def ret_v3_forward(x, P, context=(5, 3, 3, 5)):
    if x.ndim == 4:
        x = jnp.squeeze(x, axis=1)
    x = x.astype(jnp.float32)
    B, T, c_in = x.shape

    # Final time length after the 4 un-padded context layers; STAP needs >= 2.
    t_final = T - sum(c - 1 for c in context)
    assert t_final >= 2, "sequence too short for unbiased std in STAP"

    flat, layer_cfg = _flatten_params(P, context)
    w_cls = flat[-2]
    embedding_size, num_classes = int(w_cls.shape[0]), int(w_cls.shape[1])
    out_w = _round_up(num_classes + embedding_size, 128)

    kernel = _make_fused_kernel(layer_cfg, num_classes, embedding_size, out_w)

    in_specs = [pl.BlockSpec((1, T, c_in), lambda b: (b, 0, 0))]
    for p in flat:
        # Whole-array blocks with a constant index_map: weights stay resident
        # in VMEM across the batch grid (no per-step re-DMA).
        in_specs.append(pl.BlockSpec(p.shape, lambda b, _n=p.ndim: (0,) * _n))

    out = pl.pallas_call(
        kernel,
        out_shape=jax.ShapeDtypeStruct((B, 1, out_w), jnp.float32),
        grid=(B,),
        in_specs=in_specs,
        out_specs=pl.BlockSpec((1, 1, out_w), lambda b: (b, 0, 0)),
        compiler_params=pltpu.CompilerParams(
            dimension_semantics=("parallel",)),
    )(x, *flat)

    out = out.reshape(B, out_w)
    logits = out[:, :num_classes]
    emb = out[:, num_classes:num_classes + embedding_size]
    return logits, emb


# ----------------------------------------------------------------------------
# Parameter init (deterministic, mirrors shapes declared in __init__).
# ----------------------------------------------------------------------------
def init_tdnn_params(key, c_in, c_out, k):
    kw, kb = jax.random.split(key)
    fan_out = c_out * k                              # kaiming_normal fan_out
    fan_in = c_in * k
    w = jax.random.normal(kw, (k, c_in, c_out), jnp.float32) * math.sqrt(2.0 / fan_out)
    bound = 1.0 / math.sqrt(fan_in)
    b = jax.random.uniform(kb, (1, c_out), jnp.float32, -bound, bound)
    ones = jnp.ones((1, c_out), jnp.float32)
    zeros = jnp.zeros((1, c_out), jnp.float32)
    return (w, b, ones, zeros, zeros, ones)          # w, bias, gamma, beta, mean, var


def init_block_params(key, c):
    k1, k2 = jax.random.split(key)
    return {"tdnn1": init_tdnn_params(k1, c, c, 3),
            "tdnn2": init_tdnn_params(k2, c, c, 3)}


def init_linear_params(key, d_in, d_out, with_bn):
    kw, kb = jax.random.split(key)
    bound = 1.0 / math.sqrt(d_in)
    w = jax.random.uniform(kw, (d_in, d_out), jnp.float32, -bound, bound)
    b = jax.random.uniform(kb, (1, d_out), jnp.float32, -bound, bound)
    if with_bn:
        ones = jnp.ones((1, d_out), jnp.float32)
        zeros = jnp.zeros((1, d_out), jnp.float32)
        return (w, b, ones, zeros, zeros, ones)
    return (w, b)


def init_ret_v3_params(key, input_dim, channels, context, embedding_size, num_classes):
    ks = jax.random.split(key, 12)
    c = channels
    return {
        "frame1": init_tdnn_params(ks[0], input_dim, c[0], context[0]),
        "frame2": init_block_params(ks[1], c[0]),
        "frame4": init_tdnn_params(ks[2], c[0], c[1], context[1]),
        "frame5": init_block_params(ks[3], c[1]),
        "frame7": init_tdnn_params(ks[4], c[1], c[2], context[2]),
        "frame8": init_block_params(ks[5], c[2]),
        "frame10": init_tdnn_params(ks[6], c[2], c[3], context[3]),
        "frame11": init_block_params(ks[7], c[3]),
        "frame13": init_tdnn_params(ks[8], c[3], c[4], 1),
        "frame14": init_tdnn_params(ks[9], c[4], c[5], 1),
        "segment1": init_linear_params(ks[10], 2 * c[5], embedding_size, with_bn=True),
        "classifier": init_linear_params(ks[11], embedding_size, num_classes, with_bn=False),
    }


if __name__ == "__main__":
    key = jax.random.PRNGKey(0)
    B, T, input_dim = 2, 32, 16
    channels = [32, 32, 32, 32, 32, 64]
    context = [5, 3, 3, 5]
    embedding_size, num_classes = 32, 10

    kx, kp = jax.random.split(key)
    x = jax.random.normal(kx, (B, 1, T, input_dim), jnp.float32)
    params = init_ret_v3_params(kp, input_dim, channels, context,
                                embedding_size, num_classes)

    logits, emb = ret_v3_forward(x, params, context=tuple(context))
    jax.block_until_ready((logits, emb))
    assert logits.shape == (B, num_classes)
    assert emb.shape == (B, embedding_size)
    assert bool(jnp.all(jnp.isfinite(logits))) and bool(jnp.all(jnp.isfinite(emb)))
    print("KERNEL_OK")
</pallas_src>

<mosaic_0001>
module attributes {stable_mosaic.version = 11 : i64} {
  func.func @kernel(%arg0: i32, %arg1: memref<1x32x16xf32, #tpu.memory_space<vmem>>, %arg2: memref<80x32xf32, #tpu.memory_space<vmem>>, %arg3: memref<3x32xf32, #tpu.memory_space<vmem>>, %arg4: memref<96x32xf32, #tpu.memory_space<vmem>>, %arg5: memref<3x32xf32, #tpu.memory_space<vmem>>, %arg6: memref<96x32xf32, #tpu.memory_space<vmem>>, %arg7: memref<3x32xf32, #tpu.memory_space<vmem>>, %arg8: memref<96x32xf32, #tpu.memory_space<vmem>>, %arg9: memref<3x32xf32, #tpu.memory_space<vmem>>, %arg10: memref<96x32xf32, #tpu.memory_space<vmem>>, %arg11: memref<3x32xf32, #tpu.memory_space<vmem>>, %arg12: memref<96x32xf32, #tpu.memory_space<vmem>>, %arg13: memref<3x32xf32, #tpu.memory_space<vmem>>, %arg14: memref<96x32xf32, #tpu.memory_space<vmem>>, %arg15: memref<3x32xf32, #tpu.memory_space<vmem>>, %arg16: memref<96x32xf32, #tpu.memory_space<vmem>>, %arg17: memref<3x32xf32, #tpu.memory_space<vmem>>, %arg18: memref<96x32xf32, #tpu.memory_space<vmem>>, %arg19: memref<3x32xf32, #tpu.memory_space<vmem>>, %arg20: memref<160x32xf32, #tpu.memory_space<vmem>>, %arg21: memref<3x32xf32, #tpu.memory_space<vmem>>, %arg22: memref<96x32xf32, #tpu.memory_space<vmem>>, %arg23: memref<3x32xf32, #tpu.memory_space<vmem>>, %arg24: memref<96x32xf32, #tpu.memory_space<vmem>>, %arg25: memref<3x32xf32, #tpu.memory_space<vmem>>, %arg26: memref<32x32xf32, #tpu.memory_space<vmem>>, %arg27: memref<3x32xf32, #tpu.memory_space<vmem>>, %arg28: memref<32x64xf32, #tpu.memory_space<vmem>>, %arg29: memref<3x64xf32, #tpu.memory_space<vmem>>, %arg30: memref<128x32xf32, #tpu.memory_space<vmem>>, %arg31: memref<3x32xf32, #tpu.memory_space<vmem>>, %arg32: memref<32x10xf32, #tpu.memory_space<vmem>>, %arg33: memref<1x10xf32, #tpu.memory_space<vmem>>, %arg34: memref<1x1x128xf32, #tpu.memory_space<vmem>>) attributes {dimension_semantics = [#tpu.dimension_semantics<parallel>], iteration_bounds = array<i64: 2>, scalar_prefetch = 0 : i64, scratch_operands = 0 : i64, tpu.core_type = #tpu.core_type<tc>, window_params = [{transform_indices = @transform_0, window_bounds = array<i64: 1, 32, 16>}, {pipeline_mode = #tpu.pipeline_mode<synchronous>, transform_indices = @transform_1, window_bounds = array<i64: 80, 32>}, {pipeline_mode = #tpu.pipeline_mode<synchronous>, transform_indices = @transform_2, window_bounds = array<i64: 3, 32>}, {pipeline_mode = #tpu.pipeline_mode<synchronous>, transform_indices = @transform_3, window_bounds = array<i64: 96, 32>}, {pipeline_mode = #tpu.pipeline_mode<synchronous>, transform_indices = @transform_4, window_bounds = array<i64: 3, 32>}, {pipeline_mode = #tpu.pipeline_mode<synchronous>, transform_indices = @transform_5, window_bounds = array<i64: 96, 32>}, {pipeline_mode = #tpu.pipeline_mode<synchronous>, transform_indices = @transform_6, window_bounds = array<i64: 3, 32>}, {pipeline_mode = #tpu.pipeline_mode<synchronous>, transform_indices = @transform_7, window_bounds = array<i64: 96, 32>}, {pipeline_mode = #tpu.pipeline_mode<synchronous>, transform_indices = @transform_8, window_bounds = array<i64: 3, 32>}, {pipeline_mode = #tpu.pipeline_mode<synchronous>, transform_indices = @transform_9, window_bounds = array<i64: 96, 32>}, {pipeline_mode = #tpu.pipeline_mode<synchronous>, transform_indices = @transform_10, window_bounds = array<i64: 3, 32>}, {pipeline_mode = #tpu.pipeline_mode<synchronous>, transform_indices = @transform_11, window_bounds = array<i64: 96, 32>}, {pipeline_mode = #tpu.pipeline_mode<synchronous>, transform_indices = @transform_12, window_bounds = array<i64: 3, 32>}, {pipeline_mode = #tpu.pipeline_mode<synchronous>, transform_indices = @transform_13, window_bounds = array<i64: 96, 32>}, {pipeline_mode = #tpu.pipeline_mode<synchronous>, transform_indices = @transform_14, window_bounds = array<i64: 3, 32>}, {pipeline_mode = #tpu.pipeline_mode<synchronous>, transform_indices = @transform_15, window_bounds = array<i64: 96, 32>}, {pipeline_mode = #tpu.pipeline_mode<synchronous>, transform_indices = @transform_16, window_bounds = array<i64: 3, 32>}, {pipeline_mode = #tpu.pipeline_mode<synchronous>, transform_indices = @transform_17, window_bounds = array<i64: 96, 32>}, {pipeline_mode = #tpu.pipeline_mode<synchronous>, transform_indices = @transform_18, window_bounds = array<i64: 3, 32>}, {pipeline_mode = #tpu.pipeline_mode<synchronous>, transform_indices = @transform_19, window_bounds = array<i64: 160, 32>}, {pipeline_mode = #tpu.pipeline_mode<synchronous>, transform_indices = @transform_20, window_bounds = array<i64: 3, 32>}, {pipeline_mode = #tpu.pipeline_mode<synchronous>, transform_indices = @transform_21, window_bounds = array<i64: 96, 32>}, {pipeline_mode = #tpu.pipeline_mode<synchronous>, transform_indices = @transform_22, window_bounds = array<i64: 3, 32>}, {pipeline_mode = #tpu.pipeline_mode<synchronous>, transform_indices = @transform_23, window_bounds = array<i64: 96, 32>}, {pipeline_mode = #tpu.pipeline_mode<synchronous>, transform_indices = @transform_24, window_bounds = array<i64: 3, 32>}, {pipeline_mode = #tpu.pipeline_mode<synchronous>, transform_indices = @transform_25, window_bounds = array<i64: 32, 32>}, {pipeline_mode = #tpu.pipeline_mode<synchronous>, transform_indices = @transform_26, window_bounds = array<i64: 3, 32>}, {pipeline_mode = #tpu.pipeline_mode<synchronous>, transform_indices = @transform_27, window_bounds = array<i64: 32, 64>}, {pipeline_mode = #tpu.pipeline_mode<synchronous>, transform_indices = @transform_28, window_bounds = array<i64: 3, 64>}, {pipeline_mode = #tpu.pipeline_mode<synchronous>, transform_indices = @transform_29, window_bounds = array<i64: 128, 32>}, {pipeline_mode = #tpu.pipeline_mode<synchronous>, transform_indices = @transform_30, window_bounds = array<i64: 3, 32>}, {pipeline_mode = #tpu.pipeline_mode<synchronous>, transform_indices = @transform_31, window_bounds = array<i64: 32, 10>}, {pipeline_mode = #tpu.pipeline_mode<synchronous>, transform_indices = @transform_32, window_bounds = array<i64: 1, 10>}, {transform_indices = @transform_33, window_bounds = array<i64: 1, 1, 128>}]} {
    %c0 = arith.constant 0 : index
    %c0_0 = arith.constant 0 : index
    %c0_1 = arith.constant 0 : index
    %0 = vector.load %arg1[%c0, %c0_0, %c0_1] : memref<1x32x16xf32, #tpu.memory_space<vmem>>, vector<1x32x16xf32>
    %1 = vector.shape_cast %0 : vector<1x32x16xf32> to vector<32x16xf32>
    %2 = vector.extract_strided_slice %1 {offsets = [0, 0], sizes = [28, 16], strides = [1, 1]} : vector<32x16xf32> to vector<28x16xf32>
    %3 = vector.extract_strided_slice %1 {offsets = [1, 0], sizes = [28, 16], strides = [1, 1]} : vector<32x16xf32> to vector<28x16xf32>
    %4 = vector.extract_strided_slice %1 {offsets = [2, 0], sizes = [28, 16], strides = [1, 1]} : vector<32x16xf32> to vector<28x16xf32>
    %5 = vector.extract_strided_slice %1 {offsets = [3, 0], sizes = [28, 16], strides = [1, 1]} : vector<32x16xf32> to vector<28x16xf32>
    %6 = vector.extract_strided_slice %1 {offsets = [4, 0], sizes = [28, 16], strides = [1, 1]} : vector<32x16xf32> to vector<28x16xf32>
    %7 = tpu.concatenate %2, %3, %4, %5, %6 in 1 : vector<28x16xf32>, vector<28x16xf32>, vector<28x16xf32>, vector<28x16xf32>, vector<28x16xf32> -> vector<28x80xf32>
    %c0_2 = arith.constant 0 : index
    %c0_3 = arith.constant 0 : index
    %8 = vector.load %arg2[%c0_2, %c0_3] : memref<80x32xf32, #tpu.memory_space<vmem>>, vector<80x32xf32>
    %cst = arith.constant dense<0.000000e+00> : vector<28x32xf32>
    %9 = tpu.matmul %7, %8, %cst {dimension_numbers = #tpu.dot_dimension_numbers<[1], [0], [0], [1], [0, 0, 1, 1], [], []>} : vector<28x80xf32>, vector<80x32xf32>, vector<28x32xf32> -> vector<28x32xf32>
    %c0_4 = arith.constant 0 : index
    %c0_5 = arith.constant 0 : index
    %10 = vector.load %arg3[%c0_4, %c0_5] : memref<3x32xf32, #tpu.memory_space<vmem>>, vector<1x32xf32>
    %11 = vector.broadcast %10 : vector<1x32xf32> to vector<28x32xf32>
    %12 = arith.addf %9, %11 : vector<28x32xf32>
    %cst_6 = arith.constant 0.000000e+00 : f32
    %13 = vector.broadcast %cst_6 : f32 to vector<28x32xf32>
    %14 = arith.maximumf %12, %13 : vector<28x32xf32>
    %c1 = arith.constant 1 : index
    %c0_7 = arith.constant 0 : index
    %15 = vector.load %arg3[%c1, %c0_7] : memref<3x32xf32, #tpu.memory_space<vmem>>, vector<1x32xf32>
    %16 = vector.broadcast %15 : vector<1x32xf32> to vector<28x32xf32>
    %17 = arith.mulf %14, %16 : vector<28x32xf32>
    %c2 = arith.constant 2 : index
    %c0_8 = arith.constant 0 : index
    %18 = vector.load %arg3[%c2, %c0_8] : memref<3x32xf32, #tpu.memory_space<vmem>>, vector<1x32xf32>
    %19 = vector.broadcast %18 : vector<1x32xf32> to vector<28x32xf32>
    %20 = arith.addf %17, %19 : vector<28x32xf32>
    %cst_9 = arith.constant 0.000000e+00 : f32
    %21 = vector.broadcast %cst_9 : f32 to vector<1x32xf32>
    %22 = tpu.concatenate %21, %20, %21 in 0 : vector<1x32xf32>, vector<28x32xf32>, vector<1x32xf32> -> vector<30x32xf32>
    %23 = vector.extract_strided_slice %22 {offsets = [0, 0], sizes = [28, 32], strides = [1, 1]} : vector<30x32xf32> to vector<28x32xf32>
    %24 = vector.extract_strided_slice %22 {offsets = [1, 0], sizes = [28, 32], strides = [1, 1]} : vector<30x32xf32> to vector<28x32xf32>
    %25 = vector.extract_strided_slice %22 {offsets = [2, 0], sizes = [28, 32], strides = [1, 1]} : vector<30x32xf32> to vector<28x32xf32>
    %26 = tpu.concatenate %23, %24, %25 in 1 : vector<28x32xf32>, vector<28x32xf32>, vector<28x32xf32> -> vector<28x96xf32>
    %c0_10 = arith.constant 0 : index
    %c0_11 = arith.constant 0 : index
    %27 = vector.load %arg4[%c0_10, %c0_11] : memref<96x32xf32, #tpu.memory_space<vmem>>, vector<96x32xf32>
    %cst_12 = arith.constant dense<0.000000e+00> : vector<28x32xf32>
    %28 = tpu.matmul %26, %27, %cst_12 {dimension_numbers = #tpu.dot_dimension_numbers<[1], [0], [0], [1], [0, 0, 1, 1], [], []>} : vector<28x96xf32>, vector<96x32xf32>, vector<28x32xf32> -> vector<28x32xf32>
    %c0_13 = arith.constant 0 : index
    %c0_14 = arith.constant 0 : index
    %29 = vector.load %arg5[%c0_13, %c0_14] : memref<3x32xf32, #tpu.memory_space<vmem>>, vector<1x32xf32>
    %30 = vector.broadcast %29 : vector<1x32xf32> to vector<28x32xf32>
    %31 = arith.addf %28, %30 : vector<28x32xf32>
    %cst_15 = arith.constant 0.000000e+00 : f32
    %32 = vector.broadcast %cst_15 : f32 to vector<28x32xf32>
    %33 = arith.maximumf %31, %32 : vector<28x32xf32>
    %c1_16 = arith.constant 1 : index
    %c0_17 = arith.constant 0 : index
    %34 = vector.load %arg5[%c1_16, %c0_17] : memref<3x32xf32, #tpu.memory_space<vmem>>, vector<1x32xf32>
    %35 = vector.broadcast %34 : vector<1x32xf32> to vector<28x32xf32>
    %36 = arith.mulf %33, %35 : vector<28x32xf32>
    %c2_18 = arith.constant 2 : index
    %c0_19 = arith.constant 0 : index
    %37 = vector.load %arg5[%c2_18, %c0_19] : memref<3x32xf32, #tpu.memory_space<vmem>>, vector<1x32xf32>
    %38 = vector.broadcast %37 : vector<1x32xf32> to vector<28x32xf32>
    %39 = arith.addf %36, %38 : vector<28x32xf32>
    %cst_20 = arith.constant 0.000000e+00 : f32
    %40 = vector.broadcast %cst_20 : f32 to vector<1x32xf32>
    %41 = tpu.concatenate %40, %39, %40 in 0 : vector<1x32xf32>, vector<28x32xf32>, vector<1x32xf32> -> vector<30x32xf32>
    %42 = vector.extract_strided_slice %41 {offsets = [0, 0], sizes = [28, 32], strides = [1, 1]} : vector<30x32xf32> to vector<28x32xf32>
    %43 = vector.extract_strided_slice %41 {offsets = [1, 0], sizes = [28, 32], strides = [1, 1]} : vector<30x32xf32> to vector<28x32xf32>
    %44 = vector.extract_strided_slice %41 {offsets = [2, 0], sizes = [28, 32], strides = [1, 1]} : vector<30x32xf32> to vector<28x32xf32>
    %45 = tpu.concatenate %42, %43, %44 in 1 : vector<28x32xf32>, vector<28x32xf32>, vector<28x32xf32> -> vector<28x96xf32>
    %c0_21 = arith.constant 0 : index
    %c0_22 = arith.constant 0 : index
    %46 = vector.load %arg6[%c0_21, %c0_22] : memref<96x32xf32, #tpu.memory_space<vmem>>, vector<96x32xf32>
    %cst_23 = arith.constant dense<0.000000e+00> : vector<28x32xf32>
    %47 = tpu.matmul %45, %46, %cst_23 {dimension_numbers = #tpu.dot_dimension_numbers<[1], [0], [0], [1], [0, 0, 1, 1], [], []>} : vector<28x96xf32>, vector<96x32xf32>, vector<28x32xf32> -> vector<28x32xf32>
    %c0_24 = arith.constant 0 : index
    %c0_25 = arith.constant 0 : index
    %48 = vector.load %arg7[%c0_24, %c0_25] : memref<3x32xf32, #tpu.memory_space<vmem>>, vector<1x32xf32>
    %49 = vector.broadcast %48 : vector<1x32xf32> to vector<28x32xf32>
    %50 = arith.addf %47, %49 : vector<28x32xf32>
    %cst_26 = arith.constant 0.000000e+00 : f32
    %51 = vector.broadcast %cst_26 : f32 to vector<28x32xf32>
    %52 = arith.maximumf %50, %51 : vector<28x32xf32>
    %c1_27 = arith.constant 1 : index
    %c0_28 = arith.constant 0 : index
    %53 = vector.load %arg7[%c1_27, %c0_28] : memref<3x32xf32, #tpu.memory_space<vmem>>, vector<1x32xf32>
    %54 = vector.broadcast %53 : vector<1x32xf32> to vector<28x32xf32>
    %55 = arith.mulf %52, %54 : vector<28x32xf32>
    %c2_29 = arith.constant 2 : index
    %c0_30 = arith.constant 0 : index
    %56 = vector.load %arg7[%c2_29, %c0_30] : memref<3x32xf32, #tpu.memory_space<vmem>>, vector<1x32xf32>
    %57 = vector.broadcast %56 : vector<1x32xf32> to vector<28x32xf32>
    %58 = arith.addf %55, %57 : vector<28x32xf32>
    %59 = arith.addf %20, %58 : vector<28x32xf32>
    %60 = vector.extract_strided_slice %59 {offsets = [0, 0], sizes = [26, 32], strides = [1, 1]} : vector<28x32xf32> to vector<26x32xf32>
    %61 = vector.extract_strided_slice %59 {offsets = [1, 0], sizes = [26, 32], strides = [1, 1]} : vector<28x32xf32> to vector<26x32xf32>
    %62 = vector.extract_strided_slice %59 {offsets = [2, 0], sizes = [26, 32], strides = [1, 1]} : vector<28x32xf32> to vector<26x32xf32>
    %63 = tpu.concatenate %60, %61, %62 in 1 : vector<26x32xf32>, vector<26x32xf32>, vector<26x32xf32> -> vector<26x96xf32>
    %c0_31 = arith.constant 0 : index
    %c0_32 = arith.constant 0 : index
    %64 = vector.load %arg8[%c0_31, %c0_32] : memref<96x32xf32, #tpu.memory_space<vmem>>, vector<96x32xf32>
    %cst_33 = arith.constant dense<0.000000e+00> : vector<26x32xf32>
    %65 = tpu.matmul %63, %64, %cst_33 {dimension_numbers = #tpu.dot_dimension_numbers<[1], [0], [0], [1], [0, 0, 1, 1], [], []>} : vector<26x96xf32>, vector<96x32xf32>, vector<26x32xf32> -> vector<26x32xf32>
    %c0_34 = arith.constant 0 : index
    %c0_35 = arith.constant 0 : index
    %66 = vector.load %arg9[%c0_34, %c0_35] : memref<3x32xf32, #tpu.memory_space<vmem>>, vector<1x32xf32>
    %67 = vector.broadcast %66 : vector<1x32xf32> to vector<26x32xf32>
    %68 = arith.addf %65, %67 : vector<26x32xf32>
    %cst_36 = arith.constant 0.000000e+00 : f32
    %69 = vector.broadcast %cst_36 : f32 to vector<26x32xf32>
    %70 = arith.maximumf %68, %69 : vector<26x32xf32>
    %c1_37 = arith.constant 1 : index
    %c0_38 = arith.constant 0 : index
    %71 = vector.load %arg9[%c1_37, %c0_38] : memref<3x32xf32, #tpu.memory_space<vmem>>, vector<1x32xf32>
    %72 = vector.broadcast %71 : vector<1x32xf32> to vector<26x32xf32>
    %73 = arith.mulf %70, %72 : vector<26x32xf32>
    %c2_39 = arith.constant 2 : index
    %c0_40 = arith.constant 0 : index
    %74 = vector.load %arg9[%c2_39, %c0_40] : memref<3x32xf32, #tpu.memory_space<vmem>>, vector<1x32xf32>
    %75 = vector.broadcast %74 : vector<1x32xf32> to vector<26x32xf32>
    %76 = arith.addf %73, %75 : vector<26x32xf32>
    %cst_41 = arith.constant 0.000000e+00 : f32
    %77 = vector.broadcast %cst_41 : f32 to vector<1x32xf32>
    %78 = tpu.concatenate %77, %76, %77 in 0 : vector<1x32xf32>, vector<26x32xf32>, vector<1x32xf32> -> vector<28x32xf32>
    %79 = vector.extract_strided_slice %78 {offsets = [0, 0], sizes = [26, 32], strides = [1, 1]} : vector<28x32xf32> to vector<26x32xf32>
    %80 = vector.extract_strided_slice %78 {offsets = [1, 0], sizes = [26, 32], strides = [1, 1]} : vector<28x32xf32> to vector<26x32xf32>
    %81 = vector.extract_strided_slice %78 {offsets = [2, 0], sizes = [26, 32], strides = [1, 1]} : vector<28x32xf32> to vector<26x32xf32>
    %82 = tpu.concatenate %79, %80, %81 in 1 : vector<26x32xf32>, vector<26x32xf32>, vector<26x32xf32> -> vector<26x96xf32>
    %c0_42 = arith.constant 0 : index
    %c0_43 = arith.constant 0 : index
    %83 = vector.load %arg10[%c0_42, %c0_43] : memref<96x32xf32, #tpu.memory_space<vmem>>, vector<96x32xf32>
    %cst_44 = arith.constant dense<0.000000e+00> : vector<26x32xf32>
    %84 = tpu.matmul %82, %83, %cst_44 {dimension_numbers = #tpu.dot_dimension_numbers<[1], [0], [0], [1], [0, 0, 1, 1], [], []>} : vector<26x96xf32>, vector<96x32xf32>, vector<26x32xf32> -> vector<26x32xf32>
    %c0_45 = arith.constant 0 : index
    %c0_46 = arith.constant 0 : index
    %85 = vector.load %arg11[%c0_45, %c0_46] : memref<3x32xf32, #tpu.memory_space<vmem>>, vector<1x32xf32>
    %86 = vector.broadcast %85 : vector<1x32xf32> to vector<26x32xf32>
    %87 = arith.addf %84, %86 : vector<26x32xf32>
    %cst_47 = arith.constant 0.000000e+00 : f32
    %88 = vector.broadcast %cst_47 : f32 to vector<26x32xf32>
    %89 = arith.maximumf %87, %88 : vector<26x32xf32>
    %c1_48 = arith.constant 1 : index
    %c0_49 = arith.constant 0 : index
    %90 = vector.load %arg11[%c1_48, %c0_49] : memref<3x32xf32, #tpu.memory_space<vmem>>, vector<1x32xf32>
    %91 = vector.broadcast %90 : vector<1x32xf32> to vector<26x32xf32>
    %92 = arith.mulf %89, %91 : vector<26x32xf32>
    %c2_50 = arith.constant 2 : index
    %c0_51 = arith.constant 0 : index
    %93 = vector.load %arg11[%c2_50, %c0_51] : memref<3x32xf32, #tpu.memory_space<vmem>>, vector<1x32xf32>
    %94 = vector.broadcast %93 : vector<1x32xf32> to vector<26x32xf32>
    %95 = arith.addf %92, %94 : vector<26x32xf32>
    %cst_52 = arith.constant 0.000000e+00 : f32
    %96 = vector.broadcast %cst_52 : f32 to vector<1x32xf32>
    %97 = tpu.concatenate %96, %95, %96 in 0 : vector<1x32xf32>, vector<26x32xf32>, vector<1x32xf32> -> vector<28x32xf32>
    %98 = vector.extract_strided_slice %97 {offsets = [0, 0], sizes = [26, 32], strides = [1, 1]} : vector<28x32xf32> to vector<26x32xf32>
    %99 = vector.extract_strided_slice %97 {offsets = [1, 0], sizes = [26, 32], strides = [1, 1]} : vector<28x32xf32> to vector<26x32xf32>
    %100 = vector.extract_strided_slice %97 {offsets = [2, 0], sizes = [26, 32], strides = [1, 1]} : vector<28x32xf32> to vector<26x32xf32>
    %101 = tpu.concatenate %98, %99, %100 in 1 : vector<26x32xf32>, vector<26x32xf32>, vector<26x32xf32> -> vector<26x96xf32>
    %c0_53 = arith.constant 0 : index
    %c0_54 = arith.constant 0 : index
    %102 = vector.load %arg12[%c0_53, %c0_54] : memref<96x32xf32, #tpu.memory_space<vmem>>, vector<96x32xf32>
    %cst_55 = arith.constant dense<0.000000e+00> : vector<26x32xf32>
    %103 = tpu.matmul %101, %102, %cst_55 {dimension_numbers = #tpu.dot_dimension_numbers<[1], [0], [0], [1], [0, 0, 1, 1], [], []>} : vector<26x96xf32>, vector<96x32xf32>, vector<26x32xf32> -> vector<26x32xf32>
    %c0_56 = arith.constant 0 : index
    %c0_57 = arith.constant 0 : index
    %104 = vector.load %arg13[%c0_56, %c0_57] : memref<3x32xf32, #tpu.memory_space<vmem>>, vector<1x32xf32>
    %105 = vector.broadcast %104 : vector<1x32xf32> to vector<26x32xf32>
    %106 = arith.addf %103, %105 : vector<26x32xf32>
    %cst_58 = arith.constant 0.000000e+00 : f32
    %107 = vector.broadcast %cst_58 : f32 to vector<26x32xf32>
    %108 = arith.maximumf %106, %107 : vector<26x32xf32>
    %c1_59 = arith.constant 1 : index
    %c0_60 = arith.constant 0 : index
    %109 = vector.load %arg13[%c1_59, %c0_60] : memref<3x32xf32, #tpu.memory_space<vmem>>, vector<1x32xf32>
    %110 = vector.broadcast %109 : vector<1x32xf32> to vector<26x32xf32>
    %111 = arith.mulf %108, %110 : vector<26x32xf32>
    %c2_61 = arith.constant 2 : index
    %c0_62 = arith.constant 0 : index
    %112 = vector.load %arg13[%c2_61, %c0_62] : memref<3x32xf32, #tpu.memory_space<vmem>>, vector<1x32xf32>
    %113 = vector.broadcast %112 : vector<1x32xf32> to vector<26x32xf32>
    %114 = arith.addf %111, %113 : vector<26x32xf32>
    %115 = arith.addf %76, %114 : vector<26x32xf32>
    %116 = vector.extract_strided_slice %115 {offsets = [0, 0], sizes = [24, 32], strides = [1, 1]} : vector<26x32xf32> to vector<24x32xf32>
    %117 = vector.extract_strided_slice %115 {offsets = [1, 0], sizes = [24, 32], strides = [1, 1]} : vector<26x32xf32> to vector<24x32xf32>
    %118 = vector.extract_strided_slice %115 {offsets = [2, 0], sizes = [24, 32], strides = [1, 1]} : vector<26x32xf32> to vector<24x32xf32>
    %119 = tpu.concatenate %116, %117, %118 in 1 : vector<24x32xf32>, vector<24x32xf32>, vector<24x32xf32> -> vector<24x96xf32>
    %c0_63 = arith.constant 0 : index
    %c0_64 = arith.constant 0 : index
    %120 = vector.load %arg14[%c0_63, %c0_64] : memref<96x32xf32, #tpu.memory_space<vmem>>, vector<96x32xf32>
    %cst_65 = arith.constant dense<0.000000e+00> : vector<24x32xf32>
    %121 = tpu.matmul %119, %120, %cst_65 {dimension_numbers = #tpu.dot_dimension_numbers<[1], [0], [0], [1], [0, 0, 1, 1], [], []>} : vector<24x96xf32>, vector<96x32xf32>, vector<24x32xf32> -> vector<24x32xf32>
    %c0_66 = arith.constant 0 : index
    %c0_67 = arith.constant 0 : index
    %122 = vector.load %arg15[%c0_66, %c0_67] : memref<3x32xf32, #tpu.memory_space<vmem>>, vector<1x32xf32>
    %123 = vector.broadcast %122 : vector<1x32xf32> to vector<24x32xf32>
    %124 = arith.addf %121, %123 : vector<24x32xf32>
    %cst_68 = arith.constant 0.000000e+00 : f32
    %125 = vector.broadcast %cst_68 : f32 to vector<24x32xf32>
    %126 = arith.maximumf %124, %125 : vector<24x32xf32>
    %c1_69 = arith.constant 1 : index
    %c0_70 = arith.constant 0 : index
    %127 = vector.load %arg15[%c1_69, %c0_70] : memref<3x32xf32, #tpu.memory_space<vmem>>, vector<1x32xf32>
    %128 = vector.broadcast %127 : vector<1x32xf32> to vector<24x32xf32>
    %129 = arith.mulf %126, %128 : vector<24x32xf32>
    %c2_71 = arith.constant 2 : index
    %c0_72 = arith.constant 0 : index
    %130 = vector.load %arg15[%c2_71, %c0_72] : memref<3x32xf32, #tpu.memory_space<vmem>>, vector<1x32xf32>
    %131 = vector.broadcast %130 : vector<1x32xf32> to vector<24x32xf32>
    %132 = arith.addf %129, %131 : vector<24x32xf32>
    %cst_73 = arith.constant 0.000000e+00 : f32
    %133 = vector.broadcast %cst_73 : f32 to vector<1x32xf32>
    %134 = tpu.concatenate %133, %132, %133 in 0 : vector<1x32xf32>, vector<24x32xf32>, vector<1x32xf32> -> vector<26x32xf32>
    %135 = vector.extract_strided_slice %134 {offsets = [0, 0], sizes = [24, 32], strides = [1, 1]} : vector<26x32xf32> to vector<24x32xf32>
    %136 = vector.extract_strided_slice %134 {offsets = [1, 0], sizes = [24, 32], strides = [1, 1]} : vector<26x32xf32> to vector<24x32xf32>
    %137 = vector.extract_strided_slice %134 {offsets = [2, 0], sizes = [24, 32], strides = [1, 1]} : vector<26x32xf32> to vector<24x32xf32>
    %138 = tpu.concatenate %135, %136, %137 in 1 : vector<24x32xf32>, vector<24x32xf32>, vector<24x32xf32> -> vector<24x96xf32>
    %c0_74 = arith.constant 0 : index
    %c0_75 = arith.constant 0 : index
    %139 = vector.load %arg16[%c0_74, %c0_75] : memref<96x32xf32, #tpu.memory_space<vmem>>, vector<96x32xf32>
    %cst_76 = arith.constant dense<0.000000e+00> : vector<24x32xf32>
    %140 = tpu.matmul %138, %139, %cst_76 {dimension_numbers = #tpu.dot_dimension_numbers<[1], [0], [0], [1], [0, 0, 1, 1], [], []>} : vector<24x96xf32>, vector<96x32xf32>, vector<24x32xf32> -> vector<24x32xf32>
    %c0_77 = arith.constant 0 : index
    %c0_78 = arith.constant 0 : index
    %141 = vector.load %arg17[%c0_77, %c0_78] : memref<3x32xf32, #tpu.memory_space<vmem>>, vector<1x32xf32>
    %142 = vector.broadcast %141 : vector<1x32xf32> to vector<24x32xf32>
    %143 = arith.addf %140, %142 : vector<24x32xf32>
    %cst_79 = arith.constant 0.000000e+00 : f32
    %144 = vector.broadcast %cst_79 : f32 to vector<24x32xf32>
    %145 = arith.maximumf %143, %144 : vector<24x32xf32>
    %c1_80 = arith.constant 1 : index
    %c0_81 = arith.constant 0 : index
    %146 = vector.load %arg17[%c1_80, %c0_81] : memref<3x32xf32, #tpu.memory_space<vmem>>, vector<1x32xf32>
    %147 = vector.broadcast %146 : vector<1x32xf32> to vector<24x32xf32>
    %148 = arith.mulf %145, %147 : vector<24x32xf32>
    %c2_82 = arith.constant 2 : index
    %c0_83 = arith.constant 0 : index
    %149 = vector.load %arg17[%c2_82, %c0_83] : memref<3x32xf32, #tpu.memory_space<vmem>>, vector<1x32xf32>
    %150 = vector.broadcast %149 : vector<1x32xf32> to vector<24x32xf32>
    %151 = arith.addf %148, %150 : vector<24x32xf32>
    %cst_84 = arith.constant 0.000000e+00 : f32
    %152 = vector.broadcast %cst_84 : f32 to vector<1x32xf32>
    %153 = tpu.concatenate %152, %151, %152 in 0 : vector<1x32xf32>, vector<24x32xf32>, vector<1x32xf32> -> vector<26x32xf32>
    %154 = vector.extract_strided_slice %153 {offsets = [0, 0], sizes = [24, 32], strides = [1, 1]} : vector<26x32xf32> to vector<24x32xf32>
    %155 = vector.extract_strided_slice %153 {offsets = [1, 0], sizes = [24, 32], strides = [1, 1]} : vector<26x32xf32> to vector<24x32xf32>
    %156 = vector.extract_strided_slice %153 {offsets = [2, 0], sizes = [24, 32], strides = [1, 1]} : vector<26x32xf32> to vector<24x32xf32>
    %157 = tpu.concatenate %154, %155, %156 in 1 : vector<24x32xf32>, vector<24x32xf32>, vector<24x32xf32> -> vector<24x96xf32>
    %c0_85 = arith.constant 0 : index
    %c0_86 = arith.constant 0 : index
    %158 = vector.load %arg18[%c0_85, %c0_86] : memref<96x32xf32, #tpu.memory_space<vmem>>, vector<96x32xf32>
    %cst_87 = arith.constant dense<0.000000e+00> : vector<24x32xf32>
    %159 = tpu.matmul %157, %158, %cst_87 {dimension_numbers = #tpu.dot_dimension_numbers<[1], [0], [0], [1], [0, 0, 1, 1], [], []>} : vector<24x96xf32>, vector<96x32xf32>, vector<24x32xf32> -> vector<24x32xf32>
    %c0_88 = arith.constant 0 : index
    %c0_89 = arith.constant 0 : index
    %160 = vector.load %arg19[%c0_88, %c0_89] : memref<3x32xf32, #tpu.memory_space<vmem>>, vector<1x32xf32>
    %161 = vector.broadcast %160 : vector<1x32xf32> to vector<24x32xf32>
    %162 = arith.addf %159, %161 : vector<24x32xf32>
    %cst_90 = arith.constant 0.000000e+00 : f32
    %163 = vector.broadcast %cst_90 : f32 to vector<24x32xf32>
    %164 = arith.maximumf %162, %163 : vector<24x32xf32>
    %c1_91 = arith.constant 1 : index
    %c0_92 = arith.constant 0 : index
    %165 = vector.load %arg19[%c1_91, %c0_92] : memref<3x32xf32, #tpu.memory_space<vmem>>, vector<1x32xf32>
    %166 = vector.broadcast %165 : vector<1x32xf32> to vector<24x32xf32>
    %167 = arith.mulf %164, %166 : vector<24x32xf32>
    %c2_93 = arith.constant 2 : index
    %c0_94 = arith.constant 0 : index
    %168 = vector.load %arg19[%c2_93, %c0_94] : memref<3x32xf32, #tpu.memory_space<vmem>>, vector<1x32xf32>
    %169 = vector.broadcast %168 : vector<1x32xf32> to vector<24x32xf32>
    %170 = arith.addf %167, %169 : vector<24x32xf32>
    %171 = arith.addf %132, %170 : vector<24x32xf32>
    %172 = vector.extract_strided_slice %171 {offsets = [0, 0], sizes = [20, 32], strides = [1, 1]} : vector<24x32xf32> to vector<20x32xf32>
    %173 = vector.extract_strided_slice %171 {offsets = [1, 0], sizes = [20, 32], strides = [1, 1]} : vector<24x32xf32> to vector<20x32xf32>
    %174 = vector.extract_strided_slice %171 {offsets = [2, 0], sizes = [20, 32], strides = [1, 1]} : vector<24x32xf32> to vector<20x32xf32>
    %175 = vector.extract_strided_slice %171 {offsets = [3, 0], sizes = [20, 32], strides = [1, 1]} : vector<24x32xf32> to vector<20x32xf32>
    %176 = vector.extract_strided_slice %171 {offsets = [4, 0], sizes = [20, 32], strides = [1, 1]} : vector<24x32xf32> to vector<20x32xf32>
    %177 = tpu.concatenate %172, %173, %174, %175, %176 in 1 : vector<20x32xf32>, vector<20x32xf32>, vector<20x32xf32>, vector<20x32xf32>, vector<20x32xf32> -> vector<20x160xf32>
    %c0_95 = arith.constant 0 : index
    %c0_96 = arith.constant 0 : index
    %178 = vector.load %arg20[%c0_95, %c0_96] : memref<160x32xf32, #tpu.memory_space<vmem>>, vector<160x32xf32>
    %cst_97 = arith.constant dense<0.000000e+00> : vector<20x32xf32>
    %179 = tpu.matmul %177, %178, %cst_97 {dimension_numbers = #tpu.dot_dimension_numbers<[1], [0], [0], [1], [0, 0, 1, 1], [], []>} : vector<20x160xf32>, vector<160x32xf32>, vector<20x32xf32> -> vector<20x32xf32>
    %c0_98 = arith.constant 0 : index
    %c0_99 = arith.constant 0 : index
    %180 = vector.load %arg21[%c0_98, %c0_99] : memref<3x32xf32, #tpu.memory_space<vmem>>, vector<1x32xf32>
    %181 = vector.broadcast %180 : vector<1x32xf32> to vector<20x32xf32>
    %182 = arith.addf %179, %181 : vector<20x32xf32>
    %cst_100 = arith.constant 0.000000e+00 : f32
    %183 = vector.broadcast %cst_100 : f32 to vector<20x32xf32>
    %184 = arith.maximumf %182, %183 : vector<20x32xf32>
    %c1_101 = arith.constant 1 : index
    %c0_102 = arith.constant 0 : index
    %185 = vector.load %arg21[%c1_101, %c0_102] : memref<3x32xf32, #tpu.memory_space<vmem>>, vector<1x32xf32>
    %186 = vector.broadcast %185 : vector<1x32xf32> to vector<20x32xf32>
    %187 = arith.mulf %184, %186 : vector<20x32xf32>
    %c2_103 = arith.constant 2 : index
    %c0_104 = arith.constant 0 : index
    %188 = vector.load %arg21[%c2_103, %c0_104] : memref<3x32xf32, #tpu.memory_space<vmem>>, vector<1x32xf32>
    %189 = vector.broadcast %188 : vector<1x32xf32> to vector<20x32xf32>
    %190 = arith.addf %187, %189 : vector<20x32xf32>
    %cst_105 = arith.constant 0.000000e+00 : f32
    %191 = vector.broadcast %cst_105 : f32 to vector<1x32xf32>
    %192 = tpu.concatenate %191, %190, %191 in 0 : vector<1x32xf32>, vector<20x32xf32>, vector<1x32xf32> -> vector<22x32xf32>
    %193 = vector.extract_strided_slice %192 {offsets = [0, 0], sizes = [20, 32], strides = [1, 1]} : vector<22x32xf32> to vector<20x32xf32>
    %194 = vector.extract_strided_slice %192 {offsets = [1, 0], sizes = [20, 32], strides = [1, 1]} : vector<22x32xf32> to vector<20x32xf32>
    %195 = vector.extract_strided_slice %192 {offsets = [2, 0], sizes = [20, 32], strides = [1, 1]} : vector<22x32xf32> to vector<20x32xf32>
    %196 = tpu.concatenate %193, %194, %195 in 1 : vector<20x32xf32>, vector<20x32xf32>, vector<20x32xf32> -> vector<20x96xf32>
    %c0_106 = arith.constant 0 : index
    %c0_107 = arith.constant 0 : index
    %197 = vector.load %arg22[%c0_106, %c0_107] : memref<96x32xf32, #tpu.memory_space<vmem>>, vector<96x32xf32>
    %cst_108 = arith.constant dense<0.000000e+00> : vector<20x32xf32>
    %198 = tpu.matmul %196, %197, %cst_108 {dimension_numbers = #tpu.dot_dimension_numbers<[1], [0], [0], [1], [0, 0, 1, 1], [], []>} : vector<20x96xf32>, vector<96x32xf32>, vector<20x32xf32> -> vector<20x32xf32>
    %c0_109 = arith.constant 0 : index
    %c0_110 = arith.constant 0 : index
    %199 = vector.load %arg23[%c0_109, %c0_110] : memref<3x32xf32, #tpu.memory_space<vmem>>, vector<1x32xf32>
    %200 = vector.broadcast %199 : vector<1x32xf32> to vector<20x32xf32>
    %201 = arith.addf %198, %200 : vector<20x32xf32>
    %cst_111 = arith.constant 0.000000e+00 : f32
    %202 = vector.broadcast %cst_111 : f32 to vector<20x32xf32>
    %203 = arith.maximumf %201, %202 : vector<20x32xf32>
    %c1_112 = arith.constant 1 : index
    %c0_113 = arith.constant 0 : index
    %204 = vector.load %arg23[%c1_112, %c0_113] : memref<3x32xf32, #tpu.memory_space<vmem>>, vector<1x32xf32>
    %205 = vector.broadcast %204 : vector<1x32xf32> to vector<20x32xf32>
    %206 = arith.mulf %203, %205 : vector<20x32xf32>
    %c2_114 = arith.constant 2 : index
    %c0_115 = arith.constant 0 : index
    %207 = vector.load %arg23[%c2_114, %c0_115] : memref<3x32xf32, #tpu.memory_space<vmem>>, vector<1x32xf32>
    %208 = vector.broadcast %207 : vector<1x32xf32> to vector<20x32xf32>
    %209 = arith.addf %206, %208 : vector<20x32xf32>
    %cst_116 = arith.constant 0.000000e+00 : f32
    %210 = vector.broadcast %cst_116 : f32 to vector<1x32xf32>
    %211 = tpu.concatenate %210, %209, %210 in 0 : vector<1x32xf32>, vector<20x32xf32>, vector<1x32xf32> -> vector<22x32xf32>
    %212 = vector.extract_strided_slice %211 {offsets = [0, 0], sizes = [20, 32], strides = [1, 1]} : vector<22x32xf32> to vector<20x32xf32>
    %213 = vector.extract_strided_slice %211 {offsets = [1, 0], sizes = [20, 32], strides = [1, 1]} : vector<22x32xf32> to vector<20x32xf32>
    %214 = vector.extract_strided_slice %211 {offsets = [2, 0], sizes = [20, 32], strides = [1, 1]} : vector<22x32xf32> to vector<20x32xf32>
    %215 = tpu.concatenate %212, %213, %214 in 1 : vector<20x32xf32>, vector<20x32xf32>, vector<20x32xf32> -> vector<20x96xf32>
    %c0_117 = arith.constant 0 : index
    %c0_118 = arith.constant 0 : index
    %216 = vector.load %arg24[%c0_117, %c0_118] : memref<96x32xf32, #tpu.memory_space<vmem>>, vector<96x32xf32>
    %cst_119 = arith.constant dense<0.000000e+00> : vector<20x32xf32>
    %217 = tpu.matmul %215, %216, %cst_119 {dimension_numbers = #tpu.dot_dimension_numbers<[1], [0], [0], [1], [0, 0, 1, 1], [], []>} : vector<20x96xf32>, vector<96x32xf32>, vector<20x32xf32> -> vector<20x32xf32>
    %c0_120 = arith.constant 0 : index
    %c0_121 = arith.constant 0 : index
    %218 = vector.load %arg25[%c0_120, %c0_121] : memref<3x32xf32, #tpu.memory_space<vmem>>, vector<1x32xf32>
    %219 = vector.broadcast %218 : vector<1x32xf32> to vector<20x32xf32>
    %220 = arith.addf %217, %219 : vector<20x32xf32>
    %cst_122 = arith.constant 0.000000e+00 : f32
    %221 = vector.broadcast %cst_122 : f32 to vector<20x32xf32>
    %222 = arith.maximumf %220, %221 : vector<20x32xf32>
    %c1_123 = arith.constant 1 : index
    %c0_124 = arith.constant 0 : index
    %223 = vector.load %arg25[%c1_123, %c0_124] : memref<3x32xf32, #tpu.memory_space<vmem>>, vector<1x32xf32>
    %224 = vector.broadcast %223 : vector<1x32xf32> to vector<20x32xf32>
    %225 = arith.mulf %222, %224 : vector<20x32xf32>
    %c2_125 = arith.constant 2 : index
    %c0_126 = arith.constant 0 : index
    %226 = vector.load %arg25[%c2_125, %c0_126] : memref<3x32xf32, #tpu.memory_space<vmem>>, vector<1x32xf32>
    %227 = vector.broadcast %226 : vector<1x32xf32> to vector<20x32xf32>
    %228 = arith.addf %225, %227 : vector<20x32xf32>
    %229 = arith.addf %190, %228 : vector<20x32xf32>
    %c0_127 = arith.constant 0 : index
    %c0_128 = arith.constant 0 : index
    %230 = vector.load %arg26[%c0_127, %c0_128] : memref<32x32xf32, #tpu.memory_space<vmem>>, vector<32x32xf32>
    %cst_129 = arith.constant dense<0.000000e+00> : vector<20x32xf32>
    %231 = tpu.matmul %229, %230, %cst_129 {dimension_numbers = #tpu.dot_dimension_numbers<[1], [0], [0], [1], [0, 0, 1, 1], [], []>} : vector<20x32xf32>, vector<32x32xf32>, vector<20x32xf32> -> vector<20x32xf32>
    %c0_130 = arith.constant 0 : index
    %c0_131 = arith.constant 0 : index
    %232 = vector.load %arg27[%c0_130, %c0_131] : memref<3x32xf32, #tpu.memory_space<vmem>>, vector<1x32xf32>
    %233 = vector.broadcast %232 : vector<1x32xf32> to vector<20x32xf32>
    %234 = arith.addf %231, %233 : vector<20x32xf32>
    %cst_132 = arith.constant 0.000000e+00 : f32
    %235 = vector.broadcast %cst_132 : f32 to vector<20x32xf32>
    %236 = arith.maximumf %234, %235 : vector<20x32xf32>
    %c1_133 = arith.constant 1 : index
    %c0_134 = arith.constant 0 : index
    %237 = vector.load %arg27[%c1_133, %c0_134] : memref<3x32xf32, #tpu.memory_space<vmem>>, vector<1x32xf32>
    %238 = vector.broadcast %237 : vector<1x32xf32> to vector<20x32xf32>
    %239 = arith.mulf %236, %238 : vector<20x32xf32>
    %c2_135 = arith.constant 2 : index
    %c0_136 = arith.constant 0 : index
    %240 = vector.load %arg27[%c2_135, %c0_136] : memref<3x32xf32, #tpu.memory_space<vmem>>, vector<1x32xf32>
    %241 = vector.broadcast %240 : vector<1x32xf32> to vector<20x32xf32>
    %242 = arith.addf %239, %241 : vector<20x32xf32>
    %c0_137 = arith.constant 0 : index
    %c0_138 = arith.constant 0 : index
    %243 = vector.load %arg28[%c0_137, %c0_138] : memref<32x64xf32, #tpu.memory_space<vmem>>, vector<32x64xf32>
    %cst_139 = arith.constant dense<0.000000e+00> : vector<20x64xf32>
    %244 = tpu.matmul %242, %243, %cst_139 {dimension_numbers = #tpu.dot_dimension_numbers<[1], [0], [0], [1], [0, 0, 1, 1], [], []>} : vector<20x32xf32>, vector<32x64xf32>, vector<20x64xf32> -> vector<20x64xf32>
    %c0_140 = arith.constant 0 : index
    %c0_141 = arith.constant 0 : index
    %245 = vector.load %arg29[%c0_140, %c0_141] : memref<3x64xf32, #tpu.memory_space<vmem>>, vector<1x64xf32>
    %246 = vector.broadcast %245 : vector<1x64xf32> to vector<20x64xf32>
    %247 = arith.addf %244, %246 : vector<20x64xf32>
    %cst_142 = arith.constant 0.000000e+00 : f32
    %248 = vector.broadcast %cst_142 : f32 to vector<20x64xf32>
    %249 = arith.maximumf %247, %248 : vector<20x64xf32>
    %c1_143 = arith.constant 1 : index
    %c0_144 = arith.constant 0 : index
    %250 = vector.load %arg29[%c1_143, %c0_144] : memref<3x64xf32, #tpu.memory_space<vmem>>, vector<1x64xf32>
    %251 = vector.broadcast %250 : vector<1x64xf32> to vector<20x64xf32>
    %252 = arith.mulf %249, %251 : vector<20x64xf32>
    %c2_145 = arith.constant 2 : index
    %c0_146 = arith.constant 0 : index
    %253 = vector.load %arg29[%c2_145, %c0_146] : memref<3x64xf32, #tpu.memory_space<vmem>>, vector<1x64xf32>
    %254 = vector.broadcast %253 : vector<1x64xf32> to vector<20x64xf32>
    %255 = arith.addf %252, %254 : vector<20x64xf32>
    %cst_147 = arith.constant dense<0.000000e+00> : vector<64xf32>
    %256 = vector.multi_reduction <add>, %255, %cst_147 [0] : vector<20x64xf32> to vector<64xf32>
    %257 = vector.shape_cast %256 : vector<64xf32> to vector<1x64xf32>
    %cst_148 = arith.constant 2.000000e+01 : f32
    %258 = vector.broadcast %cst_148 : f32 to vector<1x64xf32>
    %259 = arith.divf %257, %258 : vector<1x64xf32>
    %260 = vector.broadcast %259 : vector<1x64xf32> to vector<20x64xf32>
    %261 = arith.subf %255, %260 : vector<20x64xf32>
    %262 = arith.mulf %261, %261 : vector<20x64xf32>
    %cst_149 = arith.constant dense<0.000000e+00> : vector<64xf32>
    %263 = vector.multi_reduction <add>, %262, %cst_149 [0] : vector<20x64xf32> to vector<64xf32>
    %264 = vector.shape_cast %263 : vector<64xf32> to vector<1x64xf32>
    %cst_150 = arith.constant 1.900000e+01 : f32
    %265 = vector.broadcast %cst_150 : f32 to vector<1x64xf32>
    %266 = arith.divf %264, %265 : vector<1x64xf32>
    %267 = math.sqrt %266 : vector<1x64xf32>
    %268 = tpu.concatenate %259, %267 in 1 : vector<1x64xf32>, vector<1x64xf32> -> vector<1x128xf32>
    %c0_151 = arith.constant 0 : index
    %c0_152 = arith.constant 0 : index
    %269 = vector.load %arg30[%c0_151, %c0_152] : memref<128x32xf32, #tpu.memory_space<vmem>>, vector<128x32xf32>
    %cst_153 = arith.constant dense<0.000000e+00> : vector<1x32xf32>
    %270 = tpu.matmul %268, %269, %cst_153 {dimension_numbers = #tpu.dot_dimension_numbers<[1], [0], [0], [1], [0, 0, 1, 1], [], []>} : vector<1x128xf32>, vector<128x32xf32>, vector<1x32xf32> -> vector<1x32xf32>
    %c0_154 = arith.constant 0 : index
    %c0_155 = arith.constant 0 : index
    %271 = vector.load %arg31[%c0_154, %c0_155] : memref<3x32xf32, #tpu.memory_space<vmem>>, vector<1x32xf32>
    %272 = arith.addf %270, %271 : vector<1x32xf32>
    %cst_156 = arith.constant 0.000000e+00 : f32
    %273 = vector.broadcast %cst_156 : f32 to vector<1x32xf32>
    %274 = arith.maximumf %272, %273 : vector<1x32xf32>
    %c1_157 = arith.constant 1 : index
    %c0_158 = arith.constant 0 : index
    %275 = vector.load %arg31[%c1_157, %c0_158] : memref<3x32xf32, #tpu.memory_space<vmem>>, vector<1x32xf32>
    %276 = arith.mulf %274, %275 : vector<1x32xf32>
    %c2_159 = arith.constant 2 : index
    %c0_160 = arith.constant 0 : index
    %277 = vector.load %arg31[%c2_159, %c0_160] : memref<3x32xf32, #tpu.memory_space<vmem>>, vector<1x32xf32>
    %278 = arith.addf %276, %277 : vector<1x32xf32>
    %c0_161 = arith.constant 0 : index
    %c0_162 = arith.constant 0 : index
    %279 = vector.load %arg32[%c0_161, %c0_162] : memref<32x10xf32, #tpu.memory_space<vmem>>, vector<32x10xf32>
    %cst_163 = arith.constant dense<0.000000e+00> : vector<1x10xf32>
    %280 = tpu.matmul %278, %279, %cst_163 {dimension_numbers = #tpu.dot_dimension_numbers<[1], [0], [0], [1], [0, 0, 1, 1], [], []>} : vector<1x32xf32>, vector<32x10xf32>, vector<1x10xf32> -> vector<1x10xf32>
    %c0_164 = arith.constant 0 : index
    %c0_165 = arith.constant 0 : index
    %281 = vector.load %arg33[%c0_164, %c0_165] : memref<1x10xf32, #tpu.memory_space<vmem>>, vector<1x10xf32>
    %282 = arith.addf %280, %281 : vector<1x10xf32>
    %cst_166 = arith.constant 0.000000e+00 : f32
    %283 = vector.broadcast %cst_166 : f32 to vector<1x86xf32>
    %284 = tpu.concatenate %282, %278, %283 in 1 : vector<1x10xf32>, vector<1x32xf32>, vector<1x86xf32> -> vector<1x128xf32>
    %285 = vector.shape_cast %284 : vector<1x128xf32> to vector<1x1x128xf32>
    %c0_167 = arith.constant 0 : index
    %c0_168 = arith.constant 0 : index
    %c0_169 = arith.constant 0 : index
    %286 = vector.load %arg34[%c0_167, %c0_168, %c0_169] : memref<1x1x128xf32, #tpu.memory_space<vmem>>, vector<1x1x128xf32>
    tpu.vector_store %arg34[%c0_167, %c0_168, %c0_169], %285 {strides = array<i32>} : memref<1x1x128xf32, #tpu.memory_space<vmem>>, vector<1x1x128xf32>,
    return
  }
  func.func @transform_0(%arg0: i32) -> (i32, i32, i32) {
    %c0_i32 = arith.constant 0 : i32
    %c0_i32_0 = arith.constant 0 : i32
    %c0_i32_1 = arith.constant 0 : i32
    return %arg0, %c0_i32, %c0_i32_0 : i32, i32, i32
  }
  func.func @transform_1(%arg0: i32) -> (i32, i32) {
    %c0_i32 = arith.constant 0 : i32
    %c0_i32_0 = arith.constant 0 : i32
    %c0_i32_1 = arith.constant 0 : i32
    return %c0_i32, %c0_i32_0 : i32, i32
  }
  func.func @transform_2(%arg0: i32) -> (i32, i32) {
    %c0_i32 = arith.constant 0 : i32
    %c0_i32_0 = arith.constant 0 : i32
    %c0_i32_1 = arith.constant 0 : i32
    return %c0_i32, %c0_i32_0 : i32, i32
  }
  func.func @transform_3(%arg0: i32) -> (i32, i32) {
    %c0_i32 = arith.constant 0 : i32
    %c0_i32_0 = arith.constant 0 : i32
    %c0_i32_1 = arith.constant 0 : i32
    return %c0_i32, %c0_i32_0 : i32, i32
  }
  func.func @transform_4(%arg0: i32) -> (i32, i32) {
    %c0_i32 = arith.constant 0 : i32
    %c0_i32_0 = arith.constant 0 : i32
    %c0_i32_1 = arith.constant 0 : i32
    return %c0_i32, %c0_i32_0 : i32, i32
  }
  func.func @transform_5(%arg0: i32) -> (i32, i32) {
    %c0_i32 = arith.constant 0 : i32
    %c0_i32_0 = arith.constant 0 : i32
    %c0_i32_1 = arith.constant 0 : i32
    return %c0_i32, %c0_i32_0 : i32, i32
  }
  func.func @transform_6(%arg0: i32) -> (i32, i32) {
    %c0_i32 = arith.constant 0 : i32
    %c0_i32_0 = arith.constant 0 : i32
    %c0_i32_1 = arith.constant 0 : i32
    return %c0_i32, %c0_i32_0 : i32, i32
  }
  func.func @transform_7(%arg0: i32) -> (i32, i32) {
    %c0_i32 = arith.constant 0 : i32
    %c0_i32_0 = arith.constant 0 : i32
    %c0_i32_1 = arith.constant 0 : i32
    return %c0_i32, %c0_i32_0 : i32, i32
  }
  func.func @transform_8(%arg0: i32) -> (i32, i32) {
    %c0_i32 = arith.constant 0 : i32
    %c0_i32_0 = arith.constant 0 : i32
    %c0_i32_1 = arith.constant 0 : i32
    return %c0_i32, %c0_i32_0 : i32, i32
  }
  func.func @transform_9(%arg0: i32) -> (i32, i32) {
    %c0_i32 = arith.constant 0 : i32
    %c0_i32_0 = arith.constant 0 : i32
    %c0_i32_1 = arith.constant 0 : i32
    return %c0_i32, %c0_i32_0 : i32, i32
  }
  func.func @transform_10(%arg0: i32) -> (i32, i32) {
    %c0_i32 = arith.constant 0 : i32
    %c0_i32_0 = arith.constant 0 : i32
    %c0_i32_1 = arith.constant 0 : i32
    return %c0_i32, %c0_i32_0 : i32, i32
  }
  func.func @transform_11(%arg0: i32) -> (i32, i32) {
    %c0_i32 = arith.constant 0 : i32
    %c0_i32_0 = arith.constant 0 : i32
    %c0_i32_1 = arith.constant 0 : i32
    return %c0_i32, %c0_i32_0 : i32, i32
  }
  func.func @transform_12(%arg0: i32) -> (i32, i32) {
    %c0_i32 = arith.constant 0 : i32
    %c0_i32_0 = arith.constant 0 : i32
    %c0_i32_1 = arith.constant 0 : i32
    return %c0_i32, %c0_i32_0 : i32, i32
  }
  func.func @transform_13(%arg0: i32) -> (i32, i32) {
    %c0_i32 = arith.constant 0 : i32
    %c0_i32_0 = arith.constant 0 : i32
    %c0_i32_1 = arith.constant 0 : i32
    return %c0_i32, %c0_i32_0 : i32, i32
  }
  func.func @transform_14(%arg0: i32) -> (i32, i32) {
    %c0_i32 = arith.constant 0 : i32
    %c0_i32_0 = arith.constant 0 : i32
    %c0_i32_1 = arith.constant 0 : i32
    return %c0_i32, %c0_i32_0 : i32, i32
  }
  func.func @transform_15(%arg0: i32) -> (i32, i32) {
    %c0_i32 = arith.constant 0 : i32
    %c0_i32_0 = arith.constant 0 : i32
    %c0_i32_1 = arith.constant 0 : i32
    return %c0_i32, %c0_i32_0 : i32, i32
  }
  func.func @transform_16(%arg0: i32) -> (i32, i32) {
    %c0_i32 = arith.constant 0 : i32
    %c0_i32_0 = arith.constant 0 : i32
    %c0_i32_1 = arith.constant 0 : i32
    return %c0_i32, %c0_i32_0 : i32, i32
  }
  func.func @transform_17(%arg0: i32) -> (i32, i32) {
    %c0_i32 = arith.constant 0 : i32
    %c0_i32_0 = arith.constant 0 : i32
    %c0_i32_1 = arith.constant 0 : i32
    return %c0_i32, %c0_i32_0 : i32, i32
  }
  func.func @transform_18(%arg0: i32) -> (i32, i32) {
    %c0_i32 = arith.constant 0 : i32
    %c0_i32_0 = arith.constant 0 : i32
    %c0_i32_1 = arith.constant 0 : i32
    return %c0_i32, %c0_i32_0 : i32, i32
  }
  func.func @transform_19(%arg0: i32) -> (i32, i32) {
    %c0_i32 = arith.constant 0 : i32
    %c0_i32_0 = arith.constant 0 : i32
    %c0_i32_1 = arith.constant 0 : i32
    return %c0_i32, %c0_i32_0 : i32, i32
  }
  func.func @transform_20(%arg0: i32) -> (i32, i32) {
    %c0_i32 = arith.constant 0 : i32
    %c0_i32_0 = arith.constant 0 : i32
    %c0_i32_1 = arith.constant 0 : i32
    return %c0_i32, %c0_i32_0 : i32, i32
  }
  func.func @transform_21(%arg0: i32) -> (i32, i32) {
    %c0_i32 = arith.constant 0 : i32
    %c0_i32_0 = arith.constant 0 : i32
    %c0_i32_1 = arith.constant 0 : i32
    return %c0_i32, %c0_i32_0 : i32, i32
  }
  func.func @transform_22(%arg0: i32) -> (i32, i32) {
    %c0_i32 = arith.constant 0 : i32
    %c0_i32_0 = arith.constant 0 : i32
    %c0_i32_1 = arith.constant 0 : i32
    return %c0_i32, %c0_i32_0 : i32, i32
  }
  func.func @transform_23(%arg0: i32) -> (i32, i32) {
    %c0_i32 = arith.constant 0 : i32
    %c0_i32_0 = arith.constant 0 : i32
    %c0_i32_1 = arith.constant 0 : i32
    return %c0_i32, %c0_i32_0 : i32, i32
  }
  func.func @transform_24(%arg0: i32) -> (i32, i32) {
    %c0_i32 = arith.constant 0 : i32
    %c0_i32_0 = arith.constant 0 : i32
    %c0_i32_1 = arith.constant 0 : i32
    return %c0_i32, %c0_i32_0 : i32, i32
  }
  func.func @transform_25(%arg0: i32) -> (i32, i32) {
    %c0_i32 = arith.constant 0 : i32
    %c0_i32_0 = arith.constant 0 : i32
    %c0_i32_1 = arith.constant 0 : i32
    return %c0_i32, %c0_i32_0 : i32, i32
  }
  func.func @transform_26(%arg0: i32) -> (i32, i32) {
    %c0_i32 = arith.constant 0 : i32
    %c0_i32_0 = arith.constant 0 : i32
    %c0_i32_1 = arith.constant 0 : i32
    return %c0_i32, %c0_i32_0 : i32, i32
  }
  func.func @transform_27(%arg0: i32) -> (i32, i32) {
    %c0_i32 = arith.constant 0 : i32
    %c0_i32_0 = arith.constant 0 : i32
    %c0_i32_1 = arith.constant 0 : i32
    return %c0_i32, %c0_i32_0 : i32, i32
  }
  func.func @transform_28(%arg0: i32) -> (i32, i32) {
    %c0_i32 = arith.constant 0 : i32
    %c0_i32_0 = arith.constant 0 : i32
    %c0_i32_1 = arith.constant 0 : i32
    return %c0_i32, %c0_i32_0 : i32, i32
  }
  func.func @transform_29(%arg0: i32) -> (i32, i32) {
    %c0_i32 = arith.constant 0 : i32
    %c0_i32_0 = arith.constant 0 : i32
    %c0_i32_1 = arith.constant 0 : i32
    return %c0_i32, %c0_i32_0 : i32, i32
  }
  func.func @transform_30(%arg0: i32) -> (i32, i32) {
    %c0_i32 = arith.constant 0 : i32
    %c0_i32_0 = arith.constant 0 : i32
    %c0_i32_1 = arith.constant 0 : i32
    return %c0_i32, %c0_i32_0 : i32, i32
  }
  func.func @transform_31(%arg0: i32) -> (i32, i32) {
    %c0_i32 = arith.constant 0 : i32
    %c0_i32_0 = arith.constant 0 : i32
    %c0_i32_1 = arith.constant 0 : i32
    return %c0_i32, %c0_i32_0 : i32, i32
  }
  func.func @transform_32(%arg0: i32) -> (i32, i32) {
    %c0_i32 = arith.constant 0 : i32
    %c0_i32_0 = arith.constant 0 : i32
    %c0_i32_1 = arith.constant 0 : i32
    return %c0_i32, %c0_i32_0 : i32, i32
  }
  func.func @transform_33(%arg0: i32) -> (i32, i32, i32) {
    %c0_i32 = arith.constant 0 : i32
    %c0_i32_0 = arith.constant 0 : i32
    %c0_i32_1 = arith.constant 0 : i32
    return %arg0, %c0_i32, %c0_i32_0 : i32, i32, i32
  }
}

</mosaic_0001>

<bundles_post_ra>
// kernel: tpu_custom_call.1
= control target key start
LH: loop header
LB: loop body
LE: loop exit
PB: predicated region body
PF: predicated region fallthrough
CT: control target
= control target key end

     0   :  { %s5068_s6 = smov 1   ;;  %s5069_s10 = smov 2   ;;  %s6136_s0 = inlined_call_operand.smem [shape: u32[34], index: -1, kind: input, shape index: {}] }
   0x1   :  { %s5119_s5 = sld [smem:[%s6136_s0]]   ;;  %s5070_s14 = smov 3  }
   0x2   :  { %s5124_s9 = sld [smem:[%s6136_s0 + %s5068_s6]]   ;;  %s5071_s18 = smov 4  }
   0x3   :  { %s5129_s13 = sld [smem:[%s6136_s0 + %s5069_s10]]   ;;  %s5072_s22 = smov 5  }
   0x4   :  { %s5134_s17 = sld [smem:[%s6136_s0 + %s5070_s14]]   ;;  %s5073_s26 = smov 6  }
   0x5   :  { %s5139_s21 = sld [smem:[%s6136_s0 + %s5071_s18]]   ;;  %s5074_s30 = smov 7  }
   0x6   :  { %s5144_s25 = sld [smem:[%s6136_s0 + %s5072_s22]]   ;;  %s5075_s4 = smov 8  }
   0x7   :  { %6177 = sst [smem:[#allocation5_spill]] %s5119_s5  ;;  %s5076_s10 = smov 9  }
   0x8   :  { %6178 = sst [smem:[#allocation6_spill]] %s5124_s9  ;;  %s5077_s15 = smov 10  }
   0x9   :  { %6179 = sst [smem:[#allocation7_spill]] %s5129_s13  ;;  %s5078_s20 = smov 11  }
   0xa   :  { %s5149_s29 = sld [smem:[%s6136_s0 + %s5073_s26]]   ;;  %s5079_s26 = smov 12  }
   0xb   :  { %s5154_s3 = sld [smem:[%s6136_s0 + %s5074_s30]]   ;;  %s5080_s1 = smov 13  }
   0xc   :  { %s5159_s8 = sld [smem:[%s6136_s0 + %s5075_s4]]   ;;  %s5081_s7 = smov 14  }
   0xd   :  { %s5164_s14 = sld [smem:[%s6136_s0 + %s5076_s10]]   ;;  %s5083_s22 = smov 16  }
   0xe   :  { %s5169_s19 = sld [smem:[%s6136_s0 + %s5077_s15]]   ;;  %s5082_s15 = smov 15  }
   0xf   :  { %s5174_s24 = sld [smem:[%s6136_s0 + %s5078_s20]]   ;;  %s5084_s28 = smov 17  }
  0x10   :  { %s5179_s30 = sld [smem:[%s6136_s0 + %s5079_s26]]  }
  0x11   :  { %6180 = sst [smem:[#allocation8_spill]] %s5154_s3 }
  0x12   :  { %6181 = sst [smem:[#allocation9_spill]] %s5159_s8 }
  0x13   :  { %6182 = sst [smem:[#allocation10_spill]] %s5164_s14 }
  0x14   :  { %s5184_s6 = sld [smem:[%s6136_s0 + %s5080_s1]]  }
  0x15   :  { %s5189_s12 = sld [smem:[%s6136_s0 + %s5081_s7]]   ;;  %s5085_s7 = smov 18  }
  0x16   :  { %s5194_s20 = sld [smem:[%s6136_s0 + %s5082_s15]]   ;;  %s5086_s15 = smov 19  }
  0x17   :  { %s5199_s27 = sld [smem:[%s6136_s0 + %s5083_s22]]   ;;  %s5087_s22 = smov 20  }
  0x18   :  { %s5204_s4 = sld [smem:[%s6136_s0 + %s5084_s28]]   ;;  %s5088_s28 = smov 21  }
  0x1a   :  { %6183 = sst [smem:[#allocation11_spill]] %s5184_s6 }
  0x1b   :  { %6184 = sst [smem:[#allocation12_spill]] %s5189_s12 }
  0x1c   :  { %6185 = sst [smem:[#allocation13_spill]] %s5194_s20 }
  0x1d   :  { %6186 = sst [smem:[#allocation14_spill]] %s5199_s27 }
  0x1e   :  { %6187 = sst [smem:[#allocation15_spill]] %s5204_s4 }
  0x1f   :  { %s5209_s12 = sld [smem:[%s6136_s0 + %s5085_s7]]   ;;  %s5089_s7 = smov 22  }
  0x20   :  { %s5214_s20 = sld [smem:[%s6136_s0 + %s5086_s15]]   ;;  %s5090_s15 = smov 23  }
  0x21   :  { %s5219_s27 = sld [smem:[%s6136_s0 + %s5087_s22]]   ;;  %s5091_s22 = smov 24  }
  0x22   :  { %s5224_s4 = sld [smem:[%s6136_s0 + %s5088_s28]]   ;;  %s5092_s28 = smov 25  }
  0x25   :  { %6188 = sst [smem:[#allocation16_spill]] %s5209_s12 }
  0x26   :  { %6189 = sst [smem:[#allocation17_spill]] %s5214_s20 }
  0x27   :  { %6190 = sst [smem:[#allocation18_spill]] %s5219_s27 }
  0x28   :  { %6191 = sst [smem:[#allocation19_spill]] %s5224_s4 }
  0x29   :  { %s5229_s12 = sld [smem:[%s6136_s0 + %s5089_s7]]   ;;  %s5093_s7 = smov 26  }
  0x2a   :  { %s5234_s20 = sld [smem:[%s6136_s0 + %s5090_s15]]   ;;  %s5094_s15 = smov 27  }
  0x2b   :  { %s5239_s27 = sld [smem:[%s6136_s0 + %s5091_s22]]   ;;  %s5095_s22 = smov 28  }
  0x2c   :  { %s5244_s4 = sld [smem:[%s6136_s0 + %s5092_s28]]   ;;  %s5096_s28 = smov 29  }
  0x2f   :  { %6192 = sst [smem:[#allocation20_spill]] %s5229_s12 }
  0x30   :  { %6193 = sst [smem:[#allocation21_spill]] %s5234_s20 }
  0x31   :  { %6194 = sst [smem:[#allocation22_spill]] %s5239_s27 }
  0x32   :  { %6195 = sst [smem:[#allocation23_spill]] %s5244_s4 }
  0x33   :  { %s5249_s12 = sld [smem:[%s6136_s0 + %s5093_s7]]   ;;  %s5097_s7 = smov 30  }
  0x34   :  { %s5254_s20 = sld [smem:[%s6136_s0 + %s5094_s15]]   ;;  %s5098_s15 = smov 31  }
  0x35   :  { %s5259_s27 = sld [smem:[%s6136_s0 + %s5095_s22]]   ;;  %s5099_s22 = smov 32  }
  0x36   :  { %s5264_s4 = sld [smem:[%s6136_s0 + %s5096_s28]]   ;;  %s5100_s28 = smov 33  }
  0x39   :  { %6196 = sst [smem:[#allocation24_spill]] %s5249_s12 }
  0x3a   :  { %6197 = sst [smem:[#allocation25_spill]] %s5254_s20 }
  0x3b   :  { %6198 = sst [smem:[#allocation26_spill]] %s5259_s27 }
  0x3c   :  { %6199 = sst [smem:[#allocation27_spill]] %s5264_s4 }
  0x3d   :  { %s5269_s12 = sld [smem:[%s6136_s0 + %s5097_s7]]  }
  0x3e   :  { %s5274_s20 = sld [smem:[%s6136_s0 + %s5098_s15]]  }
  0x3f   :  { %s5279_s27 = sld [smem:[%s6136_s0 + %s5099_s22]]  }
  0x40   :  { %s5284_s4 = sld [smem:[%s6136_s0 + %s5100_s28]]  }
  0x43   :  { %6200 = sst [smem:[#allocation28_spill]] %s5269_s12 }
  0x44   :  { %72 = vsyncpa [#allocation3], 0 }
  0x45   :  { %74 = vsyncpa [#allocation3 + $0x1], 0  ;;  %s5286_s7 = smov 0   ;;  %s5288_s10 = smov 0  }
  0x46   :  { %s5290_s11 = smov 0   ;;  %s5292_s15 = smov 0  }
  0x47 LB: > { %s6201_s14 = sld [smem:[#allocation10_spill]]  ;;  %s6202_s13 = sld [smem:[#allocation7_spill]]  ;;  %s5062_s11 = sphi %s5290_s11, %s6231_s11   ;;  %s5058_s10 = sphi %s5288_s10, %s6230_s10   ;;  %s5054_s7 = sphi %s5286_s7, %s6229_s7   ;;  %s5066_s15 = sphi %s5292_s15, %s6232_s15  }
  0x48   : > { %s6203_s12 = sld [smem:[#allocation28_spill]]  ;;  %s6204_s9 = sld [smem:[#allocation6_spill]] }
  0x49   : > { %s6205_s8 = sld [smem:[#allocation9_spill]]  ;;  %s6206_s6 = sld [smem:[#allocation11_spill]] }
  0x4a   : > { %s6207_s3 = sld [smem:[#allocation8_spill]]  ;;  %s5307_s0 = sadd.s32 4294967295, %s5066_s15  }
  0x4b   : > { %s3882_s16 = sadd.s32 4294967294, %s5066_s15   ;;  %s5311_s18 = sadd.s32 1, %s5066_s15  }
  0x4c   : > { %s785_s22 = sadd.s32 1, %s5062_s11  ;;  %s782_s23 = ssub.s32 %s5066_s15, %s5311_s18 }
  0x4d   : > { %p795_p0 = scmp.ne.s32.totalorder %s5062_s11, %s5058_s10  ;;  %p783_p1 = scmp.eq.s32.totalorder %s782_s23, 0 }
  0x4e   : > { %p796_p2 = scmp.eq.s32.totalorder %s5307_s0, 1  ;;  %p801_p3 = scmp.ne.s32.totalorder %s5058_s10, %s5054_s7 }
  0x4f   : > { %p802_p4 = scmp.eq.s32.totalorder %s3882_s16, 1  ;;  %p3885_p7 = scmp.ge.s32.totalorder %s5066_s15, 1 }
  0x50   : > { %s5322_s26 = scalar_select %p783_p1, %s5062_s11, %s785_s22  }
  0x51   : > { %p5324_p5 = por %p796_p2, %p795_p0  ;;  %p5328_p6 = por %p802_p4, %p801_p3 }
  0x52   : > { %p924_p8 = scmp.lt.s32.totalorder %s5066_s15, 3 }
  0x54   : > { %p925_p9 = pnand %p3885_p7, %p924_p8 }
  0x55   : > { %s6210_s5 = sld [smem:[#allocation5_spill]] (!%p925_p9)  ;;  %p1007_p10 = scmp.lt.s32.totalorder (!%p925_p9), %s5307_s0, 1  ;;  %v1120_v0 = vld [vmem:[%s6204_s9] sm:$0xff] (!%p925_p9)  ;;  %v1121_v1 = vld [vmem:[%s6204_s9 + $0x8] sm:$0xff] (!%p925_p9)  ;;  %v1122_v2 = vld [vmem:[%s6204_s9 + $0x10] sm:$0xff] (!%p925_p9)  ;;  %vm1040_vm0 = vcmask (!%p925_p9), 1045504  }
  0x56   : > { %928 = sbr.rel (%p925_p9) target bundleno = 5393 (0x1511), region = 152  ;;  %v4609_v3 = vpack.c.bf16 (!%p925_p9), %v1121_v1, %v1120_v0  ;;  %v1123_v4 = vld [vmem:[%s6204_s9 + $0x18] sm:$0xff] (!%p925_p9)  ;;  %v1124_v6 = vld [vmem:[%s6204_s9 + $0x20] sm:$0xff] (!%p925_p9)  ;;  %v1125_v7 = vld [vmem:[%s6204_s9 + $0x28] sm:$0xff] (!%p925_p9)  ;;  %vm1020_vm1 = vcmask (!%p925_p9), 1046528   ;;  %s6154_s23 = smov (!%p925_p9), 32  }
  0x57   : > { %v4613_v5 = vpack.c.bf16 (!%p925_p9), %v1123_v4, %v1122_v2  ;;  %v4617_v11 = vpack.c.bf16 (!%p925_p9), %v1125_v7, %v1124_v6  ;;  %v1126_v18 = vld [vmem:[%s6204_s9 + $0x30] sm:$0xff] (!%p925_p9)  ;;  %v1127_v19 = vld [vmem:[%s6204_s9 + $0x38] sm:$0xff] (!%p925_p9)  ;;  %vm1060_vm2 = vcmask (!%p925_p9), 1044480   ;;  %v1128_v29 = vld [vmem:[%s6204_s9 + $0x40] sm:$0xff] (!%p925_p9)  ;;  %vm1080_vm3 = vcmask (!%p925_p9), 1043456  }
  0x58   : > { %4610 = vmatprep.subr.bf16.mxu0 (!%p925_p9), %v4609_v3  ;;  %v4621_v28 = vpack.c.bf16 (!%p925_p9), %v1127_v19, %v1126_v18  ;;  %v1129_v30 = vld [vmem:[%s6204_s9 + $0x48] sm:$0xff] (!%p925_p9)  ;;  %vm1100_vm4 = vcmask (!%p925_p9), 130048   ;;  %vm1105_vm5 = vcmask (!%p925_p9), 261120   ;;  %vm1110_vm6 = vcmask (!%p925_p9), 392192   ;;  %v1324_v19 = vld [vmem:[%s5134_s17 + $0x18] sm:$0xff] (!%p925_p9) }
  0x59   : > { %4612 = vmatpush3.bf16.msra.mxu0 (!%p925_p9), %v4609_v3  ;;  %v4625_v36 = vpack.c.bf16 (!%p925_p9), %v1129_v30, %v1128_v29  ;;  %vm1115_vm7 = vcmask (!%p925_p9), 523264   ;;  %vm1135_vm8 = vcmask (!%p925_p9), 654336   ;;  %vm1259_vm9 = vcmask (!%p925_p9), 1040384  }
  0x5a   : > { %4614 = vmatprep.subr.bf16.mxu0 (!%p925_p9), %v4613_v5  ;;  %vm1338_vm10 = vcmask (!%p925_p9), 785408   ;;  %vm1865_vm11 = vcmask (!%p925_p9), 1042432   ;;  %vm5106_vm12 = vmmov (!%p925_p9), 0   ;;  %vm3561_vm13 = vcmask (!%p925_p9), 519168  }
  0x5d   : > { %s1008_s2 = scalar_select %p1007_p10, %s5307_s0, 1  ;;  %4616 = vmatpush3.bf16.msra.mxu0 %v4613_v5 }
  0x5e   : > { %4618 = vmatprep.subr.bf16.mxu0 %v4617_v11 }
  0x5f   : > { %s3982_s16 = sshll.u32 %s1008_s2, 5  ;;  %s5102_s2 = smov 16  }
  0x60   : > { %s1011_s22 = scalar_lea.vmem %s6210_s5, %s3982_s16  ;;  %s5103_s16 = smov 48  }
  0x61   : > { %v5343_v8 = vld [vmem:[%s1011_s22] sm:$0xff]  ;;  %v5345_v9 = vld [vmem:[%s1011_s22 + $0x8] sm:$0xff]  ;;  %v5347_v10 = vld [vmem:[%s1011_s22 + $0x10] sm:$0xff]  ;;  %4620 = vmatpush3.bf16.msra.mxu0 %v4617_v11  ;;  %s5108_s5 = smov 96  }
  0x62   : > { %v1041_v12 = vrot.slane %v5343_v8, 2  ;;  %v1042_v13 = vrot.slane %v5345_v9, 2  ;;  %v1021_v14 = vrot.slane %v5343_v8, 1  ;;  %v1022_v15 = vrot.slane %v5345_v9, 1  ;;  %v5366_v27 = vld [vmem:[%s1011_s22 + $0x18] sm:$0xff]  ;;  %4622 = vmatprep.subr.bf16.mxu0 %v4621_v28  ;;  %s6158_s22 = smov 64  }
  0x63   : > { %v1044_v16 = vrot.slane %v5347_v10, 2  ;;  %v1024_v17 = vrot.slane %v5347_v10, 1  ;;  %v1062_v22 = vrot.slane %v5345_v9, 3  ;;  %v1064_v23 = vrot.slane %v5347_v10, 3 }
  0x64   : > { %v1043_v20 = vsel %vm1040_vm0, %v1041_v12, %v1042_v13  ;;  %v1023_v21 = vsel %vm1020_vm1, %v1021_v14, %v1022_v15  ;;  %v1061_v26 = vrot.slane %v5343_v8, 3  ;;  %v1026_v32 = vrot.slane %v5366_v27, 1 }
  0x65   : > { %1048 = vrot.lane.b32.xlu1 %v1043_v20, %s6154_s23  ;;  %1028 = vrot.lane.b32.xlu0 %v1023_v21, %s5102_s2  ;;  %v1045_v24 = vsel %vm1040_vm0, %v1042_v13, %v1044_v16  ;;  %v1025_v25 = vsel %vm1020_vm1, %v1022_v15, %v1024_v17  ;;  %v1065_v31 = vsel %vm1060_vm2, %v1062_v22, %v1064_v23  ;;  %v1081_v34 = vrot.slane %v5343_v8, 4  ;;  %v3888_v21 = vld [vmem:[%s6202_s13] ss:$0 sm:$0xff] }
  0x66   : > { %v1063_v33 = vsel %vm1060_vm2, %v1061_v26, %v1062_v22  ;;  %v1082_v35 = vrot.slane %v5345_v9, 4  ;;  %4624 = vmatpush3.bf16.msra.mxu0 %v4621_v28  ;;  %v1027_v37 = vsel %vm1020_vm1, %v1024_v17, %v1026_v32  ;;  %v1084_v39 = vrot.slane %v5347_v10, 4  ;;  %v1323_v17 = vld [vmem:[%s5134_s17 + $0x10] sm:$0xff]  ;;  %v1326_v28 = vld [vmem:[%s5134_s17 + $0x28] sm:$0xff] }
  0x67   : > { %4626 = vmatprep.subr.bf16.mxu0 %v4625_v36  ;;  %v1046_v41 = vrot.slane %v5366_v27, 2  ;;  %v1066_v43 = vrot.slane %v5366_v27, 3  ;;  %v1086_v45 = vrot.slane %v5366_v27, 4  ;;  %v4633_v20 = vpack.c.bf16 %v1324_v19, %v1323_v17 }
  0x68   : > { %v1083_v38 = vsel %vm1080_vm3, %v1081_v34, %v1082_v35  ;;  %v1085_v40 = vsel %vm1080_vm3, %v1082_v35, %v1084_v39  ;;  %v1327_v35 = vld [vmem:[%s5134_s17 + $0x30] sm:$0xff] }
  0x69   : > { %1050 = vrot.lane.b32.xlu1 %v1045_v24, %s6154_s23  ;;  %1030 = vrot.lane.b32.xlu0 %v1025_v25, %s5102_s2  ;;  %v1047_v42 = vsel %vm1040_vm0, %v1044_v16, %v1046_v41  ;;  %v1067_v44 = vsel %vm1060_vm2, %v1064_v23, %v1066_v43  ;;  %v1087_v46 = vsel %vm1080_vm3, %v1084_v39, %v1086_v45  ;;  %v1322_v16 = vld [vmem:[%s5134_s17 + $0x8] sm:$0xff]  ;;  %v3893_v25 = vld [vmem:[%s6202_s13 + $0x1] ss:$0 sm:$0xff] }
  0x6a   : > { %4628 = vmatpush3.bf16.msra.mxu0 %v4625_v36  ;;  %v1328_v36 = vld [vmem:[%s5134_s17 + $0x38] sm:$0xff] }
  0x6d   : > { %1070 = vrot.lane.b32.xlu1 %v1065_v31, %s5103_s16  ;;  %1068 = vrot.lane.b32.xlu0 %v1063_v33, %s5103_s16  ;;  %v3894_v31 = vld [vmem:[%s6202_s13 + $0x2] ss:$0 sm:$0xff] }
  0x71   : > { %1032 = vrot.lane.b32.xlu1 %v1027_v37, %s5102_s2  ;;  %1088 = vrot.lane.b32.xlu0 %v1083_v38, %s6158_s22  ;;  %v4641_v38 = vpack.c.bf16 %v1328_v36, %v1327_v35  ;;  %v1526_v35 = vld [vmem:[%s5144_s25 + $0x18] sm:$0xff] }
  0x75   : > { %1034 = vrot.lane.b32.xlu1 %v1026_v32, %s5102_s2  ;;  %1090 = vrot.lane.b32.xlu0 %v1085_v40, %s6158_s22  ;;  %v1329_v40 = vld [vmem:[%s5134_s17 + $0x40] sm:$0xff]  ;;  %s6211_s2 = sld [smem:[#allocation13_spill]] }
  0x79   : > { %1054 = vrot.lane.b32.xlu1 %v1046_v41, %s6154_s23  ;;  %1052 = vrot.lane.b32.xlu0 %v1047_v42, %s6154_s23  ;;  %v1330_v41 = vld [vmem:[%s5134_s17 + $0x48] sm:$0xff] }
  0x7d   : > { %1074 = vrot.lane.b32.xlu1 %v1066_v43, %s5103_s16  ;;  %1072 = vrot.lane.b32.xlu0 %v1067_v44, %s5103_s16  ;;  %v4645_v43 = vpack.c.bf16 %v1330_v41, %v1329_v40  ;;  %v1528_v40 = vld [vmem:[%s5144_s25 + $0x28] sm:$0xff]  ;;  %s6212_s16 = sld [smem:[#allocation12_spill]] }
  0x81   : > { %1094 = vrot.lane.b32.xlu1 %v1086_v45, %s6158_s22  ;;  %1092 = vrot.lane.b32.xlu0 %v1087_v46, %s6158_s22 }
  0xd7   : > { %v1049_v47 = vpop.permute.xlu1 %1048  ;;  %v1029_v48 = vpop.permute.xlu0 %1028 }
  0xd8   : > { %v1101_v51 = vsel %vm1100_vm4, %v5343_v8, %v1029_v48 }
  0xd9   : > { %v1106_v54 = vsel %vm1105_vm5, %v1101_v51, %v1049_v47 }
  0xdb   : > { %v1051_v49 = vpop.permute.xlu1 %1050  ;;  %v1031_v50 = vpop.permute.xlu0 %1030 }
  0xdc   : > { %v1102_v55 = vsel %vm1100_vm4, %v5345_v9, %v1031_v50 }
  0xdd   : > { %v1107_v60 = vsel %vm1105_vm5, %v1102_v55, %v1051_v49 }
  0xdf   : > { %v1071_v52 = vpop.permute.xlu1 %1070  ;;  %v1069_v53 = vpop.permute.xlu0 %1068 }
  0xe0   : > { %v1111_v56 = vsel %vm1110_vm6, %v1106_v54, %v1069_v53  ;;  %v1112_v61 = vsel %vm1110_vm6, %v1107_v60, %v1071_v52  ;;  %v1331_v53 = vld [vmem:[%s5134_s17 + $0x50] sm:$0xff]  ;;  %v1332_v54 = vld [vmem:[%s5134_s17 + $0x58] sm:$0xff] }
  0xe3   : > { %v1033_v57 = vpop.permute.xlu1 %1032  ;;  %v1089_v58 = vpop.permute.xlu0 %1088 }
  0xe4   : > { %v1116_v59 = vsel %vm1115_vm7, %v1111_v56, %v1089_v58  ;;  %v1103_v5 = vsel %vm1100_vm4, %v5347_v10, %v1033_v57  ;;  %v1321_v10 = vld [vmem:[%s5134_s17] sm:$0xff]  ;;  %v4649_v58 = vpack.c.bf16 %v1332_v54, %v1331_v53 }
  0xe5   : > { %4208 = vmatprep.mubr.msk.f32.mxu0 %vm1135_vm8, %v1116_v59  ;;  %v4629_v18 = vpack.c.bf16 %v1322_v16, %v1321_v10 }
  0xe7   : > { %v1035_v62 = vpop.permute.xlu1 %1034  ;;  %v1091_v63 = vpop.permute.xlu0 %1090  ;;  %4630 = vmatprep.subr.bf16.mxu1 %v4629_v18 }
  0xe8   : > { %v1117_v0 = vsel %vm1115_vm7, %v1112_v61, %v1091_v63  ;;  %v1104_v6 = vsel %vm1100_vm4, %v5366_v27, %v1035_v62  ;;  %4632 = vmatpush3.bf16.msra.mxu1 %v4629_v18  ;;  %v1325_v27 = vld [vmem:[%s5134_s17 + $0x20] sm:$0xff] }
  0xe9   : > { %4209 = vmatmul.mubr.msk.f32.vlgmr.msra.gmra.mrb[0].mxu0 %vm1135_vm8, %v1117_v0  ;;  %4634 = vmatprep.subr.bf16.mxu1 %v4633_v20  ;;  %v4637_v30 = vpack.c.bf16 %v1326_v28, %v1325_v27 }
  0xeb   : > { %v1055_v1 = vpop.permute.xlu1 %1054  ;;  %v1053_v2 = vpop.permute.xlu0 %1052 }
  0xec   : > { %v1109_v7 = vsel %vm1105_vm5, %v1104_v6, %v1055_v1  ;;  %v1108_v8 = vsel %vm1105_vm5, %v1103_v5, %v1053_v2  ;;  %4636 = vmatpush3.bf16.msra.mxu1 %v4633_v20 }
  0xed   : > { %4638 = vmatprep.subr.bf16.mxu1 %v4637_v30 }
  0xef   : > { %v1075_v3 = vpop.permute.xlu1 %1074  ;;  %v1073_v4 = vpop.permute.xlu0 %1072 }
  0xf0   : > { %v1114_v9 = vsel %vm1110_vm6, %v1109_v7, %v1075_v3  ;;  %v1113_v11 = vsel %vm1110_vm6, %v1108_v8, %v1073_v4  ;;  %4640 = vmatpush3.bf16.msra.mxu1 %v4637_v30 }
  0xf1   : > { %4642 = vmatprep.subr.bf16.mxu1 %v4641_v38 }
  0xf3   : > { %v1095_v12 = vpop.permute.xlu1 %1094  ;;  %v1093_v13 = vpop.permute.xlu0 %1092 }
  0xf4   : > { %v1119_v14 = vsel %vm1115_vm7, %v1114_v9, %v1095_v12  ;;  %v1118_v15 = vsel %vm1115_vm7, %v1113_v11, %v1093_v13  ;;  %4644 = vmatpush3.bf16.msra.mxu1 %v4641_v38  ;;  %v1527_v38 = vld [vmem:[%s5144_s25 + $0x20] sm:$0xff] }
  0xf5   : > { %4211 = vmatprep.mubr.msk.f32.mxu0 %vm1135_vm8, %v1118_v15  ;;  %4646 = vmatprep.subr.bf16.mxu1 %v4645_v43  ;;  %v4661_v41 = vpack.c.bf16 %v1528_v40, %v1527_v38 }
  0xf6   : > { %4212 = vmatmul.mubr.msk.f32.gmra.mrb[2].mxu0 %vm1135_vm8, %v1119_v14 }
  0xf8   : > { %4648 = vmatpush3.bf16.msra.mxu1 %v4645_v43 }
  0xf9   : > { %4650 = vmatprep.subr.bf16.mxu1 %v4649_v58 }
  0xfc   : > { %4652 = vmatpush3.bf16.msra.mxu1 %v4649_v58 }
 0x1bc   : > { %v4210_v22 = vpop.f32.mrb[0].mxu0 }
 0x1bd   : > { %v1220_v23 = vadd.f32 %v4210_v22, %v3888_v21  ;;  %v1214_v24 = vpop.f32.mrb[1].mxu0 }
 0x1be   : > { %v1215_v26 = vadd.f32 %v3888_v21, %v1214_v24 }
 0x1bf   : > { %v1234_v29 = vmax.f32 %v1220_v23, 0.0 }
 0x1c0   : > { %v1233_v32 = vmax.f32 %v1215_v26, 0.0 }
 0x1c1   : > { %v1243_v33 = vmul.f32 %v3893_v25, %v1234_v29 }
 0x1c2   : > { %v1242_v34 = vmul.f32 %v3893_v25, %v1233_v32  ;;  %v1524_v32 = vld [vmem:[%s5144_s25 + $0x8] sm:$0xff] }
 0x1c3   : > { %v5430_v37 = vadd.f32 %v3894_v31, %v1243_v33  ;;  %v1525_v33 = vld [vmem:[%s5144_s25 + $0x10] sm:$0xff] }
 0x1c4   : > { %v5432_v39 = vadd.f32 %v3894_v31, %v1242_v34  ;;  %v4657_v36 = vpack.c.bf16 %v1526_v35, %v1525_v33 }
 0x1c5   : > { %v1261_v42 = vrot.slane %v5430_v37, 7 }
 0x1c6   : > { %v1260_v44 = vrot.slane %v5432_v39, 7 }
 0x1c8   : > { %v1262_v45 = vsel %vm1259_vm9, %v1260_v44, %v1261_v42  ;;  %v1271_v46 = vsel %vm1259_vm9, 0.0, %v1260_v44 }
 0x1c9   : > { %v4213_v47 = vpop.f32.mrb[2].mxu0  ;;  %v1275_v48 = vrot.slane %v1271_v46, 1  ;;  %v1276_v49 = vrot.slane %v1262_v45, 1  ;;  %v1294_v52 = vrot.slane %v1271_v46, 2  ;;  %v1295_v57 = vrot.slane %v1262_v45, 2 }
 0x1ca   : > { %v1230_v50 = vadd.f32 %v4213_v47, %v3888_v21  ;;  %v1224_v51 = vpop.f32.mrb[3].mxu0 }
 0x1cb   : > { %v1225_v55 = vadd.f32 %v3888_v21, %v1224_v51  ;;  %v1277_v56 = vsel %vm1020_vm1, %v1275_v48, %v1276_v49  ;;  %v1296_v63 = vsel %vm1040_vm0, %v1294_v52, %v1295_v57  ;;  %v1529_v48 = vld [vmem:[%s5144_s25 + $0x30] sm:$0xff]  ;;  %v3901_v52 = vld [vmem:[%s5139_s21 + $0x2] ss:$0 sm:$0xff] }
 0x1cc   : > { %v1236_v59 = vmax.f32 %v1230_v50, 0.0  ;;  %1282 = vrot.lane.b32.xlu0 %v1277_v56, %s6154_s23  ;;  %v1531_v56 = vld [vmem:[%s5144_s25 + $0x40] sm:$0xff] }
 0x1cd   : > { %v1235_v60 = vmax.f32 %v1225_v55, 0.0 }
 0x1ce   : > { %v1245_v61 = vmul.f32 %v3893_v25, %v1236_v59 }
 0x1cf   : > { %v1244_v62 = vmul.f32 %v3893_v25, %v1235_v60 }
 0x1d0   : > { %v5445_v0 = vadd.f32 %v3894_v31, %v1245_v61  ;;  %1301 = vrot.lane.b32.xlu0 %v1296_v63, %s6158_s22 }
 0x1d1   : > { %v5448_v1 = vadd.f32 %v3894_v31, %v1244_v62  ;;  %v1523_v31 = vld [vmem:[%s5144_s25] sm:$0xff] }
 0x1d2   : > { %v1265_v2 = vrot.slane %v5445_v0, 7  ;;  %v4653_v34 = vpack.c.bf16 %v1524_v32, %v1523_v31 }
 0x1d3   : > { %v1263_v3 = vrot.slane %v5448_v1, 7 }
 0x1d4   : > { %4654 = vmatprep.subr.bf16.mxu0 %v4653_v34 }
 0x1d5   : > { %v1264_v4 = vsel %vm1259_vm9, %v1261_v42, %v1263_v3  ;;  %v1266_v5 = vsel %vm1259_vm9, %v1263_v3, %v1265_v2  ;;  %4656 = vmatpush3.bf16.msra.mxu0 %v4653_v34  ;;  %v3895_v42 = vld [vmem:[%s5139_s21] ss:$0 sm:$0xff] }
 0x1d6   : > { %v1278_v6 = vrot.slane %v1264_v4, 1  ;;  %v1272_v7 = vsel %vm1060_vm2, %v1266_v5, 0.0  ;;  %v1297_v11 = vrot.slane %v1264_v4, 2  ;;  %4658 = vmatprep.subr.bf16.mxu0 %v4657_v36  ;;  %v1533_v5 = vld [vmem:[%s5144_s25 + $0x50] sm:$0xff] }
 0x1d7   : > { %v1280_v8 = vrot.slane %v1272_v7, 1  ;;  %v1299_v13 = vrot.slane %v1272_v7, 2 }
 0x1d8   : > { %v1279_v9 = vsel %vm1020_vm1, %v1276_v49, %v1278_v6  ;;  %v1298_v14 = vsel %vm1040_vm0, %v1295_v57, %v1297_v11  ;;  %v1530_v49 = vld [vmem:[%s5144_s25 + $0x38] sm:$0xff]  ;;  %v1532_v57 = vld [vmem:[%s5144_s25 + $0x48] sm:$0xff] }
 0x1d9   : > { %1284 = vrot.lane.b32.xlu1 %v1279_v9, %s6154_s23  ;;  %v1281_v12 = vsel %vm1020_vm1, %v1278_v6, %v1280_v8  ;;  %v1300_v15 = vsel %vm1040_vm0, %v1297_v11, %v1299_v13  ;;  %4660 = vmatpush3.bf16.msra.mxu0 %v4657_v36  ;;  %v4665_v51 = vpack.c.bf16 %v1530_v49, %v1529_v48  ;;  %v1534_v6 = vld [vmem:[%s5144_s25 + $0x58] sm:$0xff] }
 0x1da   : > { %1286 = vrot.lane.b32.xlu0 %v1281_v12, %s6154_s23  ;;  %4662 = vmatprep.subr.bf16.mxu0 %v4661_v41  ;;  %v4669_v59 = vpack.c.bf16 %v1532_v57, %v1531_v56  ;;  %v1716_v57 = vld [vmem:[%s6207_s3 + $0x18] sm:$0xff] }
 0x1dd   : > { %1303 = vrot.lane.b32.xlu1 %v1298_v14, %s6158_s22  ;;  %4664 = vmatpush3.bf16.msra.mxu0 %v4661_v41 }
 0x1de   : > { %1305 = vrot.lane.b32.xlu0 %v1300_v15, %s6158_s22  ;;  %4666 = vmatprep.subr.bf16.mxu0 %v4665_v51 }
 0x1e1   : > { %1288 = vrot.lane.b32.xlu1 %v1280_v8, %s6154_s23  ;;  %4668 = vmatpush3.bf16.msra.mxu0 %v4665_v51  ;;  %v4673_v8 = vpack.c.bf16 %v1534_v6, %v1533_v5  ;;  %v1719_v6 = vld [vmem:[%s6207_s3 + $0x30] sm:$0xff] }
 0x1e2   : > { %4670 = vmatprep.subr.bf16.mxu0 %v4669_v59 }
 0x1e5   : > { %1307 = vrot.lane.b32.xlu1 %v1299_v13, %s6158_s22  ;;  %4672 = vmatpush3.bf16.msra.mxu0 %v4669_v59  ;;  %v1717_v59 = vld [vmem:[%s6207_s3 + $0x20] sm:$0xff] }
 0x1e6   : > { %4674 = vmatprep.subr.bf16.mxu0 %v4673_v8 }
 0x1e9   : > { %4676 = vmatpush3.bf16.msra.mxu0 %v4673_v8 }
 0x23e   : > { %v1283_v10 = vpop.permute.xlu0 %1282 }
 0x23f   : > { %v1313_v16 = vsel %vm1105_vm5, %v1271_v46, %v1283_v10  ;;  %v3900_v46 = vld [vmem:[%s5139_s21 + $0x1] ss:$0 sm:$0xff] }
 0x242   : > { %v1302_v17 = vpop.permute.xlu0 %1301 }
 0x243   : > { %v1317_v18 = vsel %vm1115_vm7, %v1313_v16, %v1302_v17 }
 0x244   : > { %4238 = vmatprep.mubr.msk.f32.mxu1 %vm1338_vm10, %v1317_v18 }
 0x24b   : > { %v1285_v19 = vpop.permute.xlu1 %1284 }
 0x24c   : > { %v1287_v20 = vpop.permute.xlu0 %1286  ;;  %v1314_v21 = vsel %vm1105_vm5, %v1262_v45, %v1285_v19 }
 0x24d   : > { %v1315_v23 = vsel %vm1105_vm5, %v1264_v4, %v1287_v20 }
 0x24f   : > { %v1304_v22 = vpop.permute.xlu1 %1303 }
 0x250   : > { %v1318_v24 = vsel %vm1115_vm7, %v1314_v21, %v1304_v22  ;;  %v1306_v25 = vpop.permute.xlu0 %1305 }
 0x251   : > { %v1319_v26 = vsel %vm1115_vm7, %v1315_v23, %v1306_v25  ;;  %4239 = vmatmul.mubr.msk.f32.vlgmr.msra.gmra.mrb[0].mxu1 %vm1338_vm10, %v1318_v24 }
 0x252   : > { %4241 = vmatprep.mubr.msk.f32.mxu1 %vm1338_vm10, %v1319_v26 }
 0x253   : > { %v1289_v27 = vpop.permute.xlu1 %1288 }
 0x254   : > { %v1316_v28 = vsel %vm1105_vm5, %v1272_v7, %v1289_v27 }
 0x257   : > { %v1308_v29 = vpop.permute.xlu1 %1307 }
 0x258   : > { %v1320_v30 = vsel %vm1115_vm7, %v1316_v28, %v1308_v29 }
 0x259   : > { %4242 = vmatmul.mubr.msk.f32.gmra.mrb[2].mxu1 %vm1338_vm10, %v1320_v30 }
 0x324   : > { %v4240_v43 = vpop.f32.mrb[0].mxu1 }
 0x325   : > { %v1423_v44 = vadd.f32 %v4240_v43, %v3895_v42  ;;  %v1417_v45 = vpop.f32.mrb[1].mxu1 }
 0x326   : > { %v1418_v47 = vadd.f32 %v3895_v42, %v1417_v45 }
 0x327   : > { %v1437_v50 = vmax.f32 %v1423_v44, 0.0 }
 0x328   : > { %v1436_v53 = vmax.f32 %v1418_v47, 0.0 }
 0x329   : > { %v1446_v54 = vmul.f32 %v3900_v46, %v1437_v50 }
 0x32a   : > { %v1445_v55 = vmul.f32 %v3900_v46, %v1436_v53  ;;  %v1713_v53 = vld [vmem:[%s6207_s3] sm:$0xff] }
 0x32b   : > { %v1455_v58 = vadd.f32 %v3901_v52, %v1446_v54  ;;  %v1714_v54 = vld [vmem:[%s6207_s3 + $0x8] sm:$0xff] }
 0x32c   : > { %v1454_v60 = vadd.f32 %v3901_v52, %v1445_v55  ;;  %v4243_v61 = vpop.f32.mrb[2].mxu1  ;;  %v1715_v55 = vld [vmem:[%s6207_s3 + $0x10] sm:$0xff]  ;;  %v4677_v56 = vpack.c.bf16 %v1714_v54, %v1713_v53 }
 0x32d   : > { %v1463_v62 = vrot.slane %v1455_v58, 7  ;;  %v1433_v63 = vadd.f32 %v4243_v61, %v3895_v42  ;;  %v1427_v2 = vpop.f32.mrb[3].mxu1  ;;  %v4681_v58 = vpack.c.bf16 %v1716_v57, %v1715_v55 }
 0x32e   : > { %v1462_v3 = vrot.slane %v1454_v60, 7  ;;  %v1428_v4 = vadd.f32 %v3895_v42, %v1427_v2  ;;  %v1718_v60 = vld [vmem:[%s6207_s3 + $0x28] sm:$0xff]  ;;  %4678 = vmatprep.subr.bf16.mxu1 %v4677_v56 }
 0x32f   : > { %v1439_v7 = vmax.f32 %v1433_v63, 0.0  ;;  %4680 = vmatpush3.bf16.msra.mxu1 %v4677_v56  ;;  %v4685_v61 = vpack.c.bf16 %v1718_v60, %v1717_v59 }
 0x330   : > { %v1473_v9 = vsel %vm1259_vm9, 0.0, %v1462_v3  ;;  %v1438_v11 = vmax.f32 %v1428_v4, 0.0  ;;  %v1464_v12 = vsel %vm1259_vm9, %v1462_v3, %v1463_v62  ;;  %4682 = vmatprep.subr.bf16.mxu1 %v4681_v58  ;;  %v3907_v4 = vld [vmem:[%s5149_s29 + $0x1] ss:$0 sm:$0xff] }
 0x331   : > { %v1448_v13 = vmul.f32 %v3900_v46, %v1439_v7  ;;  %v1477_v14 = vrot.slane %v1473_v9, 1  ;;  %v1478_v15 = vrot.slane %v1464_v12, 1  ;;  %v1496_v18 = vrot.slane %v1473_v9, 2  ;;  %v1720_v7 = vld [vmem:[%s6207_s3 + $0x38] sm:$0xff] }
 0x332   : > { %v1447_v10 = vmul.f32 %v3900_v46, %v1438_v11  ;;  %v1497_v19 = vrot.slane %v1464_v12, 2  ;;  %v3908_v11 = vld [vmem:[%s5149_s29 + $0x2] ss:$0 sm:$0xff] }
 0x333   : > { %v1457_v16 = vadd.f32 %v3901_v52, %v1448_v13  ;;  %v1479_v17 = vsel %vm1020_vm1, %v1477_v14, %v1478_v15  ;;  %4684 = vmatpush3.bf16.msra.mxu1 %v4681_v58 }
 0x334   : > { %v1456_v20 = vadd.f32 %v3901_v52, %v1447_v10  ;;  %1484 = vrot.lane.b32.xlu0 %v1479_v17, %s6154_s23  ;;  %v1498_v23 = vsel %vm1040_vm0, %v1496_v18, %v1497_v19  ;;  %4686 = vmatprep.subr.bf16.mxu1 %v4685_v61  ;;  %v1721_v10 = vld [vmem:[%s6207_s3 + $0x40] sm:$0xff] }
 0x335   : > { %v1467_v21 = vrot.slane %v1457_v16, 7  ;;  %v1722_v16 = vld [vmem:[%s6207_s3 + $0x48] sm:$0xff] }
 0x336   : > { %v1465_v22 = vrot.slane %v1456_v20, 7 }
 0x337   : > { %4688 = vmatpush3.bf16.msra.mxu1 %v4685_v61 }
 0x338   : > { %1503 = vrot.lane.b32.xlu0 %v1498_v23, %s6158_s22  ;;  %v1466_v24 = vsel %vm1259_vm9, %v1463_v62, %v1465_v22  ;;  %v1468_v25 = vsel %vm1259_vm9, %v1465_v22, %v1467_v21  ;;  %v3902_v62 = vld [vmem:[%s5149_s29] ss:$0 sm:$0xff] }
 0x339   : > { %v1480_v26 = vrot.slane %v1466_v24, 1  ;;  %v1474_v27 = vsel %vm1060_vm2, %v1468_v25, 0.0  ;;  %v1499_v30 = vrot.slane %v1466_v24, 2 }
 0x33a   : > { %v1482_v28 = vrot.slane %v1474_v27, 1  ;;  %v1501_v32 = vrot.slane %v1474_v27, 2 }
 0x33b   : > { %v1481_v29 = vsel %vm1020_vm1, %v1478_v15, %v1480_v26  ;;  %v1500_v33 = vsel %vm1040_vm0, %v1497_v19, %v1499_v30  ;;  %v4693_v19 = vpack.c.bf16 %v1722_v16, %v1721_v10 }
 0x33c   : > { %1486 = vrot.lane.b32.xlu1 %v1481_v29, %s6154_s23  ;;  %v1483_v31 = vsel %vm1020_vm1, %v1480_v26, %v1482_v28  ;;  %v1502_v34 = vsel %vm1040_vm0, %v1499_v30, %v1501_v32 }
 0x33d   : > { %1488 = vrot.lane.b32.xlu0 %v1483_v31, %s6154_s23 }
 0x340   : > { %1505 = vrot.lane.b32.xlu1 %v1500_v33, %s6158_s22 }
 0x341   : > { %1507 = vrot.lane.b32.xlu0 %v1502_v34, %s6158_s22 }
 0x344   : > { %1490 = vrot.lane.b32.xlu1 %v1482_v28, %s6154_s23  ;;  %v1724_v28 = vld [vmem:[%s6207_s3 + $0x58] sm:$0xff] }
 0x348   : > { %1509 = vrot.lane.b32.xlu1 %v1501_v32, %s6158_s22 }
 0x3a6   : > { %v1485_v35 = vpop.permute.xlu0 %1484 }
 0x3a7   : > { %v1515_v36 = vsel %vm1105_vm5, %v1473_v9, %v1485_v35  ;;  %v4689_v9 = vpack.c.bf16 %v1720_v7, %v1719_v6  ;;  %v1918_v6 = vld [vmem:[%s6201_s14 + $0x18] sm:$0xff] }
 0x3a9   : > { %4690 = vmatprep.subr.bf16.mxu1 %v4689_v9 }
 0x3aa   : > { %v1504_v38 = vpop.permute.xlu0 %1503  ;;  %4692 = vmatpush3.bf16.msra.mxu1 %v4689_v9  ;;  %v1920_v9 = vld [vmem:[%s6201_s14 + $0x28] sm:$0xff] }
 0x3ab   : > { %v1519_v40 = vsel %vm1115_vm7, %v1515_v36, %v1504_v38  ;;  %4694 = vmatprep.subr.bf16.mxu1 %v4693_v19 }
 0x3ac   : > { %4268 = vmatprep.mubr.msk.f32.mxu0 %vm1338_vm10, %v1519_v40 }
 0x3ae   : > { %v1487_v41 = vpop.permute.xlu1 %1486  ;;  %4696 = vmatpush3.bf16.msra.mxu1 %v4693_v19 }
 0x3af   : > { %v1489_v42 = vpop.permute.xlu0 %1488  ;;  %v1516_v43 = vsel %vm1105_vm5, %v1464_v12, %v1487_v41 }
 0x3b0   : > { %v1517_v45 = vsel %vm1105_vm5, %v1466_v24, %v1489_v42 }
 0x3b2   : > { %v1506_v44 = vpop.permute.xlu1 %1505 }
 0x3b3   : > { %v1520_v46 = vsel %vm1115_vm7, %v1516_v43, %v1506_v44  ;;  %v1508_v47 = vpop.permute.xlu0 %1507 }
 0x3b4   : > { %v1521_v48 = vsel %vm1115_vm7, %v1517_v45, %v1508_v47  ;;  %4269 = vmatmul.mubr.msk.f32.vlgmr.msra.gmra.mrb[4].mxu0 %vm1338_vm10, %v1520_v46 }
 0x3b5   : > { %4271 = vmatprep.mubr.msk.f32.mxu0 %vm1338_vm10, %v1521_v48 }
 0x3b6   : > { %v1491_v49 = vpop.permute.xlu1 %1490 }
 0x3b7   : > { %v1518_v50 = vsel %vm1105_vm5, %v1474_v27, %v1491_v49  ;;  %v1723_v27 = vld [vmem:[%s6207_s3 + $0x50] sm:$0xff]  ;;  %s6216_s3 = sld [smem:[#allocation17_spill]] }
 0x3b8   : > { %v4697_v31 = vpack.c.bf16 %v1724_v28, %v1723_v27 }
 0x3ba   : > { %v1510_v51 = vpop.permute.xlu1 %1509  ;;  %4698 = vmatprep.subr.bf16.mxu1 %v4697_v31 }
 0x3bb   : > { %v1522_v52 = vsel %vm1115_vm7, %v1518_v50, %v1510_v51  ;;  %4700 = vmatpush3.bf16.msra.mxu1 %v4697_v31 }
 0x3bc   : > { %4272 = vmatmul.mubr.msk.f32.gmra.mrb[6].mxu0 %vm1338_vm10, %v1522_v52 }
 0x487   : > { %v4270_v63 = vpop.f32.mrb[4].mxu0 }
 0x488   : > { %v1624_v2 = vadd.f32 %v4270_v63, %v3902_v62  ;;  %v1618_v3 = vpop.f32.mrb[5].mxu0 }
 0x489   : > { %v1619_v5 = vadd.f32 %v3902_v62, %v1618_v3  ;;  %v1916_v3 = vld [vmem:[%s6201_s14 + $0x8] sm:$0xff] }
 0x48a   : > { %v1638_v8 = vmax.f32 %v1624_v2, 0.0  ;;  %v1915_v2 = vld [vmem:[%s6201_s14] sm:$0xff] }
 0x48b   : > { %v1637_v12 = vmax.f32 %v1619_v5, 0.0  ;;  %v4701_v5 = vpack.c.bf16 %v1916_v3, %v1915_v2 }
 0x48c   : > { %v1647_v13 = vmul.f32 %v3907_v4, %v1638_v8  ;;  %v1919_v8 = vld [vmem:[%s6201_s14 + $0x20] sm:$0xff] }
 0x48d   : > { %v1646_v14 = vmul.f32 %v3907_v4, %v1637_v12  ;;  %4702 = vmatprep.subr.bf16.mxu0 %v4701_v5  ;;  %v1921_v12 = vld [vmem:[%s6201_s14 + $0x30] sm:$0xff] }
 0x48e   : > { %v1656_v15 = vadd.f32 %v3908_v11, %v1647_v13  ;;  %4704 = vmatpush3.bf16.msra.mxu0 %v4701_v5  ;;  %v1922_v13 = vld [vmem:[%s6201_s14 + $0x38] sm:$0xff] }
 0x48f   : > { %v1655_v17 = vadd.f32 %v3908_v11, %v1646_v14  ;;  %v4273_v18 = vpop.f32.mrb[6].mxu0  ;;  %v4713_v14 = vpack.c.bf16 %v1922_v13, %v1921_v12 }
 0x490   : > { %v1660_v20 = vadd.f32 %v1656_v15, %v5430_v37  ;;  %v1634_v21 = vadd.f32 %v4273_v18, %v3902_v62  ;;  %v1628_v22 = vpop.f32.mrb[7].mxu0  ;;  %v3909_v15 = vld [vmem:[%s6205_s8] ss:$0 sm:$0xff]  ;;  %v3914_v18 = vld [vmem:[%s6205_s8 + $0x1] ss:$0 sm:$0xff] }
 0x491   : > { %v1659_v23 = vadd.f32 %v1655_v17, %v5432_v39  ;;  %v1629_v24 = vadd.f32 %v3902_v62, %v1628_v22 }
 0x492   : > { %v1640_v25 = vmax.f32 %v1634_v21, 0.0  ;;  %v1668_v26 = vrot.slane %v1660_v20, 1  ;;  %v1687_v37 = vrot.slane %v1660_v20, 2  ;;  %v1924_v21 = vld [vmem:[%s6201_s14 + $0x48] sm:$0xff] }
 0x493   : > { %v1639_v29 = vmax.f32 %v1629_v24, 0.0  ;;  %v1667_v30 = vrot.slane %v1659_v23, 1  ;;  %v1686_v35 = vrot.slane %v1659_v23, 2  ;;  %v3915_v24 = vld [vmem:[%s6205_s8 + $0x2] ss:$0 sm:$0xff] }
 0x494   : > { %v1649_v32 = vmul.f32 %v3907_v4, %v1640_v25 }
 0x495   : > { %v1648_v33 = vmul.f32 %v3907_v4, %v1639_v29  ;;  %v1669_v34 = vsel %vm1020_vm1, %v1667_v30, %v1668_v26  ;;  %v1688_v41 = vsel %vm1040_vm0, %v1686_v35, %v1687_v37  ;;  %v1917_v4 = vld [vmem:[%s6201_s14 + $0x10] sm:$0xff] }
 0x496   : > { %v1658_v36 = vadd.f32 %v3908_v11, %v1649_v32  ;;  %1674 = vrot.lane.b32.xlu0 %v1669_v34, %s6154_s23  ;;  %v4705_v7 = vpack.c.bf16 %v1918_v6, %v1917_v4  ;;  %v1925_v32 = vld [vmem:[%s6201_s14 + $0x50] sm:$0xff] }
 0x497   : > { %v1657_v39 = vadd.f32 %v3908_v11, %v1648_v33  ;;  %v4709_v11 = vpack.c.bf16 %v1920_v9, %v1919_v8  ;;  %v1926_v33 = vld [vmem:[%s6201_s14 + $0x58] sm:$0xff] }
 0x498   : > { %v1662_v38 = vadd.f32 %v1658_v36, %v5445_v0  ;;  %4706 = vmatprep.subr.bf16.mxu0 %v4705_v7 }
 0x499   : > { %v1661_v40 = vadd.f32 %v1657_v39, %v5448_v1  ;;  %4708 = vmatpush3.bf16.msra.mxu0 %v4705_v7 }
 0x49a   : > { %1693 = vrot.lane.b32.xlu0 %v1688_v41, %s6158_s22  ;;  %v1672_v42 = vrot.slane %v1662_v38, 1  ;;  %v1691_v46 = vrot.slane %v1662_v38, 2  ;;  %4710 = vmatprep.subr.bf16.mxu0 %v4709_v11 }
 0x49b   : > { %v1670_v43 = vrot.slane %v1661_v40, 1  ;;  %v1689_v45 = vrot.slane %v1661_v40, 2 }
 0x49c   : > { %1680 = vrot.lane.b32.xlu1 %v1672_v42, %s6154_s23 }
 0x49d   : > { %v1673_v44 = vsel %vm1020_vm1, %v1670_v43, %v1672_v42  ;;  %v1671_v47 = vsel %vm1020_vm1, %v1668_v26, %v1670_v43  ;;  %v1692_v0 = vsel %vm1040_vm0, %v1689_v45, %v1691_v46  ;;  %v1690_v1 = vsel %vm1040_vm0, %v1687_v37, %v1689_v45  ;;  %4712 = vmatpush3.bf16.msra.mxu0 %v4709_v11 }
 0x49e   : > { %1678 = vrot.lane.b32.xlu0 %v1673_v44, %s6154_s23  ;;  %4714 = vmatprep.subr.bf16.mxu0 %v4713_v14  ;;  %v4721_v37 = vpack.c.bf16 %v1926_v33, %v1925_v32  ;;  %v2122_v33 = vld [vmem:[%s5174_s24 + $0x30] sm:$0xff] }
 0x4a0   : > { %1676 = vrot.lane.b32.xlu1 %v1671_v47, %s6154_s23 }
 0x4a1   : > { %4716 = vmatpush3.bf16.msra.mxu0 %v4713_v14 }
 0x4a2   : > { %1697 = vrot.lane.b32.xlu0 %v1692_v0, %s6158_s22 }
 0x4a4   : > { %1695 = vrot.lane.b32.xlu1 %v1690_v1, %s6158_s22 }
 0x4a8   : > { %1699 = vrot.lane.b32.xlu1 %v1691_v46, %s6158_s22 }
 0x508   : > { %v1675_v48 = vpop.permute.xlu0 %1674 }
 0x509   : > { %v1705_v49 = vsel %vm1105_vm5, %v1659_v23, %v1675_v48 }
 0x50c   : > { %v1694_v50 = vpop.permute.xlu0 %1693 }
 0x50d   : > { %v1709_v51 = vsel %vm1115_vm7, %v1705_v49, %v1694_v50 }
 0x50e   : > { %v1681_v52 = vpop.permute.xlu1 %1680  ;;  %4298 = vmatprep.mubr.msk.f32.mxu1 %vm1338_vm10, %v1709_v51 }
 0x50f   : > { %v1708_v61 = vsel %vm1105_vm5, %v1662_v38, %v1681_v52 }
 0x510   : > { %v1679_v53 = vpop.permute.xlu0 %1678 }
 0x511   : > { %v1707_v58 = vsel %vm1105_vm5, %v1661_v40, %v1679_v53 }
 0x512   : > { %v1677_v54 = vpop.permute.xlu1 %1676 }
 0x513   : > { %v1706_v56 = vsel %vm1105_vm5, %v1660_v20, %v1677_v54  ;;  %v1923_v20 = vld [vmem:[%s6201_s14 + $0x40] sm:$0xff] }
 0x514   : > { %v1698_v55 = vpop.permute.xlu0 %1697  ;;  %v4717_v23 = vpack.c.bf16 %v1924_v21, %v1923_v20  ;;  %v2118_v20 = vld [vmem:[%s5174_s24 + $0x10] sm:$0xff] }
 0x515   : > { %v1711_v60 = vsel %vm1115_vm7, %v1707_v58, %v1698_v55 }
 0x516   : > { %v1696_v57 = vpop.permute.xlu1 %1695  ;;  %4718 = vmatprep.subr.bf16.mxu0 %v4717_v23 }
 0x517   : > { %v1710_v59 = vsel %vm1115_vm7, %v1706_v56, %v1696_v57  ;;  %4720 = vmatpush3.bf16.msra.mxu0 %v4717_v23 }
 0x518   : > { %4299 = vmatmul.mubr.msk.f32.vlgmr.msra.gmra.mrb[4].mxu1 %vm1338_vm10, %v1710_v59  ;;  %4722 = vmatprep.subr.bf16.mxu0 %v4721_v37 }
 0x519   : > { %4301 = vmatprep.mubr.msk.f32.mxu1 %vm1338_vm10, %v1711_v60 }
 0x51a   : > { %v1700_v62 = vpop.permute.xlu1 %1699 }
 0x51b   : > { %v1712_v63 = vsel %vm1115_vm7, %v1708_v61, %v1700_v62  ;;  %4724 = vmatpush3.bf16.msra.mxu0 %v4721_v37 }
 0x51c   : > { %4302 = vmatmul.mubr.msk.f32.gmra.mrb[6].mxu1 %vm1338_vm10, %v1712_v63 }
 0x5eb   : > { %v4300_v10 = vpop.f32.mrb[4].mxu1 }
 0x5ec   : > { %v1814_v16 = vadd.f32 %v4300_v10, %v3909_v15  ;;  %v1808_v17 = vpop.f32.mrb[5].mxu1 }
 0x5ed   : > { %v1809_v19 = vadd.f32 %v3909_v15, %v1808_v17 }
 0x5ee   : > { %v1828_v22 = vmax.f32 %v1814_v16, 0.0 }
 0x5ef   : > { %v1827_v25 = vmax.f32 %v1809_v19, 0.0  ;;  %v4303_v26 = vpop.f32.mrb[6].mxu1  ;;  %v2117_v19 = vld [vmem:[%s5174_s24 + $0x8] sm:$0xff] }
 0x5f0   : > { %v1837_v27 = vmul.f32 %v3914_v18, %v1828_v22  ;;  %v1824_v28 = vadd.f32 %v4303_v26, %v3909_v15  ;;  %v1818_v29 = vpop.f32.mrb[7].mxu1  ;;  %v2119_v22 = vld [vmem:[%s5174_s24 + $0x18] sm:$0xff] }
 0x5f1   : > { %v1836_v30 = vmul.f32 %v3914_v18, %v1827_v25  ;;  %v1819_v31 = vadd.f32 %v3909_v15, %v1818_v29  ;;  %v4729_v23 = vpack.c.bf16 %v2119_v22, %v2118_v20  ;;  %v2121_v25 = vld [vmem:[%s5174_s24 + $0x28] sm:$0xff] }
 0x5f2   : > { %v5583_v34 = vadd.f32 %v3915_v24, %v1837_v27  ;;  %v1830_v35 = vmax.f32 %v1824_v28, 0.0  ;;  %v3916_v27 = vld [vmem:[%s5169_s19] ss:$0 sm:$0xff] }
 0x5f3   : > { %v5585_v36 = vadd.f32 %v3915_v24, %v1836_v30  ;;  %v1829_v39 = vmax.f32 %v1819_v31, 0.0  ;;  %v3921_v31 = vld [vmem:[%s5169_s19 + $0x1] ss:$0 sm:$0xff] }
 0x5f4   : > { %v1854_v38 = vrot.slane %v5583_v34, 7  ;;  %v1839_v40 = vmul.f32 %v3914_v18, %v1830_v35  ;;  %v2123_v35 = vld [vmem:[%s5174_s24 + $0x38] sm:$0xff] }
 0x5f5   : > { %v1853_v41 = vrot.slane %v5585_v36, 7  ;;  %v1838_v42 = vmul.f32 %v3914_v18, %v1829_v39  ;;  %v2116_v18 = vld [vmem:[%s5174_s24] sm:$0xff]  ;;  %v4737_v39 = vpack.c.bf16 %v2123_v35, %v2122_v33 }
 0x5f6   : > { %v5589_v43 = vadd.f32 %v3915_v24, %v1839_v40  ;;  %v4725_v21 = vpack.c.bf16 %v2117_v19, %v2116_v18 }
 0x5f7   : > { %v5591_v44 = vadd.f32 %v3915_v24, %v1838_v42  ;;  %v1855_v45 = vsel %vm1259_vm9, %v1853_v41, %v1854_v38  ;;  %v1864_v46 = vsel %vm1259_vm9, 0.0, %v1853_v41  ;;  %v2120_v24 = vld [vmem:[%s5174_s24 + $0x20] sm:$0xff] }
 0x5f8   : > { %v1858_v47 = vrot.slane %v5589_v43, 7  ;;  %v1869_v0 = vrot.slane %v1864_v46, 1  ;;  %v1870_v1 = vrot.slane %v1855_v45, 1  ;;  %v1888_v50 = vrot.slane %v1864_v46, 2  ;;  %4726 = vmatprep.subr.bf16.mxu1 %v4725_v21 }
 0x5f9   : > { %v1856_v48 = vrot.slane %v5591_v44, 7  ;;  %v1889_v51 = vrot.slane %v1855_v45, 2  ;;  %4728 = vmatpush3.bf16.msra.mxu1 %v4725_v21  ;;  %v4733_v26 = vpack.c.bf16 %v2121_v25, %v2120_v24 }
 0x5fa   : > { %v1871_v49 = vsel %vm1020_vm1, %v1869_v0, %v1870_v1  ;;  %4730 = vmatprep.subr.bf16.mxu1 %v4729_v23 }
 0x5fb   : > { %1876 = vrot.lane.b32.xlu0 %v1871_v49, %s6154_s23  ;;  %v1857_v52 = vsel %vm1259_vm9, %v1854_v38, %v1856_v48  ;;  %v1859_v53 = vsel %vm1259_vm9, %v1856_v48, %v1858_v47  ;;  %v1890_v56 = vsel %vm1040_vm0, %v1888_v50, %v1889_v51  ;;  %v3922_v38 = vld [vmem:[%s5169_s19 + $0x2] ss:$0 sm:$0xff] }
 0x5fc   : > { %v1872_v54 = vrot.slane %v1857_v52, 1  ;;  %v1866_v55 = vsel %vm1865_vm11, %v1859_v53, 0.0  ;;  %v1891_v59 = vrot.slane %v1857_v52, 2 }
 0x5fd   : > { %v1874_v58 = vrot.slane %v1866_v55, 1  ;;  %v1893_v62 = vrot.slane %v1866_v55, 2  ;;  %4732 = vmatpush3.bf16.msra.mxu1 %v4729_v23 }
 0x5fe   : > { %v1873_v57 = vsel %vm1020_vm1, %v1870_v1, %v1872_v54  ;;  %v1892_v61 = vsel %vm1040_vm0, %v1889_v51, %v1891_v59  ;;  %4734 = vmatprep.subr.bf16.mxu1 %v4733_v26 }
 0x5ff   : > { %1895 = vrot.lane.b32.xlu0 %v1890_v56, %s6158_s22  ;;  %1878 = vrot.lane.b32.xlu1 %v1873_v57, %s6154_s23  ;;  %v1875_v60 = vsel %vm1020_vm1, %v1872_v54, %v1874_v58  ;;  %v1894_v63 = vsel %vm1040_vm0, %v1891_v59, %v1893_v62  ;;  %v2126_v54 = vld [vmem:[%s5174_s24 + $0x50] sm:$0xff] }
 0x601   : > { %4736 = vmatpush3.bf16.msra.mxu1 %v4733_v26 }
 0x602   : > { %4738 = vmatprep.subr.bf16.mxu1 %v4737_v39 }
 0x603   : > { %1880 = vrot.lane.b32.xlu0 %v1875_v60, %s6154_s23  ;;  %1897 = vrot.lane.b32.xlu1 %v1892_v61, %s6158_s22 }
 0x605   : > { %4740 = vmatpush3.bf16.msra.mxu1 %v4737_v39 }
 0x607   : > { %1899 = vrot.lane.b32.xlu0 %v1894_v63, %s6158_s22  ;;  %1882 = vrot.lane.b32.xlu1 %v1874_v58, %s6154_s23 }
 0x60b   : > { %1901 = vrot.lane.b32.xlu1 %v1893_v62, %s6158_s22 }
 0x66d   : > { %v1877_v2 = vpop.permute.xlu0 %1876 }
 0x66e   : > { %v1907_v3 = vsel %vm1105_vm5, %v1864_v46, %v1877_v2  ;;  %v2125_v46 = vld [vmem:[%s5174_s24 + $0x48] sm:$0xff] }
 0x671   : > { %v1879_v4 = vpop.permute.xlu1 %1878  ;;  %v1896_v5 = vpop.permute.xlu0 %1895 }
 0x672   : > { %v1911_v6 = vsel %vm1115_vm7, %v1907_v3, %v1896_v5  ;;  %v1908_v7 = vsel %vm1105_vm5, %v1855_v45, %v1879_v4  ;;  %v2124_v45 = vld [vmem:[%s5174_s24 + $0x40] sm:$0xff] }
 0x673   : > { %4328 = vmatprep.mubr.msk.f32.mxu0 %vm1338_vm10, %v1911_v6  ;;  %v4741_v0 = vpack.c.bf16 %v2125_v46, %v2124_v45  ;;  %v5105_v45 = vmov 0.0|0.0  }
 0x674   : > { %4749 = vmatprep.subr.bf16.mxu0 %v5105_v45 }
 0x675   : > { %v1898_v8 = vpop.permute.xlu1 %1897  ;;  %v1881_v9 = vpop.permute.xlu0 %1880  ;;  %4742 = vmatprep.subr.bf16.mxu1 %v4741_v0 }
 0x676   : > { %v1912_v11 = vsel %vm1115_vm7, %v1908_v7, %v1898_v8  ;;  %v1909_v12 = vsel %vm1105_vm5, %v1857_v52, %v1881_v9  ;;  %4744 = vmatpush3.bf16.msra.mxu1 %v4741_v0 }
 0x677   : > { %4329 = vmatmul.mubr.msk.f32.vlgmr.msra.gmra.mrb[8].mxu0 %vm1338_vm10, %v1912_v11 }
 0x679   : > { %v1883_v13 = vpop.permute.xlu1 %1882  ;;  %v1900_v14 = vpop.permute.xlu0 %1899 }
 0x67a   : > { %v1913_v15 = vsel %vm1115_vm7, %v1909_v12, %v1900_v14  ;;  %v1910_v10 = vsel %vm1105_vm5, %v1866_v55, %v1883_v13  ;;  %v2127_v55 = vld [vmem:[%s5174_s24 + $0x58] sm:$0xff] }
 0x67b   : > { %4331 = vmatprep.mubr.msk.f32.mxu0 %vm1338_vm10, %v1913_v15  ;;  %v4745_v57 = vpack.c.bf16 %v2127_v55, %v2126_v54  ;;  %v2307_v54 = vld [vmem:[%s6206_s6 + $0x48] sm:$0xff] }
 0x67d   : > { %v1902_v16 = vpop.permute.xlu1 %1901  ;;  %4746 = vmatprep.subr.bf16.mxu1 %v4745_v57 }
 0x67e   : > { %v1914_v17 = vsel %vm1115_vm7, %v1910_v10, %v1902_v16  ;;  %4748 = vmatpush3.bf16.msra.mxu1 %v4745_v57  ;;  %v2309_v57 = vld [vmem:[%s6206_s6 + $0x58] sm:$0xff] }
 0x67f   : > { %4332 = vmatmul.mubr.msk.f32.gmra.mrb[10].mxu0 %vm1338_vm10, %v1914_v17  ;;  %4767 = vmatprep.subr.bf16.mxu1 %v5105_v45 }
 0x74a   : > { %v4330_v28 = vpop.f32.mrb[8].mxu0 }
 0x74b   : > { %v2016_v29 = vadd.f32 %v4330_v28, %v3916_v27  ;;  %v2010_v30 = vpop.f32.mrb[9].mxu0 }
 0x74c   : > { %v2011_v32 = vadd.f32 %v3916_v27, %v2010_v30 }
 0x74d   : > { %v2030_v37 = vmax.f32 %v2016_v29, 0.0 }
 0x74e   : > { %v2029_v40 = vmax.f32 %v2011_v32, 0.0 }
 0x74f   : > { %v2039_v41 = vmul.f32 %v3921_v31, %v2030_v37 }
 0x750   : > { %v2038_v42 = vmul.f32 %v3921_v31, %v2029_v40  ;;  %v2298_v40 = vld [vmem:[%s6206_s6] sm:$0xff] }
 0x751   : > { %v2048_v47 = vadd.f32 %v3922_v38, %v2039_v41  ;;  %v2299_v41 = vld [vmem:[%s6206_s6 + $0x8] sm:$0xff] }
 0x752   : > { %v2047_v1 = vadd.f32 %v3922_v38, %v2038_v42  ;;  %v4333_v48 = vpop.f32.mrb[10].mxu0  ;;  %v2300_v42 = vld [vmem:[%s6206_s6 + $0x10] sm:$0xff]  ;;  %v4750_v46 = vpack.c.bf16 %v2299_v41, %v2298_v40 }
 0x753   : > { %v2056_v49 = vrot.slane %v2048_v47, 7  ;;  %v2026_v50 = vadd.f32 %v4333_v48, %v3916_v27  ;;  %v2020_v51 = vpop.f32.mrb[11].mxu0  ;;  %v2301_v47 = vld [vmem:[%s6206_s6 + $0x18] sm:$0xff]  ;;  %v2303_v48 = vld [vmem:[%s6206_s6 + $0x28] sm:$0xff] }
 0x754   : > { %v2055_v52 = vrot.slane %v2047_v1, 7  ;;  %v2021_v53 = vadd.f32 %v3916_v27, %v2020_v51  ;;  %4751 = vmatpush3.bf16.msra.mxu0 %v4750_v46  ;;  %v4753_v0 = vpack.c.bf16 %v2301_v47, %v2300_v42  ;;  %v2302_v1 = vld [vmem:[%s6206_s6 + $0x20] sm:$0xff]  ;;  %v2305_v51 = vld [vmem:[%s6206_s6 + $0x38] sm:$0xff] }
 0x755   : > { %v2032_v56 = vmax.f32 %v2026_v50, 0.0  ;;  %4752 = vmatprep.subr.bf16.mxu0 %v5105_v45  ;;  %v2304_v50 = vld [vmem:[%s6206_s6 + $0x30] sm:$0xff] }
 0x756   : > { %v2066_v58 = vsel %vm1259_vm9, 0.0, %v2055_v52  ;;  %v2031_v59 = vmax.f32 %v2021_v53, 0.0  ;;  %v2057_v60 = vsel %vm1259_vm9, %v2055_v52, %v2056_v49  ;;  %v4759_v52 = vpack.c.bf16 %v2305_v51, %v2304_v50  ;;  %v2306_v53 = vld [vmem:[%s6206_s6 + $0x40] sm:$0xff]  ;;  %v2478_v51 = vld [vmem:[%s6211_s2 + $0x8] sm:$0xff] }
 0x757   : > { %v2041_v61 = vmul.f32 %v3921_v31, %v2032_v56  ;;  %v2070_v62 = vrot.slane %v2066_v58, 1  ;;  %v2071_v63 = vrot.slane %v2057_v60, 1  ;;  %v2089_v5 = vrot.slane %v2066_v58, 2  ;;  %v2308_v56 = vld [vmem:[%s6206_s6 + $0x50] sm:$0xff]  ;;  %v2477_v50 = vld [vmem:[%s6211_s2] sm:$0xff]  ;;  %s6219_s6 = sld [smem:[#allocation19_spill]] }
 0x758   : > { %v2040_v2 = vmul.f32 %v3921_v31, %v2031_v59  ;;  %v2090_v6 = vrot.slane %v2057_v60, 2  ;;  %4754 = vmatpush3.bf16.msra.mxu0 %v4753_v0  ;;  %v4762_v55 = vpack.c.bf16 %v2307_v54, %v2306_v53  ;;  %v3923_v59 = vld [vmem:[%s5179_s30] ss:$0 sm:$0xff]  ;;  %v4768_v53 = vpack.c.bf16 %v2478_v51, %v2477_v50  ;;  %v2480_v54 = vld [vmem:[%s6211_s2 + $0x18] sm:$0xff] }
 0x759   : > { %v2050_v3 = vadd.f32 %v3922_v38, %v2041_v61  ;;  %v2072_v4 = vsel %vm1020_vm1, %v2070_v62, %v2071_v63  ;;  %4755 = vmatprep.subr.bf16.mxu0 %v5105_v45 }
 0x75a   : > { %v2049_v7 = vadd.f32 %v3922_v38, %v2040_v2  ;;  %2077 = vrot.lane.b32.xlu0 %v2072_v4, %s6154_s23  ;;  %v2091_v11 = vsel %vm1040_vm0, %v2089_v5, %v2090_v6  ;;  %v3929_v4 = vld [vmem:[%s5179_s30 + $0x2] ss:$0 sm:$0xff] }
 0x75b   : > { %v2060_v8 = vrot.slane %v2050_v3, 7 }
 0x75c   : > { %v2058_v9 = vrot.slane %v2049_v7, 7 }
 0x75e   : > { %2096 = vrot.lane.b32.xlu0 %v2091_v11, %s6158_s22  ;;  %v2059_v12 = vsel %vm1259_vm9, %v2056_v49, %v2058_v9  ;;  %v2061_v13 = vsel %vm1259_vm9, %v2058_v9, %v2060_v8  ;;  %v4756_v49 = vpack.c.bf16 %v2303_v48, %v2302_v1 }
 0x75f   : > { %v2073_v14 = vrot.slane %v2059_v12, 1  ;;  %v2067_v15 = vsel %vm1865_vm11, %v2061_v13, 0.0  ;;  %v2092_v17 = vrot.slane %v2059_v12, 2 }
 0x760   : > { %v2075_v10 = vrot.slane %v2067_v15, 1  ;;  %v2094_v19 = vrot.slane %v2067_v15, 2  ;;  %4757 = vmatpush3.bf16.msra.mxu0 %v4756_v49 }
 0x761   : > { %v2074_v16 = vsel %vm1020_vm1, %v2071_v63, %v2073_v14  ;;  %v2093_v20 = vsel %vm1040_vm0, %v2090_v6, %v2092_v17  ;;  %4758 = vmatprep.subr.bf16.mxu0 %v5105_v45  ;;  %v3928_v63 = vld [vmem:[%s5179_s30 + $0x1] ss:$0 sm:$0xff]  ;;  %v5107_v6 = vmov 0.0  }
 0x762   : > { %2079 = vrot.lane.b32.xlu1 %v2074_v16, %s6154_s23  ;;  %v2076_v18 = vsel %vm1020_vm1, %v2073_v14, %v2075_v10  ;;  %v2095_v21 = vsel %vm1040_vm0, %v2092_v17, %v2094_v19  ;;  %4388 = vmatprep.mubr.msk.f32.mxu0 %vm5106_vm12, %v5107_v6 }
 0x763   : > { %2081 = vrot.lane.b32.xlu0 %v2076_v18, %s6154_s23 }
 0x764   : > { %4760 = vmatpush3.bf16.msra.mxu0 %v4759_v52  ;;  %v2479_v52 = vld [vmem:[%s6211_s2 + $0x10] sm:$0xff] }
 0x765   : > { %4761 = vmatprep.subr.bf16.mxu0 %v5105_v45 }
 0x766   : > { %2098 = vrot.lane.b32.xlu1 %v2093_v20, %s6158_s22 }
 0x767   : > { %2100 = vrot.lane.b32.xlu0 %v2095_v21, %s6158_s22 }
 0x768   : > { %4763 = vmatpush3.bf16.msra.mxu0 %v4762_v55  ;;  %v4771_v55 = vpack.c.bf16 %v2480_v54, %v2479_v52 }
 0x769   : > { %4764 = vmatprep.subr.bf16.mxu0 %v5105_v45 }
 0x76a   : > { %2083 = vrot.lane.b32.xlu1 %v2075_v10, %s6154_s23 }
 0x76e   : > { %2102 = vrot.lane.b32.xlu1 %v2094_v19, %s6158_s22 }
 0x7cc   : > { %v2078_v22 = vpop.permute.xlu0 %2077 }
 0x7cd   : > { %v2108_v23 = vsel %vm1105_vm5, %v2066_v58, %v2078_v22  ;;  %v4765_v58 = vpack.c.bf16 %v2309_v57, %v2308_v56  ;;  %v2481_v56 = vld [vmem:[%s6211_s2 + $0x20] sm:$0xff]  ;;  %v2482_v57 = vld [vmem:[%s6211_s2 + $0x28] sm:$0xff] }
 0x7cf   : > { %4766 = vmatpush3.bf16.msra.mxu0 %v4765_v58  ;;  %v4774_v58 = vpack.c.bf16 %v2482_v57, %v2481_v56 }
 0x7d0   : > { %v2097_v24 = vpop.permute.xlu0 %2096  ;;  %4785 = vmatprep.subr.bf16.mxu0 %v5105_v45 }
 0x7d1   : > { %v2112_v25 = vsel %vm1115_vm7, %v2108_v23, %v2097_v24 }
 0x7d2   : > { %4358 = vmatprep.mubr.msk.f32.mxu1 %vm1338_vm10, %v2112_v25 }
 0x7d4   : > { %v2080_v26 = vpop.permute.xlu1 %2079 }
 0x7d5   : > { %v2082_v27 = vpop.permute.xlu0 %2081  ;;  %v2109_v28 = vsel %vm1105_vm5, %v2057_v60, %v2080_v26 }
 0x7d6   : > { %v2110_v30 = vsel %vm1105_vm5, %v2059_v12, %v2082_v27 }
 0x7d8   : > { %v2099_v29 = vpop.permute.xlu1 %2098 }
 0x7d9   : > { %v2113_v31 = vsel %vm1115_vm7, %v2109_v28, %v2099_v29  ;;  %v2101_v32 = vpop.permute.xlu0 %2100 }
 0x7da   : > { %v2114_v33 = vsel %vm1115_vm7, %v2110_v30, %v2101_v32  ;;  %4359 = vmatmul.mubr.msk.f32.vlgmr.msra.gmra.mrb[8].mxu1 %vm1338_vm10, %v2113_v31 }
 0x7db   : > { %4361 = vmatprep.mubr.msk.f32.mxu1 %vm1338_vm10, %v2114_v33  ;;  %4769 = vmatpush3.bf16.msra.mxu1 %v4768_v53 }
 0x7dc   : > { %v2084_v35 = vpop.permute.xlu1 %2083  ;;  %4770 = vmatprep.subr.bf16.mxu1 %v5105_v45 }
 0x7dd   : > { %v2111_v37 = vsel %vm1105_vm5, %v2067_v15, %v2084_v35 }
 0x7df   : > { %4772 = vmatpush3.bf16.msra.mxu1 %v4771_v55 }
 0x7e0   : > { %v2103_v39 = vpop.permute.xlu1 %2102  ;;  %4773 = vmatprep.subr.bf16.mxu1 %v5105_v45 }
 0x7e1   : > { %v2115_v38 = vsel %vm1115_vm7, %v2111_v37, %v2103_v39 }
 0x7e2   : > { %4362 = vmatmul.mubr.msk.f32.gmra.mrb[10].mxu1 %vm1338_vm10, %v2115_v38 }
 0x7e3   : > { %4421 = vmatprep.mubr.msk.f32.mxu1 %vm5106_vm12, %v5107_v6  ;;  %4775 = vmatpush3.bf16.msra.mxu1 %v4774_v58 }
 0x7e4   : > { %4776 = vmatprep.subr.bf16.mxu1 %v5105_v45 }
 0x8ad   : > { %v4360_v60 = vpop.f32.mrb[8].mxu1 }
 0x8ae   : > { %v2217_v61 = vadd.f32 %v4360_v60, %v3923_v59  ;;  %v2211_v62 = vpop.f32.mrb[9].mxu1  ;;  %v2484_v60 = vld [vmem:[%s6211_s2 + $0x38] sm:$0xff] }
 0x8af   : > { %v2212_v2 = vadd.f32 %v3923_v59, %v2211_v62  ;;  %v2485_v62 = vld [vmem:[%s6211_s2 + $0x40] sm:$0xff] }
 0x8b0   : > { %v2231_v3 = vmax.f32 %v2217_v61, 0.0 }
 0x8b1   : > { %v2230_v5 = vmax.f32 %v2212_v2, 0.0 }
 0x8b2   : > { %v2240_v7 = vmul.f32 %v3928_v63, %v2231_v3  ;;  %v2487_v3 = vld [vmem:[%s6211_s2 + $0x50] sm:$0xff] }
 0x8b3   : > { %v2239_v8 = vmul.f32 %v3928_v63, %v2230_v5 }
 0x8b4   : > { %v2249_v9 = vadd.f32 %v3929_v4, %v2240_v7  ;;  %v3930_v7 = vld [vmem:[%s6212_s16] ss:$0 sm:$0xff] }
 0x8b5   : > { %v2248_v11 = vadd.f32 %v3929_v4, %v2239_v8  ;;  %v4363_v12 = vpop.f32.mrb[10].mxu1 }
 0x8b6   : > { %v2253_v13 = vadd.f32 %v2249_v9, %v5583_v34  ;;  %v2227_v14 = vadd.f32 %v4363_v12, %v3923_v59  ;;  %v2221_v15 = vpop.f32.mrb[11].mxu1  ;;  %v3934_v12 = vld [vmem:[%s6212_s16 + $0x1] ss:$0 sm:$0xff] }
 0x8b7   : > { %v2252_v10 = vadd.f32 %v2248_v11, %v5585_v36  ;;  %v2222_v16 = vadd.f32 %v3923_v59, %v2221_v15  ;;  %v2483_v59 = vld [vmem:[%s6211_s2 + $0x30] sm:$0xff]  ;;  %v3935_v15 = vld [vmem:[%s6212_s16 + $0x2] ss:$0 sm:$0xff] }
 0x8b8   : > { %v2233_v17 = vmax.f32 %v2227_v14, 0.0  ;;  %v2277_v18 = vrot.slane %v2253_v13, 2  ;;  %v2261_v19 = vrot.slane %v2253_v13, 1  ;;  %v4777_v61 = vpack.c.bf16 %v2484_v60, %v2483_v59 }
 0x8b9   : > { %v2232_v20 = vmax.f32 %v2222_v16, 0.0  ;;  %v2276_v21 = vrot.slane %v2252_v10, 2  ;;  %v2260_v22 = vrot.slane %v2252_v10, 1 }
 0x8ba   : > { %v2242_v23 = vmul.f32 %v3928_v63, %v2233_v17  ;;  %4778 = vmatpush3.bf16.msra.mxu1 %v4777_v61 }
 0x8bb   : > { %v2241_v24 = vmul.f32 %v3928_v63, %v2232_v20  ;;  %v2278_v25 = vsel %vm1040_vm0, %v2276_v21, %v2277_v18  ;;  %v2262_v26 = vsel %vm1020_vm1, %v2260_v22, %v2261_v19  ;;  %v2486_v63 = vld [vmem:[%s6211_s2 + $0x48] sm:$0xff]  ;;  %4779 = vmatprep.subr.bf16.mxu1 %v5105_v45 }
 0x8bc   : > { %v2251_v27 = vadd.f32 %v3929_v4, %v2242_v23  ;;  %2283 = vrot.lane.b32.xlu1 %v2278_v25, %s6158_s22  ;;  %2267 = vrot.lane.b32.xlu0 %v2262_v26, %s6154_s23  ;;  %v4780_v2 = vpack.c.bf16 %v2486_v63, %v2485_v62 }
 0x8bd   : > { %v2250_v34 = vadd.f32 %v3929_v4, %v2241_v24  ;;  %v2488_v4 = vld [vmem:[%s6211_s2 + $0x58] sm:$0xff]  ;;  %s6213_s2 = sld [smem:[#allocation15_spill]] }
 0x8be   : > { %v2255_v36 = vadd.f32 %v2251_v27, %v5589_v43  ;;  %4781 = vmatpush3.bf16.msra.mxu1 %v4780_v2  ;;  %v4783_v5 = vpack.c.bf16 %v2488_v4, %v2487_v3 }
 0x8bf   : > { %v2254_v28 = vadd.f32 %v2250_v34, %v5591_v44  ;;  %4782 = vmatprep.subr.bf16.mxu1 %v5105_v45 }
 0x8c0   : > { %v2281_v33 = vrot.slane %v2255_v36, 2  ;;  %v2265_v35 = vrot.slane %v2255_v36, 1 }
 0x8c1   : > { %v2279_v29 = vrot.slane %v2254_v28, 2  ;;  %v2263_v30 = vrot.slane %v2254_v28, 1 }
 0x8c2   : > { %4784 = vmatpush3.bf16.msra.mxu1 %v4783_v5 }
 0x8c3   : > { %v2280_v31 = vsel %vm1040_vm0, %v2277_v18, %v2279_v29  ;;  %v2264_v32 = vsel %vm1020_vm1, %v2261_v19, %v2263_v30  ;;  %v2282_v37 = vsel %vm1040_vm0, %v2279_v29, %v2281_v33  ;;  %v2266_v39 = vsel %vm1020_vm1, %v2263_v30, %v2265_v35  ;;  %4803 = vmatprep.subr.bf16.mxu1 %v5105_v45  ;;  %v2656_v60 = vld [vmem:[%s6213_s2] sm:$0xff]  ;;  %v2657_v61 = vld [vmem:[%s6213_s2 + $0x8] sm:$0xff]  ;;  %v2658_v62 = vld [vmem:[%s6213_s2 + $0x10] sm:$0xff] }
 0x8c4   : > { %2285 = vrot.lane.b32.xlu1 %v2280_v31, %s6158_s22  ;;  %2269 = vrot.lane.b32.xlu0 %v2264_v32, %s6154_s23  ;;  %v4786_v63 = vpack.c.bf16 %v2657_v61, %v2656_v60  ;;  %v2659_v2 = vld [vmem:[%s6213_s2 + $0x18] sm:$0xff]  ;;  %v2660_v4 = vld [vmem:[%s6213_s2 + $0x20] sm:$0xff] }
 0x8c5   : > { %v4789_v3 = vpack.c.bf16 %v2659_v2, %v2658_v62  ;;  %v2661_v5 = vld [vmem:[%s6213_s2 + $0x28] sm:$0xff] }
 0x8c8   : > { %2287 = vrot.lane.b32.xlu1 %v2282_v37, %s6158_s22  ;;  %2271 = vrot.lane.b32.xlu0 %v2266_v39, %s6154_s23 }
 0x92e   : > { %v2284_v43 = vpop.permute.xlu1 %2283  ;;  %v2268_v44 = vpop.permute.xlu0 %2267 }
 0x92f   : > { %v2292_v38 = vsel %vm1105_vm5, %v2252_v10, %v2268_v44 }
 0x930   : > { %v2295_v40 = vsel %vm1115_vm7, %v2292_v38, %v2284_v43 }
 0x931   : > { %4389 = vmatmul.mubr.msk.f32.vlgmr.msra.gmra.mrb[12].mxu0 %vm1338_vm10, %v2295_v40 }
 0x932   : > { %4391 = vmatprep.mubr.msk.f32.mxu0 %vm5106_vm12, %v5107_v6  ;;  %4787 = vmatpush3.bf16.msra.mxu0 %v4786_v63 }
 0x933   : > { %4788 = vmatprep.subr.bf16.mxu0 %v5105_v45 }
 0x936   : > { %v2286_v41 = vpop.permute.xlu1 %2285  ;;  %v2270_v42 = vpop.permute.xlu0 %2269  ;;  %4790 = vmatpush3.bf16.msra.mxu0 %v4789_v3 }
 0x937   : > { %v2293_v46 = vsel %vm1105_vm5, %v2253_v13, %v2270_v42  ;;  %4791 = vmatprep.subr.bf16.mxu0 %v5105_v45 }
 0x938   : > { %v2296_v47 = vsel %vm1115_vm7, %v2293_v46, %v2286_v41 }
 0x939   : > { %4392 = vmatmul.mubr.msk.f32.gmra.mrb[14].mxu0 %vm1338_vm10, %v2296_v47 }
 0x93a   : > { %v2288_v0 = vpop.permute.xlu1 %2287  ;;  %v2272_v1 = vpop.permute.xlu0 %2271  ;;  %4394 = vmatprep.mubr.msk.f32.mxu0 %vm5106_vm12, %v5107_v6 }
 0x93b   : > { %v2294_v48 = vsel %vm1105_vm5, %v2254_v28, %v2272_v1 }
 0x93c   : > { %v2297_v49 = vsel %vm1115_vm7, %v2294_v48, %v2288_v0 }
 0x93d   : > { %4395 = vmatmul.mubr.msk.f32.gmra.mrb[16].mxu0 %vm1338_vm10, %v2297_v49 }
 0x93e   : > { %4454 = vmatprep.mubr.msk.f32.mxu0 %vm5106_vm12, %v5107_v6 }
 0xa04   : > { %v2390_v8 = vpop.f32.mrb[12].mxu0 }
 0xa05   : > { %v2391_v9 = vadd.f32 %v3930_v7, %v2390_v8  ;;  %v4390_v11 = vpop.f32.mrb[13].mxu0  ;;  %v2662_v8 = vld [vmem:[%s6213_s2 + $0x30] sm:$0xff] }
 0xa07   : > { %v2404_v13 = vmax.f32 %v2391_v9, 0.0  ;;  %v2663_v9 = vld [vmem:[%s6213_s2 + $0x38] sm:$0xff] }
 0xa08   : > { %v4795_v11 = vpack.c.bf16 %v2663_v9, %v2662_v8 }
 0xa09   : > { %v2412_v14 = vmul.f32 %v3934_v12, %v2404_v13  ;;  %v2665_v13 = vld [vmem:[%s6213_s2 + $0x48] sm:$0xff] }
 0xa0b   : > { %v5751_v16 = vadd.f32 %v3935_v15, %v2412_v14 }
 0xa0c   : > { %v2395_v10 = vpop.f32.mrb[14].mxu0 }
 0xa0d   : > { %v2396_v17 = vadd.f32 %v3930_v7, %v2395_v10  ;;  %v4393_v18 = vpop.f32.mrb[15].mxu0  ;;  %v2426_v21 = vrot.slane %v5751_v16, 7  ;;  %v2667_v10 = vld [vmem:[%s6213_s2 + $0x58] sm:$0xff] }
 0xa0f   : > { %v2405_v19 = vmax.f32 %v2396_v17, 0.0  ;;  %v2435_v36 = vsel %vm1259_vm9, 0.0, %v2426_v21 }
 0xa10   : > { %v2400_v20 = vpop.f32.mrb[16].mxu0  ;;  %v2455_v30 = vrot.slane %v2435_v36, 2  ;;  %v2439_v32 = vrot.slane %v2435_v36, 1 }
 0xa11   : > { %v2413_v22 = vmul.f32 %v3934_v12, %v2405_v19  ;;  %v2401_v23 = vadd.f32 %v3930_v7, %v2400_v20  ;;  %v4396_v24 = vpop.f32.mrb[17].mxu0  ;;  %v4792_v7 = vpack.c.bf16 %v2661_v5, %v2660_v4 }
 0xa13   : > { %v5754_v25 = vadd.f32 %v3935_v15, %v2413_v22  ;;  %v2406_v26 = vmax.f32 %v2401_v23, 0.0  ;;  %4793 = vmatpush3.bf16.msra.mxu0 %v4792_v7 }
 0xa14   : > { %4794 = vmatprep.subr.bf16.mxu0 %v5105_v45 }
 0xa15   : > { %v2427_v27 = vrot.slane %v5754_v25, 7  ;;  %v2414_v34 = vmul.f32 %v3934_v12, %v2406_v26  ;;  %v2664_v12 = vld [vmem:[%s6213_s2 + $0x40] sm:$0xff] }
 0xa16   : > { %v4798_v14 = vpack.c.bf16 %v2665_v13, %v2664_v12  ;;  %v2843_v13 = vld [vmem:[%s6216_s3] sm:$0xff] }
 0xa17   : > { %v5758_v28 = vadd.f32 %v3935_v15, %v2414_v34  ;;  %v2428_v29 = vsel %vm1259_vm9, %v2426_v21, %v2427_v27  ;;  %4796 = vmatpush3.bf16.msra.mxu0 %v4795_v11  ;;  %v2666_v15 = vld [vmem:[%s6213_s2 + $0x50] sm:$0xff]  ;;  %s6215_s2 = smov 32  }
 0xa18   : > { %v2456_v31 = vrot.slane %v2428_v29, 2  ;;  %v2440_v33 = vrot.slane %v2428_v29, 1  ;;  %4797 = vmatprep.subr.bf16.mxu0 %v5105_v45  ;;  %v4801_v17 = vpack.c.bf16 %v2667_v10, %v2666_v15  ;;  %v2845_v15 = vld [vmem:[%s6216_s3 + $0x10] sm:$0xff] }
 0xa19   : > { %v2429_v35 = vrot.slane %v5758_v28, 7 }
 0xa1a   : > { %v2457_v37 = vsel %vm1040_vm0, %v2455_v30, %v2456_v31  ;;  %v2441_v39 = vsel %vm1020_vm1, %v2439_v32, %v2440_v33 }
 0xa1b   : > { %2462 = vrot.lane.b32.xlu1 %v2457_v37, %s6158_s22  ;;  %2446 = vrot.lane.b32.xlu0 %v2441_v39, %s6154_s23  ;;  %v2430_v43 = vsel %vm1259_vm9, %v2427_v27, %v2429_v35  ;;  %v2436_v44 = vsel %vm1259_vm9, %v2429_v35, 0.0 }
 0xa1c   : > { %v2458_v38 = vrot.slane %v2430_v43, 2  ;;  %v2442_v40 = vrot.slane %v2430_v43, 1  ;;  %v2460_v46 = vrot.slane %v2436_v44, 2  ;;  %v2444_v47 = vrot.slane %v2436_v44, 1  ;;  %4799 = vmatpush3.bf16.msra.mxu0 %v4798_v14  ;;  %v2844_v14 = vld [vmem:[%s6216_s3 + $0x8] sm:$0xff] }
 0xa1d   : > { %4800 = vmatprep.subr.bf16.mxu0 %v5105_v45  ;;  %v4804_v10 = vpack.c.bf16 %v2844_v14, %v2843_v13 }
 0xa1e   : > { %v2459_v41 = vsel %vm1040_vm0, %v2456_v31, %v2458_v38  ;;  %v2443_v42 = vsel %vm1020_vm1, %v2440_v33, %v2442_v40  ;;  %v2461_v0 = vsel %vm1040_vm0, %v2458_v38, %v2460_v46  ;;  %v2445_v1 = vsel %vm1020_vm1, %v2442_v40, %v2444_v47 }
 0xa1f   : > { %2464 = vrot.lane.b32.xlu1 %v2459_v41, %s6158_s22  ;;  %2448 = vrot.lane.b32.xlu0 %v2443_v42, %s6154_s23 }
 0xa20   : > { %4802 = vmatpush3.bf16.msra.mxu0 %v4801_v17  ;;  %v2846_v17 = vld [vmem:[%s6216_s3 + $0x18] sm:$0xff] }
 0xa21   : > { %4833 = vmatprep.subr.bf16.mxu0 %v5105_v45 }
 0xa23   : > { %2466 = vrot.lane.b32.xlu1 %v2461_v0, %s6158_s22  ;;  %2450 = vrot.lane.b32.xlu0 %v2445_v1, %s6154_s23  ;;  %s6214_s23 = sld [smem:[#allocation14_spill]] }
 0xa29   : > { %v3936_v18 = vld [vmem:[%s6214_s23] ss:$0 sm:$0xff]  ;;  %v3940_v22 = vld [vmem:[%s6214_s23 + $0x1] ss:$0 sm:$0xff]  ;;  %v3941_v24 = vld [vmem:[%s6214_s23 + $0x2] ss:$0 sm:$0xff] }
 0xa8d   : > { %v2463_v48 = vpop.permute.xlu1 %2462  ;;  %v2447_v49 = vpop.permute.xlu0 %2446 }
 0xa8e   : > { %v2471_v50 = vsel %vm1105_vm5, %v2435_v36, %v2447_v49 }
 0xa8f   : > { %v2474_v51 = vsel %vm1115_vm7, %v2471_v50, %v2463_v48 }
 0xa90   : > { %4422 = vmatmul.mubr.msk.f32.vlgmr.msra.gmra.mrb[12].mxu1 %vm1338_vm10, %v2474_v51 }
 0xa91   : > { %v2465_v52 = vpop.permute.xlu1 %2464  ;;  %v2449_v53 = vpop.permute.xlu0 %2448  ;;  %4424 = vmatprep.mubr.msk.f32.mxu1 %vm5106_vm12, %v5107_v6  ;;  %4805 = vmatpush1.bf16.msra.mxu1 %v4804_v10 }
 0xa92   : > { %v2472_v54 = vsel %vm1105_vm5, %v2428_v29, %v2449_v53  ;;  %4806 = vmatprep.subr.bf16.mxu1 %v5105_v45 }
 0xa93   : > { %v2475_v55 = vsel %vm1115_vm7, %v2472_v54, %v2465_v52 }
 0xa94   : > { %4425 = vmatmul.mubr.msk.f32.gmra.mrb[14].mxu1 %vm1338_vm10, %v2475_v55 }
 0xa95   : > { %v2467_v56 = vpop.permute.xlu1 %2466  ;;  %v2451_v57 = vpop.permute.xlu0 %2450  ;;  %4427 = vmatprep.mubr.msk.f32.mxu1 %vm5106_vm12, %v5107_v6 }
 0xa96   : > { %v2473_v58 = vsel %vm1105_vm5, %v2430_v43, %v2451_v57 }
 0xa97   : > { %v2476_v59 = vsel %vm1115_vm7, %v2473_v58, %v2467_v56 }
 0xa98   : > { %4428 = vmatmul.mubr.msk.f32.gmra.mrb[16].mxu1 %vm1338_vm10, %v2476_v59 }
 0xb63   : > { %v2569_v19 = vpop.f32.mrb[12].mxu1 }
 0xb64   : > { %v2570_v20 = vadd.f32 %v3936_v18, %v2569_v19  ;;  %v4423_v21 = vpop.f32.mrb[13].mxu1  ;;  %v2847_v19 = vld [vmem:[%s6216_s3 + $0x20] sm:$0xff] }
 0xb66   : > { %v2583_v23 = vmax.f32 %v2570_v20, 0.0  ;;  %v2848_v20 = vld [vmem:[%s6216_s3 + $0x28] sm:$0xff] }
 0xb67   : > { %v2574_v26 = vpop.f32.mrb[14].mxu1  ;;  %v4810_v21 = vpack.c.bf16 %v2848_v20, %v2847_v19 }
 0xb68   : > { %v2591_v27 = vmul.f32 %v3940_v22, %v2583_v23  ;;  %v2575_v34 = vadd.f32 %v3936_v18, %v2574_v26  ;;  %v4426_v36 = vpop.f32.mrb[15].mxu1  ;;  %v2850_v23 = vld [vmem:[%s6216_s3 + $0x38] sm:$0xff]  ;;  %v2851_v26 = vld [vmem:[%s6216_s3 + $0x40] sm:$0xff] }
 0xb69   : > { %v2853_v36 = vld [vmem:[%s6216_s3 + $0x50] sm:$0xff] }
 0xb6a   : > { %v2599_v29 = vadd.f32 %v3941_v24, %v2591_v27  ;;  %v2584_v30 = vmax.f32 %v2575_v34, 0.0  ;;  %v2852_v27 = vld [vmem:[%s6216_s3 + $0x48] sm:$0xff] }
 0xb6b   : > { %v2579_v31 = vpop.f32.mrb[16].mxu1  ;;  %v4816_v34 = vpack.c.bf16 %v2852_v27, %v2851_v26 }
 0xb6c   : > { %v2605_v32 = vrot.slane %v2599_v29, 7  ;;  %v2592_v33 = vmul.f32 %v3940_v22, %v2584_v30  ;;  %v2580_v35 = vadd.f32 %v3936_v18, %v2579_v31  ;;  %v4429_v37 = vpop.f32.mrb[17].mxu1  ;;  %v4807_v18 = vpack.c.bf16 %v2846_v17, %v2845_v15  ;;  %v2854_v29 = vld [vmem:[%s6216_s3 + $0x58] sm:$0xff]  ;;  %v2855_v31 = vld [vmem:[%s6216_s3 + $0x60] sm:$0xff] }
 0xb6d   : > { %v4819_v30 = vpack.c.bf16 %v2854_v29, %v2853_v36  ;;  %v2858_v37 = vld [vmem:[%s6216_s3 + $0x78] sm:$0xff] }
 0xb6e   : > { %v2600_v39 = vadd.f32 %v3941_v24, %v2592_v33  ;;  %v2585_v43 = vmax.f32 %v2580_v35, 0.0  ;;  %v2614_v44 = vsel %vm1259_vm9, 0.0, %v2605_v32  ;;  %4808 = vmatpush1.bf16.msra.mxu1 %v4807_v18  ;;  %v2857_v35 = vld [vmem:[%s6216_s3 + $0x70] sm:$0xff] }
 0xb6f   : > { %v2634_v46 = vrot.slane %v2614_v44, 2  ;;  %v2618_v0 = vrot.slane %v2614_v44, 1  ;;  %4809 = vmatprep.subr.bf16.mxu1 %v5105_v45 }
 0xb70   : > { %v2606_v38 = vrot.slane %v2600_v39, 7  ;;  %v2593_v40 = vmul.f32 %v3940_v22, %v2585_v43  ;;  %v2849_v22 = vld [vmem:[%s6216_s3 + $0x30] sm:$0xff]  ;;  %v4825_v39 = vpack.c.bf16 %v2858_v37, %v2857_v35  ;;  %v2859_v43 = vld [vmem:[%s6216_s3 + $0x80] sm:$0xff] }
 0xb72   : > { %v2601_v41 = vadd.f32 %v3941_v24, %v2593_v40  ;;  %v2607_v42 = vsel %vm1259_vm9, %v2605_v32, %v2606_v38  ;;  %4811 = vmatpush1.bf16.msra.mxu1 %v4810_v21  ;;  %v4813_v24 = vpack.c.bf16 %v2850_v23, %v2849_v22  ;;  %v2856_v32 = vld [vmem:[%s6216_s3 + $0x68] sm:$0xff] }
 0xb73   : > { %v2635_v47 = vrot.slane %v2607_v42, 2  ;;  %v2619_v1 = vrot.slane %v2607_v42, 1  ;;  %4812 = vmatprep.subr.bf16.mxu1 %v5105_v45  ;;  %v4822_v33 = vpack.c.bf16 %v2856_v32, %v2855_v31 }
 0xb74   : > { %v2608_v48 = vrot.slane %v2601_v41, 7 }
 0xb75   : > { %v2636_v49 = vsel %vm1040_vm0, %v2634_v46, %v2635_v47  ;;  %v2620_v50 = vsel %vm1020_vm1, %v2618_v0, %v2619_v1 }
 0xb76   : > { %2641 = vrot.lane.b32.xlu1 %v2636_v49, %s6158_s22  ;;  %2625 = vrot.lane.b32.xlu0 %v2620_v50, %s6215_s2  ;;  %v2609_v51 = vsel %vm1259_vm9, %v2606_v38, %v2608_v48  ;;  %v2615_v52 = vsel %vm1259_vm9, %v2608_v48, 0.0 }
 0xb77   : > { %v2637_v53 = vrot.slane %v2609_v51, 2  ;;  %v2621_v54 = vrot.slane %v2609_v51, 1  ;;  %v2639_v57 = vrot.slane %v2615_v52, 2  ;;  %v2623_v58 = vrot.slane %v2615_v52, 1  ;;  %4814 = vmatpush1.bf16.msra.mxu1 %v4813_v24 }
 0xb78   : > { %4815 = vmatprep.subr.bf16.mxu1 %v5105_v45 }
 0xb79   : > { %v2638_v55 = vsel %vm1040_vm0, %v2635_v47, %v2637_v53  ;;  %v2622_v56 = vsel %vm1020_vm1, %v2619_v1, %v2621_v54  ;;  %v2640_v59 = vsel %vm1040_vm0, %v2637_v53, %v2639_v57  ;;  %v2624_v60 = vsel %vm1020_vm1, %v2621_v54, %v2623_v58 }
 0xb7a   : > { %2643 = vrot.lane.b32.xlu1 %v2638_v55, %s6158_s22  ;;  %2627 = vrot.lane.b32.xlu0 %v2622_v56, %s6215_s2 }
 0xb7b   : > { %4817 = vmatpush1.bf16.msra.mxu1 %v4816_v34 }
 0xb7c   : > { %4818 = vmatprep.subr.bf16.mxu1 %v5105_v45 }
 0xb7e   : > { %2645 = vrot.lane.b32.xlu1 %v2640_v59, %s6158_s22  ;;  %2629 = vrot.lane.b32.xlu0 %v2624_v60, %s6215_s2  ;;  %s6217_s22 = sld [smem:[#allocation16_spill]] }
 0xb7f   : > { %4820 = vmatpush1.bf16.msra.mxu1 %v4819_v30 }
 0xb80   : > { %4821 = vmatprep.subr.bf16.mxu1 %v5105_v45 }
 0xb83   : > { %4823 = vmatpush1.bf16.msra.mxu1 %v4822_v33 }
 0xb84   : > { %4824 = vmatprep.subr.bf16.mxu1 %v5105_v45  ;;  %v3942_v40 = vld [vmem:[%s6217_s22] ss:$0 sm:$0xff]  ;;  %v3946_v47 = vld [vmem:[%s6217_s22 + $0x1] ss:$0 sm:$0xff]  ;;  %v3947_v1 = vld [vmem:[%s6217_s22 + $0x2] ss:$0 sm:$0xff] }
 0xb87   : > { %4826 = vmatpush1.bf16.msra.mxu1 %v4825_v39 }
 0xb88   : > { %4827 = vmatprep.subr.bf16.mxu1 %v5105_v45 }
 0xbe8   : > { %v2642_v61 = vpop.permute.xlu1 %2641  ;;  %v2626_v62 = vpop.permute.xlu0 %2625 }
 0xbe9   : > { %v2650_v63 = vsel %vm1105_vm5, %v2614_v44, %v2626_v62  ;;  %v2860_v44 = vld [vmem:[%s6216_s3 + $0x88] sm:$0xff]  ;;  %v2862_v62 = vld [vmem:[%s6216_s3 + $0x98] sm:$0xff] }
 0xbea   : > { %v2653_v2 = vsel %vm1115_vm7, %v2650_v63, %v2642_v61  ;;  %v4828_v38 = vpack.c.bf16 %v2860_v44, %v2859_v43  ;;  %v2861_v61 = vld [vmem:[%s6216_s3 + $0x90] sm:$0xff]  ;;  %s6218_s3 = smov 64  }
 0xbeb   : > { %4455 = vmatmul.mubr.msk.f32.vlgmr.msra.gmra.mrb[18].mxu0 %vm1338_vm10, %v2653_v2  ;;  %v4831_v63 = vpack.c.bf16 %v2862_v62, %v2861_v61  ;;  %v3031_v61 = vld [vmem:[%s6219_s6 + $0x48] sm:$0xff] }
 0xbec   : > { %v2644_v3 = vpop.permute.xlu1 %2643  ;;  %v2628_v4 = vpop.permute.xlu0 %2627  ;;  %4457 = vmatprep.mubr.msk.f32.mxu0 %vm5106_vm12, %v5107_v6  ;;  %4829 = vmatpush1.bf16.msra.mxu1 %v4828_v38 }
 0xbed   : > { %v2651_v5 = vsel %vm1105_vm5, %v2607_v42, %v2628_v4  ;;  %4830 = vmatprep.subr.bf16.mxu1 %v5105_v45 }
 0xbee   : > { %v2654_v7 = vsel %vm1115_vm7, %v2651_v5, %v2644_v3 }
 0xbef   : > { %4458 = vmatmul.mubr.msk.f32.gmra.mrb[20].mxu0 %vm1338_vm10, %v2654_v7 }
 0xbf0   : > { %v2646_v8 = vpop.permute.xlu1 %2645  ;;  %v2630_v9 = vpop.permute.xlu0 %2629  ;;  %4460 = vmatprep.mubr.msk.f32.mxu0 %vm5106_vm12, %v5107_v6  ;;  %4832 = vmatpush1.bf16.msra.mxu1 %v4831_v63  ;;  %v3032_v63 = vld [vmem:[%s6219_s6 + $0x50] sm:$0xff] }
 0xbf1   : > { %v2652_v11 = vsel %vm1105_vm5, %v2609_v51, %v2630_v9  ;;  %4851 = vmatprep.subr.bf16.mxu1 %v5105_v45 }
 0xbf2   : > { %v2655_v12 = vsel %vm1115_vm7, %v2652_v11, %v2646_v8 }
 0xbf3   : > { %4461 = vmatmul.mubr.msk.f32.gmra.mrb[22].mxu0 %vm1338_vm10, %v2655_v12 }
 0xbf4   : > { %4487 = vmatprep.mubr.msk.f32.mxu0 %vm5106_vm12, %v5107_v6 }
 0xcbe   : > { %v2748_v41 = vpop.f32.mrb[18].mxu0 }
 0xcbf   : > { %v2749_v42 = vadd.f32 %v3942_v40, %v2748_v41  ;;  %v4456_v46 = vpop.f32.mrb[19].mxu0 }
 0xcc1   : > { %v2762_v0 = vmax.f32 %v2749_v42, 0.0 }
 0xcc2   : > { %v2753_v48 = vpop.f32.mrb[20].mxu0 }
 0xcc3   : > { %v2770_v49 = vmul.f32 %v3946_v47, %v2762_v0  ;;  %v2754_v50 = vadd.f32 %v3942_v40, %v2753_v48  ;;  %v4459_v51 = vpop.f32.mrb[21].mxu0  ;;  %v3022_v48 = vld [vmem:[%s6219_s6] sm:$0xff] }
 0xcc5   : > { %v2778_v52 = vadd.f32 %v3947_v1, %v2770_v49  ;;  %v2763_v53 = vmax.f32 %v2754_v50, 0.0  ;;  %v3023_v49 = vld [vmem:[%s6219_s6 + $0x8] sm:$0xff]  ;;  %v3024_v50 = vld [vmem:[%s6219_s6 + $0x10] sm:$0xff] }
 0xcc6   : > { %v2758_v54 = vpop.f32.mrb[22].mxu0  ;;  %v4834_v51 = vpack.c.bf16 %v3023_v49, %v3022_v48 }
 0xcc7   : > { %v2771_v55 = vmul.f32 %v3946_v47, %v2763_v53  ;;  %v2759_v56 = vadd.f32 %v3942_v40, %v2758_v54  ;;  %v4462_v57 = vpop.f32.mrb[23].mxu0  ;;  %v2781_v58 = vadd.f32 %v2778_v52, %v5751_v16  ;;  %v3025_v52 = vld [vmem:[%s6219_s6 + $0x18] sm:$0xff]  ;;  %v3026_v54 = vld [vmem:[%s6219_s6 + $0x20] sm:$0xff] }
 0xcc8   : > { %4835 = vmatpush3.bf16.msra.mxu0 %v4834_v51  ;;  %v4837_v53 = vpack.c.bf16 %v3025_v52, %v3024_v50  ;;  %v3028_v57 = vld [vmem:[%s6219_s6 + $0x30] sm:$0xff] }
 0xcc9   : > { %v2779_v59 = vadd.f32 %v3947_v1, %v2771_v55  ;;  %v2764_v60 = vmax.f32 %v2759_v56, 0.0  ;;  %v2829_v5 = vrot.slane %v2781_v58, 4  ;;  %v2801_v12 = vrot.slane %v2781_v58, 2  ;;  %4836 = vmatprep.subr.bf16.mxu0 %v5105_v45  ;;  %v3027_v55 = vld [vmem:[%s6219_s6 + $0x28] sm:$0xff] }
 0xcca   : > { %v2787_v14 = vrot.slane %v2781_v58, 1  ;;  %v2815_v22 = vrot.slane %v2781_v58, 3  ;;  %v4840_v56 = vpack.c.bf16 %v3027_v55, %v3026_v54 }
 0xccb   : > { %v2782_v2 = vadd.f32 %v2779_v59, %v5754_v25  ;;  %v2772_v3 = vmul.f32 %v3946_v47, %v2764_v60  ;;  %v3030_v60 = vld [vmem:[%s6219_s6 + $0x40] sm:$0xff] }
 0xccc   : > { %4838 = vmatpush3.bf16.msra.mxu0 %v4837_v53  ;;  %v4846_v62 = vpack.c.bf16 %v3031_v61, %v3030_v60 }
 0xccd   : > { %v2780_v4 = vadd.f32 %v3947_v1, %v2772_v3  ;;  %v2830_v7 = vrot.slane %v2782_v2, 4  ;;  %v2802_v11 = vrot.slane %v2782_v2, 2  ;;  %v2788_v16 = vrot.slane %v2782_v2, 1  ;;  %4839 = vmatprep.subr.bf16.mxu0 %v5105_v45 }
 0xcce   : > { %v2816_v20 = vrot.slane %v2782_v2, 3 }
 0xccf   : > { %v2783_v8 = vadd.f32 %v2780_v4, %v5758_v28  ;;  %v2831_v9 = vsel %vm1080_vm3, %v2829_v5, %v2830_v7  ;;  %v2803_v25 = vsel %vm1040_vm0, %v2801_v12, %v2802_v11  ;;  %v2789_v17 = vsel %vm1020_vm1, %v2787_v14, %v2788_v16 }
 0xcd0   : > { %3949 = vmatprep.mubr.msk.f32.mxu1 %vm1105_vm5, %v2831_v9  ;;  %v2817_v24 = vsel %vm1060_vm2, %v2815_v22, %v2816_v20  ;;  %4841 = vmatpush3.bf16.msra.mxu0 %v4840_v56 }
 0xcd1   : > { %v2804_v13 = vrot.slane %v2783_v8, 2  ;;  %v2790_v15 = vrot.slane %v2783_v8, 1  ;;  %v2818_v21 = vrot.slane %v2783_v8, 3  ;;  %v2832_v31 = vrot.slane %v2783_v8, 4  ;;  %4842 = vmatprep.subr.bf16.mxu0 %v5105_v45 }
 0xcd3   : > { %v2805_v10 = vsel %vm1040_vm0, %v2802_v11, %v2804_v13  ;;  %v2791_v18 = vsel %vm1020_vm1, %v2788_v16, %v2790_v15  ;;  %v2819_v23 = vsel %vm1060_vm2, %v2816_v20, %v2818_v21  ;;  %v2833_v44 = vsel %vm1080_vm3, %v2830_v7, %v2832_v31 }
 0xcd4   : > { %v4997_v19 = vpack.i.bf16 %v2805_v10, %v2803_v25  ;;  %v4992_v28 = vpack.i.bf16 %v2791_v18, %v2789_v17 }
 0xcd6   : > { %4998 = vrot.lane.b32.xlu1 %v4997_v19, %s6218_s3  ;;  %4993 = vrot.lane.b32.xlu0 %v4992_v28, %s6215_s2 }
 0xcda   : > { %2822 = vrot.lane.b32.xlu1 %v2819_v23, %s5108_s5  ;;  %2820 = vrot.lane.b32.xlu0 %v2817_v24, %s5108_s5 }
 0xcde   : > { %2810 = vrot.lane.b32.xlu1 %v2804_v13, %s6218_s3  ;;  %2796 = vrot.lane.b32.xlu0 %v2790_v15, %s6215_s2 }
 0xce2   : > { %2824 = vrot.lane.b32.xlu0 %v2818_v21, %s5108_s5  ;;  %s6220_s5 = sld [smem:[#allocation18_spill]] }
 0xce8   : > { %v3948_v4 = vld [vmem:[%s6220_s5] ss:$0 sm:$0xff]  ;;  %v3952_v9 = vld [vmem:[%s6220_s5 + $0x1] ss:$0 sm:$0xff]  ;;  %v3953_v16 = vld [vmem:[%s6220_s5 + $0x2] ss:$0 sm:$0xff] }
 0xce9   : > { %s6221_s5 = sld [smem:[#allocation21_spill]] }
 0xcef   : > { %v3196_v54 = vld [vmem:[%s6221_s5] sm:$0xff]  ;;  %v3197_v55 = vld [vmem:[%s6221_s5 + $0x8] sm:$0xff]  ;;  %v3198_v56 = vld [vmem:[%s6221_s5 + $0x10] sm:$0xff] }
 0xcf0   : > { %v3200_v60 = vld [vmem:[%s6221_s5 + $0x20] sm:$0xff]  ;;  %v3201_v61 = vld [vmem:[%s6221_s5 + $0x28] sm:$0xff] }
 0xd48   : > { %v4999_v26 = vpop.permute.xlu1 %4998  ;;  %v4994_v27 = vpop.permute.xlu0 %4993 }
 0xd49   : > { %v5000_v34 = vunpack.i.l.bf16 %v4999_v26  ;;  %v4996_v36 = vunpack.i.h.bf16 %v4994_v27  ;;  %v4995_v29 = vunpack.i.l.bf16 %v4994_v27  ;;  %v5001_v30 = vunpack.i.h.bf16 %v4999_v26 }
 0xd4b   : > { %v2834_v32 = vsel %vm1105_vm5, %v2781_v58, %v4995_v29  ;;  %v2835_v33 = vsel %vm1105_vm5, %v2782_v2, %v4996_v36  ;;  %v3029_v58 = vld [vmem:[%s6219_s6 + $0x38] sm:$0xff] }
 0xd4c   : > { %v2823_v35 = vpop.permute.xlu1 %2822  ;;  %v2821_v37 = vpop.permute.xlu0 %2820  ;;  %v2837_v39 = vsel %vm1115_vm7, %v2834_v32, %v5000_v34  ;;  %v2838_v38 = vsel %vm1115_vm7, %v2835_v33, %v5001_v30  ;;  %v4843_v59 = vpack.c.bf16 %v3029_v58, %v3028_v57  ;;  %v3033_v2 = vld [vmem:[%s6219_s6 + $0x58] sm:$0xff]  ;;  %v4852_v57 = vpack.c.bf16 %v3197_v55, %v3196_v54  ;;  %s6222_s6 = sld [smem:[#allocation20_spill]] }
 0xd4d   : > { %v2840_v43 = vsel %vm1338_vm10, %v2837_v39, %v2821_v37  ;;  %v2841_v46 = vsel %vm1338_vm10, %v2838_v38, %v2823_v35  ;;  %v4849_v3 = vpack.c.bf16 %v3033_v2, %v3032_v63  ;;  %v3199_v58 = vld [vmem:[%s6221_s5 + $0x18] sm:$0xff]  ;;  %v3202_v63 = vld [vmem:[%s6221_s5 + $0x30] sm:$0xff] }
 0xd4e   : > { %2939 = vmatmul.mubr.f32.vlgmr.msra.gmra.mrb[18].mxu1 %v2840_v43  ;;  %4844 = vmatpush3.bf16.msra.mxu0 %v4843_v59  ;;  %v4855_v59 = vpack.c.bf16 %v3199_v58, %v3198_v56  ;;  %v3203_v2 = vld [vmem:[%s6221_s5 + $0x38] sm:$0xff] }
 0xd4f   : > { %3950 = vmatprep.mubr.msk.f32.mxu1 %vm1105_vm5, %v2833_v44  ;;  %4845 = vmatprep.subr.bf16.mxu0 %v5105_v45 }
 0xd50   : > { %v2797_v40 = vpop.permute.xlu0 %2796  ;;  %v2811_v41 = vpop.permute.xlu1 %2810  ;;  %4853 = vmatpush3.bf16.msra.mxu1 %v4852_v57 }
 0xd51   : > { %v2836_v42 = vsel %vm1105_vm5, %v2783_v8, %v2797_v40  ;;  %4854 = vmatprep.subr.bf16.mxu1 %v5105_v45 }
 0xd52   : > { %2944 = vmatmul.mubr.f32.gmra.mrb[20].mxu1 %v2841_v46  ;;  %v2839_v0 = vsel %vm1115_vm7, %v2836_v42, %v2811_v41  ;;  %4847 = vmatpush3.bf16.msra.mxu0 %v4846_v62  ;;  %v4858_v62 = vpack.c.bf16 %v3201_v61, %v3200_v60 }
 0xd53   : > { %3951 = vmatprep.mubr.msk.f32.mxu1 %vm1105_vm5, %v2832_v31  ;;  %4848 = vmatprep.subr.bf16.mxu0 %v5105_v45 }
 0xd54   : > { %v2825_v47 = vpop.permute.xlu0 %2824  ;;  %4856 = vmatpush3.bf16.msra.mxu1 %v4855_v59 }
 0xd55   : > { %v2842_v1 = vsel %vm1338_vm10, %v2839_v0, %v2825_v47  ;;  %4857 = vmatprep.subr.bf16.mxu1 %v5105_v45 }
 0xd56   : > { %2949 = vmatmul.mubr.f32.gmra.mrb[22].mxu1 %v2842_v1  ;;  %4850 = vmatpush3.bf16.msra.mxu0 %v4849_v3  ;;  %v4861_v3 = vpack.c.bf16 %v3203_v2, %v3202_v63 }
 0xd57   : > { %4520 = vmatprep.mubr.msk.f32.mxu1 %vm5106_vm12, %v5107_v6  ;;  %4869 = vmatprep.subr.bf16.mxu0 %v5105_v45 }
 0xd58   : > { %4859 = vmatpush3.bf16.msra.mxu1 %v4858_v62 }
 0xd59   : > { %4860 = vmatprep.subr.bf16.mxu1 %v5105_v45 }
 0xd5c   : > { %4862 = vmatpush3.bf16.msra.mxu1 %v4861_v3 }
 0xd5d   : > { %4863 = vmatprep.subr.bf16.mxu1 %v5105_v45 }
 0xe21   : > { %v2940_v5 = vpop.f32.mrb[18].mxu1 }
 0xe22   : > { %v2941_v7 = vadd.f32 %v3948_v4, %v2940_v5  ;;  %v2942_v8 = vpop.f32.mrb[19].mxu1  ;;  %v3205_v5 = vld [vmem:[%s6221_s5 + $0x48] sm:$0xff] }
 0xe23   : > { %v3206_v8 = vld [vmem:[%s6221_s5 + $0x50] sm:$0xff] }
 0xe24   : > { %v2954_v11 = vmax.f32 %v2941_v7, 0.0 }
 0xe25   : > { %v2945_v12 = vpop.f32.mrb[20].mxu1 }
 0xe26   : > { %v2962_v13 = vmul.f32 %v3952_v9, %v2954_v11  ;;  %v2946_v14 = vadd.f32 %v3948_v4, %v2945_v12  ;;  %v2947_v15 = vpop.f32.mrb[21].mxu1 }
 0xe27   : > { %v3958_v15 = vld [vmem:[%s6222_s6 + $0x1] ss:$0 sm:$0xff] }
 0xe28   : > { %v5924_v25 = vadd.f32 %v3953_v16, %v2962_v13  ;;  %v2955_v10 = vmax.f32 %v2946_v14, 0.0 }
 0xe29   : > { %v2950_v17 = vpop.f32.mrb[22].mxu1 }
 0xe2a   : > { %v2976_v18 = vrot.slane %v5924_v25, 7  ;;  %v2963_v19 = vmul.f32 %v3952_v9, %v2955_v10  ;;  %v2951_v28 = vadd.f32 %v3948_v4, %v2950_v17  ;;  %v2952_v20 = vpop.f32.mrb[23].mxu1  ;;  %v3204_v4 = vld [vmem:[%s6221_s5 + $0x40] sm:$0xff] }
 0xe2b   : > { %v4864_v7 = vpack.c.bf16 %v3205_v5, %v3204_v4  ;;  %v3959_v17 = vld [vmem:[%s6222_s6 + $0x2] ss:$0 sm:$0xff] }
 0xe2c   : > { %v5927_v21 = vadd.f32 %v3953_v16, %v2963_v19  ;;  %v2956_v22 = vmax.f32 %v2951_v28, 0.0  ;;  %v2984_v26 = vsel %vm1259_vm9, 0.0, %v2976_v18 }
 0xe2d   : > { %v3002_v36 = vrot.slane %v2984_v26, 2  ;;  %v2988_v30 = vrot.slane %v2984_v26, 1  ;;  %4865 = vmatpush3.bf16.msra.mxu1 %v4864_v7 }
 0xe2e   : > { %v2977_v23 = vrot.slane %v5927_v21, 7  ;;  %v2964_v24 = vmul.f32 %v3952_v9, %v2956_v22  ;;  %v3207_v9 = vld [vmem:[%s6221_s5 + $0x58] sm:$0xff]  ;;  %4866 = vmatprep.subr.bf16.mxu1 %v5105_v45  ;;  %s6223_s5 = sld [smem:[#allocation23_spill]] }
 0xe2f   : > { %v4867_v11 = vpack.c.bf16 %v3207_v9, %v3206_v8 }
 0xe30   : > { %v5931_v27 = vadd.f32 %v3953_v16, %v2964_v24  ;;  %v2978_v34 = vsel %vm1259_vm9, %v2976_v18, %v2977_v23  ;;  %v3954_v16 = vld [vmem:[%s6222_s6] ss:$0 sm:$0xff]  ;;  %s6225_s6 = sld [smem:[#allocation25_spill]] }
 0xe31   : > { %v3003_v29 = vrot.slane %v2978_v34, 2  ;;  %v2989_v31 = vrot.slane %v2978_v34, 1  ;;  %4868 = vmatpush3.bf16.msra.mxu1 %v4867_v11 }
 0xe32   : > { %v2979_v32 = vrot.slane %v5931_v27, 7  ;;  %4881 = vmatprep.subr.bf16.mxu1 %v5105_v45 }
 0xe33   : > { %v3004_v33 = vsel %vm1040_vm0, %v3002_v36, %v3003_v29  ;;  %v2990_v35 = vsel %vm1020_vm1, %v2988_v30, %v2989_v31 }
 0xe34   : > { %3007 = vrot.lane.b32.xlu0 %v3004_v33, %s6218_s3  ;;  %2993 = vrot.lane.b32.xlu1 %v2990_v35, %s6215_s2  ;;  %v2980_v37 = vsel %vm1259_vm9, %v2977_v23, %v2979_v32  ;;  %v3324_v63 = vld [vmem:[%s6223_s5] sm:$0xff]  ;;  %v3325_v2 = vld [vmem:[%s6223_s5 + $0x8] sm:$0xff] }
 0xe35   : > { %v2985_v39 = vsel %vm1060_vm2, %v2980_v37, 0.0  ;;  %v4870_v3 = vpack.c.bf16 %v3325_v2, %v3324_v63  ;;  %v3326_v4 = vld [vmem:[%s6223_s5 + $0x10] sm:$0xff]  ;;  %v3327_v5 = vld [vmem:[%s6223_s5 + $0x18] sm:$0xff]  ;;  %s6227_s5 = sld [smem:[#allocation27_spill]] }
 0xe36   : > { %v3005_v43 = vrot.slane %v2985_v39, 2  ;;  %v2991_v44 = vrot.slane %v2985_v39, 1  ;;  %v4873_v7 = vpack.c.bf16 %v3327_v5, %v3326_v4 }
 0xe38   : > { %v3006_v38 = vsel %vm1040_vm0, %v3003_v29, %v3005_v43  ;;  %v2992_v40 = vsel %vm1020_vm1, %v2989_v31, %v2991_v44 }
 0xe39   : > { %3009 = vrot.lane.b32.xlu0 %v3006_v38, %s6218_s3  ;;  %2995 = vrot.lane.b32.xlu1 %v2992_v40, %s6215_s2 }
 0xe3b   : > { %v3607_v2 = vld [vmem:[%s6227_s5 + $0x20] sm:$0xff]  ;;  %v3610_v5 = vld [vmem:[%s6227_s5 + $0x38] sm:$0xff] }
 0xe3d   : > { %3011 = vrot.lane.b32.xlu0 %v3005_v43, %s6218_s3  ;;  %2997 = vrot.lane.b32.xlu1 %v2991_v44, %s6215_s2 }
 0xea6   : > { %v3008_v41 = vpop.permute.xlu0 %3007  ;;  %v2994_v42 = vpop.permute.xlu1 %2993 }
 0xea7   : > { %v3016_v46 = vsel %vm1105_vm5, %v2984_v26, %v2994_v42 }
 0xea8   : > { %v3019_v47 = vsel %vm1115_vm7, %v3016_v46, %v3008_v41 }
 0xea9   : > { %4488 = vmatmul.mubr.msk.f32.vlgmr.msra.gmra.mrb[24].mxu0 %vm1338_vm10, %v3019_v47 }
 0xeaa   : > { %4490 = vmatprep.mubr.msk.f32.mxu0 %vm5106_vm12, %v5107_v6  ;;  %4871 = vmatpush3.bf16.msra.mxu0 %v4870_v3  ;;  %v3608_v3 = vld [vmem:[%s6227_s5 + $0x28] sm:$0xff] }
 0xeab   : > { %v3010_v0 = vpop.permute.xlu0 %3009  ;;  %v2996_v1 = vpop.permute.xlu1 %2995  ;;  %4872 = vmatprep.subr.bf16.mxu0 %v5105_v45  ;;  %v4888_v4 = vpack.c.bf16 %v3608_v3, %v3607_v2 }
 0xeac   : > { %v3017_v48 = vsel %vm1105_vm5, %v2978_v34, %v2996_v1 }
 0xead   : > { %v3020_v49 = vsel %vm1115_vm7, %v3017_v48, %v3010_v0 }
 0xeae   : > { %4491 = vmatmul.mubr.msk.f32.gmra.mrb[26].mxu0 %vm1338_vm10, %v3020_v49 }
 0xeaf   : > { %v3012_v50 = vpop.permute.xlu0 %3011  ;;  %v2998_v51 = vpop.permute.xlu1 %2997  ;;  %4493 = vmatprep.mubr.msk.f32.mxu0 %vm5106_vm12, %v5107_v6  ;;  %4874 = vmatpush3.bf16.msra.mxu0 %v4873_v7 }
 0xeb0   : > { %v3018_v52 = vsel %vm1105_vm5, %v2985_v39, %v2998_v51  ;;  %4875 = vmatprep.subr.bf16.mxu0 %v5105_v45 }
 0xeb1   : > { %v3021_v53 = vsel %vm1115_vm7, %v3018_v52, %v3012_v50 }
 0xeb2   : > { %4494 = vmatmul.mubr.msk.f32.gmra.mrb[28].mxu0 %vm1338_vm10, %v3021_v53 }
 0xeb3   : > { %4537 = vmatprep.mubr.msk.f32.mxu0 %vm5106_vm12, %v5107_v6 }
 0xf7c   : > { %v3114_v12 = vpop.f32.mrb[24].mxu0 }
 0xf7d   : > { %v3115_v13 = vadd.f32 %v3954_v16, %v3114_v12  ;;  %v4489_v14 = vpop.f32.mrb[25].mxu0 }
 0xf7f   : > { %v3128_v10 = vmax.f32 %v3115_v13, 0.0 }
 0xf81   : > { %v3136_v18 = vmul.f32 %v3958_v15, %v3128_v10  ;;  %v3119_v19 = vpop.f32.mrb[26].mxu0 }
 0xf82   : > { %v3120_v28 = vadd.f32 %v3954_v16, %v3119_v19  ;;  %v4492_v20 = vpop.f32.mrb[27].mxu0 }
 0xf83   : > { %v3144_v22 = vadd.f32 %v3959_v17, %v3136_v18  ;;  %v3442_v18 = vld [vmem:[%s6225_s6 + $0x8] sm:$0xff] }
 0xf84   : > { %v3129_v23 = vmax.f32 %v3120_v28, 0.0 }
 0xf85   : > { %v3124_v24 = vpop.f32.mrb[28].mxu0  ;;  %v3150_v26 = vrot.slane %v3144_v22, 7 }
 0xf86   : > { %v3137_v34 = vmul.f32 %v3958_v15, %v3129_v23  ;;  %v3125_v36 = vadd.f32 %v3954_v16, %v3124_v24  ;;  %v4495_v29 = vpop.f32.mrb[29].mxu0 }
 0xf87   : > { %v3158_v32 = vsel %vm1259_vm9, 0.0, %v3150_v26 }
 0xf88   : > { %v3145_v30 = vadd.f32 %v3959_v17, %v3137_v34  ;;  %v3130_v31 = vmax.f32 %v3125_v36, 0.0  ;;  %v3176_v43 = vrot.slane %v3158_v32, 2  ;;  %v3162_v38 = vrot.slane %v3158_v32, 1 }
 0xf8a   : > { %v3151_v33 = vrot.slane %v3145_v30, 7  ;;  %v3138_v35 = vmul.f32 %v3958_v15, %v3130_v31 }
 0xf8c   : > { %v3146_v37 = vadd.f32 %v3959_v17, %v3138_v35  ;;  %v3152_v39 = vsel %vm1259_vm9, %v3150_v26, %v3151_v33  ;;  %v3441_v17 = vld [vmem:[%s6225_s6] sm:$0xff] }
 0xf8d   : > { %v3177_v44 = vrot.slane %v3152_v39, 2  ;;  %v3163_v40 = vrot.slane %v3152_v39, 1  ;;  %v4876_v23 = vpack.c.bf16 %v3442_v18, %v3441_v17  ;;  %v3617_v17 = vld [vmem:[%s6227_s5 + $0x70] sm:$0xff]  ;;  %v3618_v18 = vld [vmem:[%s6227_s5 + $0x78] sm:$0xff] }
 0xf8e   : > { %v3153_v41 = vrot.slane %v3146_v37, 7  ;;  %v3443_v37 = vld [vmem:[%s6225_s6 + $0x10] sm:$0xff] }
 0xf8f   : > { %v3178_v42 = vsel %vm1040_vm0, %v3176_v43, %v3177_v44  ;;  %v3164_v46 = vsel %vm1020_vm1, %v3162_v38, %v3163_v40 }
 0xf90   : > { %3181 = vrot.lane.b32.xlu0 %v3178_v42, %s6218_s3  ;;  %3167 = vrot.lane.b32.xlu1 %v3164_v46, %s6215_s2  ;;  %v3154_v47 = vsel %vm1259_vm9, %v3151_v33, %v3153_v41 }
 0xf91   : > { %v3159_v0 = vsel %vm1060_vm2, %v3154_v47, 0.0 }
 0xf92   : > { %v3179_v1 = vrot.slane %v3159_v0, 2  ;;  %v3165_v48 = vrot.slane %v3159_v0, 1 }
 0xf94   : > { %v3180_v49 = vsel %vm1040_vm0, %v3177_v44, %v3179_v1  ;;  %v3166_v50 = vsel %vm1020_vm1, %v3163_v40, %v3165_v48  ;;  %vm3776_vm0 = vcmask 80896   ;;  %vm3778_vm1 = vcmask 343040  }
 0xf95   : > { %3183 = vrot.lane.b32.xlu0 %v3180_v49, %s6218_s3  ;;  %3169 = vrot.lane.b32.xlu1 %v3166_v50, %s6215_s2 }
 0xf99   : > { %3185 = vrot.lane.b32.xlu0 %v3179_v1, %s6218_s3  ;;  %3171 = vrot.lane.b32.xlu1 %v3165_v48, %s6215_s2  ;;  %s6224_s2 = sld [smem:[#allocation22_spill]] }
 0xf9f   : > { %v3960_v8 = vld [vmem:[%s6224_s2] ss:$0 sm:$0xff]  ;;  %v3964_v12 = vld [vmem:[%s6224_s2 + $0x1] ss:$0 sm:$0xff]  ;;  %v3965_v14 = vld [vmem:[%s6224_s2 + $0x2] ss:$0 sm:$0xff] }
 0xfa0   : > { %s6226_s2 = sld [smem:[#allocation24_spill]] }
 0xfa6   : > { %v3970_v41 = vld [vmem:[%s6226_s2 + $0x1] ss:$0 sm:$0xff]  ;;  %v3971_v46 = vld [vmem:[%s6226_s2 + $0x2] ss:$0 sm:$0xff] }
0x1002   : > { %v3182_v51 = vpop.permute.xlu0 %3181  ;;  %v3168_v52 = vpop.permute.xlu1 %3167 }
0x1003   : > { %v3190_v53 = vsel %vm1105_vm5, %v3158_v32, %v3168_v52 }
0x1004   : > { %v3193_v54 = vsel %vm1115_vm7, %v3190_v53, %v3182_v51 }
0x1005   : > { %4521 = vmatmul.mubr.msk.f32.vlgmr.msra.gmra.mrb[24].mxu1 %vm1338_vm10, %v3193_v54 }
0x1006   : > { %4523 = vmatprep.mubr.msk.f32.mxu1 %vm5106_vm12, %v5107_v6 }
0x1007   : > { %v3184_v55 = vpop.permute.xlu0 %3183  ;;  %v3170_v56 = vpop.permute.xlu1 %3169 }
0x1008   : > { %v3191_v57 = vsel %vm1105_vm5, %v3152_v39, %v3170_v56  ;;  %v3444_v39 = vld [vmem:[%s6225_s6 + $0x18] sm:$0xff] }
0x1009   : > { %v3194_v58 = vsel %vm1115_vm7, %v3191_v57, %v3184_v55  ;;  %v4879_v43 = vpack.c.bf16 %v3444_v39, %v3443_v37 }
0x100a   : > { %4524 = vmatmul.mubr.msk.f32.gmra.mrb[26].mxu1 %vm1338_vm10, %v3194_v58  ;;  %v3603_v58 = vld [vmem:[%s6227_s5] sm:$0xff] }
0x100b   : > { %v3186_v59 = vpop.permute.xlu0 %3185  ;;  %v3172_v60 = vpop.permute.xlu1 %3171  ;;  %4526 = vmatprep.mubr.msk.f32.mxu1 %vm5106_vm12, %v5107_v6 }
0x100c   : > { %v3192_v61 = vsel %vm1105_vm5, %v3159_v0, %v3172_v60  ;;  %v3605_v60 = vld [vmem:[%s6227_s5 + $0x10] sm:$0xff] }
0x100d   : > { %v3195_v62 = vsel %vm1115_vm7, %v3192_v61, %v3186_v59  ;;  %v3604_v59 = vld [vmem:[%s6227_s5 + $0x8] sm:$0xff] }
0x100e   : > { %4527 = vmatmul.mubr.msk.f32.gmra.mrb[28].mxu1 %vm1338_vm10, %v3195_v62  ;;  %v4882_v61 = vpack.c.bf16 %v3604_v59, %v3603_v58  ;;  %v3606_v62 = vld [vmem:[%s6227_s5 + $0x18] sm:$0xff] }
0x100f   : > { %4595 = vmatprep.mubr.msk.f32.mxu1 %vm5106_vm12, %v5107_v6  ;;  %v4885_v63 = vpack.c.bf16 %v3606_v62, %v3605_v60 }
0x1010   : > { %4883 = vmatpush3.bf16.msra.mxu1 %v4882_v61 }
0x1011   : > { %4884 = vmatprep.subr.bf16.mxu1 %v5105_v45 }
0x1014   : > { %4886 = vmatpush3.bf16.msra.mxu1 %v4885_v63 }
0x1015   : > { %4887 = vmatprep.subr.bf16.mxu1 %v5105_v45 }
0x1018   : > { %4889 = vmatpush3.bf16.msra.mxu1 %v4888_v4 }
0x1019   : > { %4890 = vmatprep.subr.bf16.mxu1 %v5105_v45 }
0x10d8   : > { %v3288_v9 = vpop.f32.mrb[24].mxu1 }
0x10d9   : > { %v3289_v11 = vadd.f32 %v3960_v8, %v3288_v9  ;;  %v4522_v16 = vpop.f32.mrb[25].mxu1  ;;  %v3612_v9 = vld [vmem:[%s6227_s5 + $0x48] sm:$0xff] }
0x10da   : > { %v3613_v16 = vld [vmem:[%s6227_s5 + $0x50] sm:$0xff] }
0x10db   : > { %v3302_v13 = vmax.f32 %v3289_v11, 0.0 }
0x10dd   : > { %v3310_v15 = vmul.f32 %v3964_v12, %v3302_v13  ;;  %v3293_v10 = vpop.f32.mrb[26].mxu1 }
0x10de   : > { %v3294_v19 = vadd.f32 %v3960_v8, %v3293_v10  ;;  %v4525_v28 = vpop.f32.mrb[27].mxu1 }
0x10df   : > { %v3318_v20 = vadd.f32 %v3965_v14, %v3310_v15  ;;  %v3616_v15 = vld [vmem:[%s6227_s5 + $0x68] sm:$0xff] }
0x10e0   : > { %v3303_v22 = vmax.f32 %v3294_v19, 0.0  ;;  %v4903_v19 = vpack.c.bf16 %v3618_v18, %v3617_v17  ;;  %v3697_v18 = vld [vmem:[%s5274_s20 + $0x10] sm:$0xff] }
0x10e1   : > { %v3321_v24 = vadd.f32 %v3318_v20, %v5924_v25  ;;  %v3298_v26 = vpop.f32.mrb[28].mxu1 }
0x10e2   : > { %v3311_v34 = vmul.f32 %v3964_v12, %v3303_v22  ;;  %v3299_v36 = vadd.f32 %v3960_v8, %v3298_v26  ;;  %v4528_v29 = vpop.f32.mrb[29].mxu1  ;;  %v3611_v8 = vld [vmem:[%s6227_s5 + $0x40] sm:$0xff] }
0x10e3   : > { %4538 = vmatmul.mubr.msk.f32.vlgmr.msra.gmra.mrb[30].mxu0 %vm1105_vm5, %v3321_v24  ;;  %v4894_v11 = vpack.c.bf16 %v3612_v9, %v3611_v8  ;;  %v3695_v8 = vld [vmem:[%s5274_s20] sm:$0xff]  ;;  %v3696_v9 = vld [vmem:[%s5274_s20 + $0x8] sm:$0xff] }
0x10e4   : > { %v3319_v30 = vadd.f32 %v3965_v14, %v3311_v34  ;;  %v3304_v31 = vmax.f32 %v3299_v36, 0.0  ;;  %4540 = vmatprep.mubr.msk.f32.mxu0 %vm5106_vm12, %v5107_v6  ;;  %4877 = vmatpush3.bf16.msra.mxu0 %v4876_v23 }
0x10e5   : > { %4878 = vmatprep.subr.bf16.mxu0 %v5105_v45 }
0x10e6   : > { %v3322_v32 = vadd.f32 %v3319_v30, %v5927_v21  ;;  %v3312_v25 = vmul.f32 %v3964_v12, %v3304_v31  ;;  %v3966_v21 = vld [vmem:[%s6226_s2] ss:$0 sm:$0xff]  ;;  %s6228_s2 = sld [smem:[#allocation26_spill]]  ;;  %v3614_v12 = vld [vmem:[%s6227_s5 + $0x58] sm:$0xff] }
0x10e7   : > { %v4897_v13 = vpack.c.bf16 %v3614_v12, %v3613_v16 }
0x10e8   : > { %v3320_v33 = vadd.f32 %v3965_v14, %v3312_v25  ;;  %4541 = vmatmul.mubr.msk.f32.gmra.mrb[32].mxu0 %vm1105_vm5, %v3322_v32  ;;  %v3615_v14 = vld [vmem:[%s6227_s5 + $0x60] sm:$0xff] }
0x10e9   : > { %4543 = vmatprep.mubr.msk.f32.mxu0 %vm5106_vm12, %v5107_v6  ;;  %4880 = vmatpush3.bf16.msra.mxu0 %v4879_v43  ;;  %v4900_v10 = vpack.c.bf16 %v3616_v15, %v3615_v14 }
0x10ea   : > { %v3323_v35 = vadd.f32 %v3320_v33, %v5931_v27  ;;  %4905 = vmatprep.subr.bf16.mxu0 %v5105_v45 }
0x10ec   : > { %4544 = vmatmul.mubr.msk.f32.gmra.mrb[34].mxu0 %vm1105_vm5, %v3323_v35  ;;  %v3972_v28 = vld [vmem:[%s6228_s2] ss:$0 sm:$0xff]  ;;  %v3976_v26 = vld [vmem:[%s6228_s2 + $0x1] ss:$0 sm:$0xff]  ;;  %v3977_v31 = vld [vmem:[%s6228_s2 + $0x2] ss:$0 sm:$0xff] }
0x10ed   : > { %4554 = vmatprep.mubr.msk.f32.mxu0 %vm5106_vm12, %v5107_v6  ;;  %s1005_s2 = sand.u32 1, %s5058_s10  }
0x10ee   : > { %s1006_s6 = scalar_lea.vmem [#allocation2], %s1005_s2 }
0x10ef   : > { %s3794_s8 = sshll.u32 %s1006_s6, 4  ;;  %s6100_s8 = int_to_ptr.vmem [resolvable:$true] %s3794_s8 }
0x11b6   : > { %v3408_v44 = vpop.f32.mrb[30].mxu0 }
0x11b7   : > { %v3409_v38 = vadd.f32 %v3966_v21, %v3408_v44  ;;  %v4539_v40 = vpop.f32.mrb[31].mxu0 }
0x11b9   : > { %v3422_v42 = vmax.f32 %v3409_v38, 0.0 }
0x11bb   : > { %v3430_v47 = vmul.f32 %v3970_v41, %v3422_v42  ;;  %v3413_v27 = vpop.f32.mrb[32].mxu0 }
0x11bc   : > { %v3414_v0 = vadd.f32 %v3966_v21, %v3413_v27  ;;  %v4542_v1 = vpop.f32.mrb[33].mxu0 }
0x11bd   : > { %v3438_v48 = vadd.f32 %v3971_v46, %v3430_v47 }
0x11be   : > { %v3423_v49 = vmax.f32 %v3414_v0, 0.0 }
0x11bf   : > { %v3418_v50 = vpop.f32.mrb[34].mxu0  ;;  %4555 = vmatmul.mubr.msk.f32.vlgmr.msra.gmra.mrb[36].mxu0 %vm1105_vm5, %v3438_v48 }
0x11c0   : > { %v3431_v51 = vmul.f32 %v3970_v41, %v3423_v49  ;;  %v3419_v52 = vadd.f32 %v3966_v21, %v3418_v50  ;;  %v4545_v53 = vpop.f32.mrb[35].mxu0  ;;  %4557 = vmatprep.mubr.msk.f32.mxu0 %vm5106_vm12, %v5107_v6 }
0x11c2   : > { %v3439_v54 = vadd.f32 %v3971_v46, %v3431_v51  ;;  %v3424_v55 = vmax.f32 %v3419_v52, 0.0 }
0x11c4   : > { %v3432_v56 = vmul.f32 %v3970_v41, %v3424_v55  ;;  %4558 = vmatmul.mubr.msk.f32.gmra.mrb[38].mxu0 %vm1105_vm5, %v3439_v54 }
0x11c5   : > { %4560 = vmatprep.mubr.msk.f32.mxu0 %vm5106_vm12, %v5107_v6 }
0x11c6   : > { %v3440_v57 = vadd.f32 %v3971_v46, %v3432_v56 }
0x11c8   : > { %4561 = vmatmul.mubr.msk.f32.gmra.mrb[40].mxu0 %vm1105_vm5, %v3440_v57 }
0x11c9   : > { %4606 = vmatprep.mubr.msk.f32.mxu0 %vm5106_vm12, %v5107_v6  ;;  %v3609_v6 = vld [vmem:[%s6227_s5 + $0x30] sm:$0xff]  ;;  %s3979_s5 = sshll.u32 %s5307_s0, 4  ;;  %s5110_s0 = smov [#allocation2]  }
0x11ca   : > { %v4891_v7 = vpack.c.bf16 %v3610_v5, %v3609_v6  ;;  %s6098_s9 = scalar_lea.hbm %s5284_s4, %s3979_s5  ;;  %s5008_s13 = sshll.u32 %s5110_s0, 4  ;;  %s5009_s13 = int_to_ptr.vmem [resolvable:$false] %s5008_s13 }
0x11cb   : > { %s5010_s14 = scalar_lea.vmem %s5009_s13, 32  ;;  %p5011_p0 = scmp.lt.s32.totalorder %s6100_s8, %s5009_s13 }
0x11cc   : > { %4892 = vmatpush3.bf16.msra.mxu1 %v4891_v7 }
0x11cd   : > { %4893 = vmatprep.subr.bf16.mxu1 %v5105_v45 }
0x11d0   : > { %4895 = vmatpush3.bf16.msra.mxu1 %v4894_v11  ;;  %v4906_v11 = vpack.c.bf16 %v3696_v9, %v3695_v8 }
0x11d1   : > { %4896 = vmatprep.subr.bf16.mxu1 %v5105_v45 }
0x11d2   : > { %4907 = vmatpush3.bf16.msra.mxu0 %v4906_v11 }
0x11d3   : > { %4908 = vmatprep.subr.bf16.mxu0 %v5105_v45 }
0x11d4   : > { %4898 = vmatpush3.bf16.msra.mxu1 %v4897_v13 }
0x11d5   : > { %4899 = vmatprep.subr.bf16.mxu1 %v5105_v45 }
0x11d8   : > { %4901 = vmatpush3.bf16.msra.mxu1 %v4900_v10 }
0x11d9   : > { %4902 = vmatprep.subr.bf16.mxu1 %v5105_v45 }
0x11dc   : > { %4904 = vmatpush3.bf16.msra.mxu1 %v4903_v19  ;;  %v3698_v19 = vld [vmem:[%s5274_s20 + $0x18] sm:$0xff] }
0x11dd   : > { %v4909_v45 = vpack.c.bf16 %v3698_v19, %v3697_v18 }
0x11df   : > { %4910 = vmatpush3.bf16.msra.mxu0 %v4909_v45 }
0x1292   : > { %v3525_v20 = vpop.f32.mrb[36].mxu0 }
0x1293   : > { %v3526_v22 = vadd.f32 %v3972_v28, %v3525_v20  ;;  %v4556_v23 = vpop.f32.mrb[37].mxu0 }
0x1295   : > { %v3539_v24 = vmax.f32 %v3526_v22, 0.0 }
0x1297   : > { %v3530_v34 = vpop.f32.mrb[38].mxu0  ;;  %v3547_v36 = vmul.f32 %v3976_v26, %v3539_v24  ;;  %v3691_v24 = vld [vmem:[%s6203_s12 + $0x1] sm:$0x1] }
0x1298   : > { %v3531_v29 = vadd.f32 %v3972_v28, %v3530_v34  ;;  %v4559_v30 = vpop.f32.mrb[39].mxu0  ;;  %v3693_v34 = vld [vmem:[%s6203_s12 + $0x2] sm:$0x1] }
0x1299   : > { %v3555_v33 = vadd.f32 %v3977_v31, %v3547_v36  ;;  %v3699_v30 = vld [vmem:[%s5279_s27] sm:$0x1] }
0x129a   : > { %v3540_v32 = vmax.f32 %v3531_v29, 0.0 }
0x129b   : > { %v3535_v25 = vpop.f32.mrb[40].mxu0  ;;  %v3558_v44 = vsel %vm1115_vm7, %v3555_v33, 0.0 }
0x129c   : > { %v3548_v35 = vmul.f32 %v3976_v26, %v3540_v32  ;;  %v3536_v37 = vadd.f32 %v3972_v28, %v3535_v25  ;;  %v4562_v39 = vpop.f32.mrb[41].mxu0  ;;  %v3619_v28 = vld [vmem:[%s6203_s12] sm:$0x1]  ;;  %s5004_s12 = scalar_lea.vmem %s6100_s8, 16 }
0x129d   : > { %p5005_p11 = scmp.ne.s32.totalorder %s6100_s8, %s5004_s12  ;;  %p5012_p1 = scmp.lt.s32.totalorder %s5010_s14, %s5004_s12 }
0x129e   : > { %v3556_v43 = vadd.f32 %v3977_v31, %v3548_v35  ;;  %v3541_v21 = vmax.f32 %v3536_v37, 0.0 }
0x129f   : > { %p5006_p12 = pnand %p5005_p11, %p5324_p5  ;;  %p5013_p2 = por %p5012_p1, %p5011_p0 }
0x12a0   : > { %v3559_v38 = vsel %vm1115_vm7, %v3556_v43, 0.0  ;;  %v3549_v40 = vmul.f32 %v3976_v26, %v3541_v21 }
0x12a1   : > { %v3560_v41 = vadd.f32 %v3559_v38, %v3558_v44  ;;  %p5007_p13 = pneg %p5006_p12 }
0x12a2   : > { %v3557_v42 = vadd.f32 %v3977_v31, %v3549_v40 }
0x12a3   : > { %p5014_p3 = pnand %p5013_p2, %p5007_p13 }
0x12a4   : > { %v3562_v46 = vsel %vm3561_vm13, %v3557_v42, 0.0 }
0x12a5   : > { %v3563_v47 = vadd.f32 %v3562_v46, %v3560_v41 }
0x12a7   : > { %v3564_v27 = vrot.slane %v3563_v47, 4 }
0x12a9   : > { %v3565_v0 = vadd.f32 %v3564_v27, %v3563_v47 }
0x12ab   : > { %v3566_v1 = vrot.slane %v3565_v0, 2 }
0x12ad   : > { %v3567_v48 = vadd.f32 %v3566_v1, %v3565_v0 }
0x12af   : > { %v3568_v49 = vrot.slane %v3567_v48, 1 }
0x12b1   : > { %v3569_v50 = vadd.f32 %v3568_v49, %v3567_v48 }
0x12b3   : > { %v3571_v51 = vmul.f32 0.05, %v3569_v50 }
0x12b5   : > { %v3572_v52 = vsub.f32 %v3555_v33, %v3571_v51  ;;  %v3573_v53 = vsub.f32 %v3556_v43, %v3571_v51  ;;  %v3574_v54 = vsub.f32 %v3557_v42, %v3571_v51 }
0x12b7   : > { %v3575_v55 = vmul.f32 %v3572_v52, %v3572_v52  ;;  %v3576_v56 = vmul.f32 %v3573_v53, %v3573_v53  ;;  %v3577_v57 = vmul.f32 %v3574_v54, %v3574_v54 }
0x12b9   : > { %v3578_v58 = vsel %vm1115_vm7, %v3575_v55, 0.0  ;;  %v3579_v59 = vsel %vm1115_vm7, %v3576_v56, 0.0  ;;  %v3581_v61 = vsel %vm3561_vm13, %v3577_v57, 0.0 }
0x12ba   : > { %v3580_v60 = vadd.f32 %v3579_v59, %v3578_v58 }
0x12bc   : > { %v3582_v62 = vadd.f32 %v3581_v61, %v3580_v60 }
0x12be   : > { %v3583_v63 = vrot.slane %v3582_v62, 4 }
0x12c0   : > { %v3584_v2 = vadd.f32 %v3583_v63, %v3582_v62 }
0x12c2   : > { %v3585_v3 = vrot.slane %v3584_v2, 2 }
0x12c4   : > { %v3586_v4 = vadd.f32 %v3585_v3, %v3584_v2 }
0x12c6   : > { %v3587_v6 = vrot.slane %v3586_v4, 1 }
0x12c8   : > { %v3588_v5 = vadd.f32 %v3587_v6, %v3586_v4 }
0x12ca   : > { %v3590_v7 = vmul.f32 0.05263158, %v3588_v5 }
0x12cc   : > { %5002 = vrsqrt.f32 %v3590_v7  ;;  %vm3593_vm14 = vcmp.eq.f32.partialorder %v3590_v7, inf  ;;  %v3596_v13 = vand.u32 2147483648, %v3590_v7  ;;  %vm3595_vm15 = vcmp.eq.f32.partialorder %v3590_v7, 0.0 }
0x12d6   : > { %v5003_v16 = vpop.eup %5002 }
0x12d7   : > { %v3592_v12 = vmul.f32 %v5003_v16, %v3590_v7 }
0x12d9   : > { %v3594_v14 = vsel %vm3593_vm14, %v3590_v7, %v3592_v12 }
0x12da   : > { %v3597_v15 = vsel %vm3595_vm15, %v3596_v13, %v3594_v14 }
0x12db   : > { %3599 = vrot.lane.b32.xlu1 %v3597_v15, %s6218_s3  ;;  %s5109_s3 = smov 10  }
0x134d   : > { %v3600_v10 = vpop.permute.xlu1 %3599 }
0x134e   : > { %v3602_v17 = vsel %vm1115_vm7, %v3571_v51, %v3600_v10 }
0x134f   : > { %4596 = vmatmul.mubr.f32.vlgmr.msra.gmra.mrb[30].mxu1 %v3602_v17 }
0x1422   : > { %v3686_v20 = vpop.f32.mrb[30].mxu1 }
0x1423   : > { %v3687_v22 = vadd.f32 %v3686_v20, %v3619_v28  ;;  %v4597_v23 = vpop.f32.mrb[31].mxu1 }
0x1425   : > { %v3690_v26 = vmax.f32 %v3687_v22, 0.0 }
0x1427   : > { %v3692_v36 = vmul.f32 %v3691_v24, %v3690_v26 }
0x1429   : > { %v3694_v29 = vadd.f32 %v3693_v34, %v3692_v36 }
0x142b   : > { %3773 = vrot.lane.b32.xlu0 %v3694_v29, %s5109_s3  ;;  %4607 = vmatmul.mubr.msk.f32.vlgmr.msra.gmra.mrb[42].mxu0 %vm1105_vm5, %v3694_v29  ;;  %s3782_s3 = scalar_lea.sflag [#allocation3], %s1005_s2 }
0x149d   : > { %v3774_v33 = vpop.permute.xlu0 %3773 }
0x14fe   : > { %v3769_v31 = vpop.f32.mrb[42].mxu0 }
0x14ff   : > { %v3770_v32 = vadd.f32 %v3769_v31, %v3699_v30  ;;  %v4608_v25 = vpop.f32.mrb[43].mxu0 }
0x1501   : > { %v3777_v35 = vsel %vm3776_vm0, %v3770_v32, %v3774_v33 }
0x1502   : > { %v3779_v37 = vsel %vm3778_vm1, %v3777_v35, 0.0 }
0x1503   : > { %3780 = vst [vmem:[%s1006_s6] sm:$0x1] %v3779_v37 }
0x1504   : > { %5017 = shalt.err (!%p5014_p3)
}
0x1505   : > { %s5018_s6 = scalar_lea.hbm %s6098_s9, 16  ;;  %s5022_s5 = scalar_lea.hbm %s5284_s4, 32 }
0x1506   : > { %p5019_p4 = scmp.ne.s32.totalorder %s6098_s9, %s5018_s6  ;;  %p5023_p9 = scmp.lt.u32.totalorder %s6098_s9, %s5284_s4 }
0x1507   : > { %p5024_p10 = scmp.lt.u32.totalorder %s5022_s5, %s5018_s6  ;;  %p5026_p12 = scmp.lt.u32.totalorder %s5018_s6, %s6098_s9 }
0x1508   : > { %p5020_p7 = pnand %p5019_p4, %p5324_p5 }
0x1509   : > { %p5025_p11 = por %p5024_p10, %p5023_p9 }
0x150a   : > { %p5021_p8 = pneg %p5020_p7 }
0x150b   : > { %p5027_p0 = por %p5026_p12, %p5025_p11 }
0x150d   : > { %p5028_p13 = pnand %p5027_p0, %p5021_p8 }
0x150f   : > { %5031 = shalt.err (!%p5028_p13)
}
0x1510   : > { %4911 = dma.vmem_to_hbm [thread:$0]  (%p5324_p5), %s6100_s8, 16, %s6098_s9, %s3782_s3  }
0x1511 PF: > { %p4917_p1 = scmp.ge.s32.totalorder %s5066_s15, 2  ;;  %s3806_s13 = sand.u32 1, %s5054_s7  }
0x1512   : > { %s3807_s14 = scalar_lea.sflag [#allocation3], %s3806_s13 }
0x1513   : > { %p4914_p2 = pnand %p4917_p1, %p5328_p6 }
0x1515   : > { %5049 = dma.done.wait (!%p4914_p2), %s3807_s14, 16  }
0x1516   : > { %5051 = vsyncadd (!%p4914_p2), %s3807_s14, 4294967280  ;;  %p77_p3 = scmp.ge.s32.totalorder %s5311_s18, 4   ;;  %s6229_s7 = smov %s5058_s10 }
0x1517   : > { %s6230_s10 = smov %s5062_s11  ;;  %s6231_s11 = smov %s5322_s26 }
0x1518   : > { %s6232_s15 = smov %s5311_s18  ;;  %79 = sbr.rel (!%p77_p3) target bundleno = 71 (0x47), region = 220 }
0x151f   :  { %3811 = vsyncpa [#allocation3], 1 }
0x1520   :  { %3813 = vsyncpa [#allocation3 + $0x1], 1 }

</bundles_post_ra>
